<compile_context>
chip_gen: v5e
topology: v5e:2x2
jax: 0.10.0
libtpu: 0.0.40
codegen_flags: <defaults>
</compile_context>

<pallas_src>
import functools

import jax
import jax.numpy as jnp
from jax.experimental import pallas as pl
from jax.experimental.pallas import tpu as pltpu


def _conv3d_folded(x, w_ref, bias_row, matmul_dtype):
    """One 3x3x3 conv (pad=1) + bias + ReLU on a W-folded activation.

    x:        (D, H, W*Cin) f32, current layer input (VMEM value).
    w_ref:    (9, W*Cin, W*Cout) banded weights, tap index = kd*3 + kh; the
              kw-convolution and its zero padding are baked into each matrix.
    bias_row: (1, W*Cout) bias tiled along W.
    Returns   (D*H, W*Cout) f32 post-ReLU activation.
    """
    d, h, l_in = x.shape

    # Zero-pad D (major dim, cheap) and H (sublane dim) by 1 — in VMEM only.
    zd = jnp.zeros((1, h, l_in), x.dtype)
    xp = jnp.concatenate([zd, x, zd], axis=0)            # (D+2, H, L)
    zh = jnp.zeros((d + 2, 1, l_in), x.dtype)
    xp = jnp.concatenate([zh, xp, zh], axis=1)           # (D+2, H+2, L)

    acc = None
    for kd in range(3):
        for kh in range(3):
            slab = xp[kd:kd + d, kh:kh + h, :].reshape(d * h, l_in)
            w_tap = w_ref[kd * 3 + kh]
            part = jnp.dot(slab.astype(matmul_dtype),
                           w_tap.astype(matmul_dtype),
                           preferred_element_type=jnp.float32)
            acc = part if acc is None else acc + part
    return jnp.maximum(acc + bias_row, 0.0)              # bias + ReLU in f32


def _conv_block_kernel(x_ref, w1_ref, b1_ref, w2_ref, b2_ref, o_ref, *,
                       matmul_dtype):
    # x_ref:  (1, D, H, W*Cin)      one batch element, W-folded channels-last
    # w1_ref: (9, W*Cin,  W*Cmid)   b1_ref: (1, W*Cmid)
    # w2_ref: (9, W*Cmid, W*Cout)   b2_ref: (1, W*Cout)
    # o_ref:  (1, D*H, W*Cout)      lane-dense output slab (== NDHWC layout)
    _, d, h, _ = x_ref.shape
    l_mid = w1_ref.shape[-1]
    l_out = w2_ref.shape[-1]

    x = x_ref[0]                                          # (D, H, W*Cin)

    # Layer 1 (intermediate stays in VMEM — fused).
    y1 = _conv3d_folded(x, w1_ref, b1_ref[...], matmul_dtype)
    y1 = y1.reshape(d, h, l_mid)

    # Layer 2 on the VMEM-resident intermediate.
    y2 = _conv3d_folded(y1, w2_ref, b2_ref[...], matmul_dtype)

    o_ref[...] = y2.reshape(1, d * h, l_out).astype(o_ref.dtype)


def _build_banded_weights(w_oidhw, width):
    """PyTorch Conv3d weight (Cout, Cin, 3, 3, 3) -> (9, W*Cin, W*Cout).

    Tap t = kd*3 + kh holds a banded matrix B with
      B[wi*Cin + ci, wo*Cout + co] = w[co, ci, kd, kh, wi - wo + 1]
    whenever 0 <= wi - wo + 1 < 3, else 0.  This implements the kw
    convolution (including the W zero padding) inside the matmul.
    """
    cout, cin = w_oidhw.shape[:2]
    wi = jnp.arange(width)
    wo = jnp.arange(width)
    kw = jnp.arange(3)
    # mask[kw, wi, wo] = 1 iff wi == wo + kw - 1
    mask = (wi[None, :, None] == (wo[None, None, :] + kw[:, None, None] - 1)
            ).astype(w_oidhw.dtype)
    # B[kd, kh, wi, ci, wo, co] = sum_kw mask[kw, wi, wo] * w[co, ci, kd, kh, kw]
    banded = jnp.einsum("oidhk,kab->dhaibo", w_oidhw, mask)
    return banded.reshape(9, width * cin, width * cout)


@functools.partial(jax.jit, static_argnames=("matmul_dtype",))
def conv_block_forward(x_ncdhw, w1, b1, w2, b2, *, matmul_dtype=jnp.float32):
    """Conv_block.forward: (Conv3d 3x3x3 pad=1 -> ReLU) x 2.

    x_ncdhw: (N, Cin, D, H, W) f32.  Weights/bias in PyTorch layout:
    w1 (Cmid, Cin, 3, 3, 3), b1 (Cmid,), w2 (Cout, Cmid, 3, 3, 3), b2 (Cout,).
    """
    n, cin, d, h, w = x_ncdhw.shape
    cmid = w1.shape[0]
    cout = w2.shape[0]

    # NCDHW -> NDHWC -> W-folded (N, D, H, W*Cin).  The fold is a free reshape.
    x = jnp.transpose(x_ncdhw, (0, 2, 3, 4, 1)).reshape(n, d, h, w * cin)

    w1b = _build_banded_weights(w1, w)                   # (9, W*Cin,  W*Cmid)
    w2b = _build_banded_weights(w2, w)                   # (9, W*Cmid, W*Cout)
    b1r = jnp.tile(b1, w).reshape(1, w * cmid)
    b2r = jnp.tile(b2, w).reshape(1, w * cout)

    dh = d * h
    flops = 2 * n * dh * 9 * ((w * cin) * (w * cmid) + (w * cmid) * (w * cout))
    bytes_accessed = 4 * (n * dh * w * cin + n * dh * w * cout
                          + 9 * w * cin * w * cmid + 9 * w * cmid * w * cout
                          + w * cmid + w * cout)

    out_flat = pl.pallas_call(
        functools.partial(_conv_block_kernel, matmul_dtype=matmul_dtype),
        out_shape=jax.ShapeDtypeStruct((n, dh, w * cout), jnp.float32),
        grid_spec=pltpu.PrefetchScalarGridSpec(
            num_scalar_prefetch=0,
            grid=(n,),
            in_specs=[
                pl.BlockSpec((1, d, h, w * cin), lambda b: (b, 0, 0, 0)),
                pl.BlockSpec((9, w * cin, w * cmid), lambda b: (0, 0, 0)),
                pl.BlockSpec((1, w * cmid), lambda b: (0, 0)),
                pl.BlockSpec((9, w * cmid, w * cout), lambda b: (0, 0, 0)),
                pl.BlockSpec((1, w * cout), lambda b: (0, 0)),
            ],
            out_specs=pl.BlockSpec((1, dh, w * cout), lambda b: (b, 0, 0)),
        ),
        compiler_params=pltpu.CompilerParams(
            dimension_semantics=("parallel",),
            vmem_limit_bytes=64 * 1024 * 1024),
        cost_estimate=pl.CostEstimate(flops=flops, transcendentals=0,
                                      bytes_accessed=bytes_accessed),
    )(x, w1b, b1r, w2b, b2r)

    # (N, D*H, W*Cout) is bit-identical to NDHWC -> reshape is free.
    out = out_flat.reshape(n, d, h, w, cout)
    return jnp.transpose(out, (0, 4, 1, 2, 3))           # NDHWC -> NCDHW


def init_params(key, in_channels, out_channels):
    # Deterministic synthetic init (Kaiming-uniform-like scale); not a checkpoint.
    k1, k2, k3, k4 = jax.random.split(key, 4)
    fan1 = float(in_channels * 27)
    fan2 = float(out_channels * 27)
    w1 = jax.random.uniform(k1, (out_channels, in_channels, 3, 3, 3),
                            jnp.float32, -1.0, 1.0) / jnp.sqrt(fan1)
    b1 = jax.random.uniform(k2, (out_channels,), jnp.float32, -1.0, 1.0) / jnp.sqrt(fan1)
    w2 = jax.random.uniform(k3, (out_channels, out_channels, 3, 3, 3),
                            jnp.float32, -1.0, 1.0) / jnp.sqrt(fan2)
    b2 = jax.random.uniform(k4, (out_channels,), jnp.float32, -1.0, 1.0) / jnp.sqrt(fan2)
    return w1, b1, w2, b2


def _reference_forward(x_ncdhw, w1, b1, w2, b2):
    dn = ("NCDHW", "OIDHW", "NCDHW")
    y = jax.lax.conv_general_dilated(x_ncdhw, w1, (1, 1, 1), [(1, 1)] * 3,
                                     dimension_numbers=dn)
    y = jnp.maximum(y + b1[None, :, None, None, None], 0.0)
    y = jax.lax.conv_general_dilated(y, w2, (1, 1, 1), [(1, 1)] * 3,
                                     dimension_numbers=dn)
    y = jnp.maximum(y + b2[None, :, None, None, None], 0.0)
    return y


if __name__ == "__main__":
    N, CIN, COUT = 2, 4, 8
    D = H = W = 16
    key = jax.random.PRNGKey(0)
    kx, kp = jax.random.split(key)
    x = jax.random.normal(kx, (N, CIN, D, H, W), jnp.float32)   # NCDHW like PyTorch
    w1, b1, w2, b2 = init_params(kp, CIN, COUT)

    out = jax.block_until_ready(conv_block_forward(x, w1, b1, w2, b2))
    assert out.shape == (N, COUT, D, H, W), out.shape

    ref = jax.block_until_ready(_reference_forward(x, w1, b1, w2, b2))
    max_err = float(jnp.max(jnp.abs(out - ref)))
    assert jnp.allclose(out, ref, atol=1e-3, rtol=1e-3), max_err

    print("KERNEL_OK")
</pallas_src>

<mosaic_0001>
module attributes {stable_mosaic.version = 11 : i64} {
  func.func @_conv_block_kernel(%arg0: i32, %arg1: memref<1x16x16x64xf32, #tpu.memory_space<vmem>>, %arg2: memref<9x64x128xf32, #tpu.memory_space<vmem>>, %arg3: memref<1x128xf32, #tpu.memory_space<vmem>>, %arg4: memref<9x128x128xf32, #tpu.memory_space<vmem>>, %arg5: memref<1x128xf32, #tpu.memory_space<vmem>>, %arg6: memref<1x256x128xf32, #tpu.memory_space<vmem>>) attributes {dimension_semantics = [#tpu.dimension_semantics<parallel>], iteration_bounds = array<i64: 2>, scalar_prefetch = 0 : i64, scratch_operands = 0 : i64, tpu.core_type = #tpu.core_type<tc>, window_params = [{transform_indices = @transform_0, window_bounds = array<i64: 1, 16, 16, 64>}, {pipeline_mode = #tpu.pipeline_mode<synchronous>, transform_indices = @transform_1, window_bounds = array<i64: 9, 64, 128>}, {pipeline_mode = #tpu.pipeline_mode<synchronous>, transform_indices = @transform_2, window_bounds = array<i64: 1, 128>}, {pipeline_mode = #tpu.pipeline_mode<synchronous>, transform_indices = @transform_3, window_bounds = array<i64: 9, 128, 128>}, {pipeline_mode = #tpu.pipeline_mode<synchronous>, transform_indices = @transform_4, window_bounds = array<i64: 1, 128>}, {transform_indices = @transform_5, window_bounds = array<i64: 1, 256, 128>}]} {
    %c0 = arith.constant 0 : index
    %c0_0 = arith.constant 0 : index
    %c0_1 = arith.constant 0 : index
    %c0_2 = arith.constant 0 : index
    %0 = vector.load %arg1[%c0, %c0_0, %c0_1, %c0_2] : memref<1x16x16x64xf32, #tpu.memory_space<vmem>>, vector<1x16x16x64xf32>
    %1 = vector.shape_cast %0 : vector<1x16x16x64xf32> to vector<16x16x64xf32>
    %c0_3 = arith.constant 0 : index
    %c0_4 = arith.constant 0 : index
    %2 = vector.load %arg3[%c0_3, %c0_4] : memref<1x128xf32, #tpu.memory_space<vmem>>, vector<1x128xf32>
    %cst = arith.constant 0.000000e+00 : f32
    %3 = vector.broadcast %cst : f32 to vector<1x16x64xf32>
    %4 = tpu.concatenate %3, %1, %3 in 0 : vector<1x16x64xf32>, vector<16x16x64xf32>, vector<1x16x64xf32> -> vector<18x16x64xf32>
    %cst_5 = arith.constant 0.000000e+00 : f32
    %5 = vector.broadcast %cst_5 : f32 to vector<18x1x64xf32>
    %6 = tpu.concatenate %5, %4, %5 in 1 : vector<18x1x64xf32>, vector<18x16x64xf32>, vector<18x1x64xf32> -> vector<18x18x64xf32>
    %7 = vector.extract_strided_slice %6 {offsets = [0, 0, 0], sizes = [16, 16, 64], strides = [1, 1, 1]} : vector<18x18x64xf32> to vector<16x16x64xf32>
    %8 = vector.shape_cast %7 : vector<16x16x64xf32> to vector<256x64xf32>
    %c0_6 = arith.constant 0 : index
    %c0_7 = arith.constant 0 : index
    %c0_8 = arith.constant 0 : index
    %9 = vector.load %arg2[%c0_6, %c0_7, %c0_8] : memref<9x64x128xf32, #tpu.memory_space<vmem>>, vector<1x64x128xf32>
    %10 = vector.shape_cast %9 : vector<1x64x128xf32> to vector<64x128xf32>
    %cst_9 = arith.constant dense<0.000000e+00> : vector<256x128xf32>
    %11 = tpu.matmul %8, %10, %cst_9 {dimension_numbers = #tpu.dot_dimension_numbers<[1], [0], [0], [1], [0, 0, 1, 1], [], []>} : vector<256x64xf32>, vector<64x128xf32>, vector<256x128xf32> -> vector<256x128xf32>
    %12 = vector.extract_strided_slice %6 {offsets = [0, 1, 0], sizes = [16, 16, 64], strides = [1, 1, 1]} : vector<18x18x64xf32> to vector<16x16x64xf32>
    %13 = vector.shape_cast %12 : vector<16x16x64xf32> to vector<256x64xf32>
    %c1 = arith.constant 1 : index
    %c0_10 = arith.constant 0 : index
    %c0_11 = arith.constant 0 : index
    %14 = vector.load %arg2[%c1, %c0_10, %c0_11] : memref<9x64x128xf32, #tpu.memory_space<vmem>>, vector<1x64x128xf32>
    %15 = vector.shape_cast %14 : vector<1x64x128xf32> to vector<64x128xf32>
    %cst_12 = arith.constant dense<0.000000e+00> : vector<256x128xf32>
    %16 = tpu.matmul %13, %15, %cst_12 {dimension_numbers = #tpu.dot_dimension_numbers<[1], [0], [0], [1], [0, 0, 1, 1], [], []>} : vector<256x64xf32>, vector<64x128xf32>, vector<256x128xf32> -> vector<256x128xf32>
    %17 = arith.addf %11, %16 : vector<256x128xf32>
    %18 = vector.extract_strided_slice %6 {offsets = [0, 2, 0], sizes = [16, 16, 64], strides = [1, 1, 1]} : vector<18x18x64xf32> to vector<16x16x64xf32>
    %19 = vector.shape_cast %18 : vector<16x16x64xf32> to vector<256x64xf32>
    %c2 = arith.constant 2 : index
    %c0_13 = arith.constant 0 : index
    %c0_14 = arith.constant 0 : index
    %20 = vector.load %arg2[%c2, %c0_13, %c0_14] : memref<9x64x128xf32, #tpu.memory_space<vmem>>, vector<1x64x128xf32>
    %21 = vector.shape_cast %20 : vector<1x64x128xf32> to vector<64x128xf32>
    %cst_15 = arith.constant dense<0.000000e+00> : vector<256x128xf32>
    %22 = tpu.matmul %19, %21, %cst_15 {dimension_numbers = #tpu.dot_dimension_numbers<[1], [0], [0], [1], [0, 0, 1, 1], [], []>} : vector<256x64xf32>, vector<64x128xf32>, vector<256x128xf32> -> vector<256x128xf32>
    %23 = arith.addf %17, %22 : vector<256x128xf32>
    %24 = vector.extract_strided_slice %6 {offsets = [1, 0, 0], sizes = [16, 16, 64], strides = [1, 1, 1]} : vector<18x18x64xf32> to vector<16x16x64xf32>
    %25 = vector.shape_cast %24 : vector<16x16x64xf32> to vector<256x64xf32>
    %c3 = arith.constant 3 : index
    %c0_16 = arith.constant 0 : index
    %c0_17 = arith.constant 0 : index
    %26 = vector.load %arg2[%c3, %c0_16, %c0_17] : memref<9x64x128xf32, #tpu.memory_space<vmem>>, vector<1x64x128xf32>
    %27 = vector.shape_cast %26 : vector<1x64x128xf32> to vector<64x128xf32>
    %cst_18 = arith.constant dense<0.000000e+00> : vector<256x128xf32>
    %28 = tpu.matmul %25, %27, %cst_18 {dimension_numbers = #tpu.dot_dimension_numbers<[1], [0], [0], [1], [0, 0, 1, 1], [], []>} : vector<256x64xf32>, vector<64x128xf32>, vector<256x128xf32> -> vector<256x128xf32>
    %29 = arith.addf %23, %28 : vector<256x128xf32>
    %30 = vector.extract_strided_slice %6 {offsets = [1, 1, 0], sizes = [16, 16, 64], strides = [1, 1, 1]} : vector<18x18x64xf32> to vector<16x16x64xf32>
    %31 = vector.shape_cast %30 : vector<16x16x64xf32> to vector<256x64xf32>
    %c4 = arith.constant 4 : index
    %c0_19 = arith.constant 0 : index
    %c0_20 = arith.constant 0 : index
    %32 = vector.load %arg2[%c4, %c0_19, %c0_20] : memref<9x64x128xf32, #tpu.memory_space<vmem>>, vector<1x64x128xf32>
    %33 = vector.shape_cast %32 : vector<1x64x128xf32> to vector<64x128xf32>
    %cst_21 = arith.constant dense<0.000000e+00> : vector<256x128xf32>
    %34 = tpu.matmul %31, %33, %cst_21 {dimension_numbers = #tpu.dot_dimension_numbers<[1], [0], [0], [1], [0, 0, 1, 1], [], []>} : vector<256x64xf32>, vector<64x128xf32>, vector<256x128xf32> -> vector<256x128xf32>
    %35 = arith.addf %29, %34 : vector<256x128xf32>
    %36 = vector.extract_strided_slice %6 {offsets = [1, 2, 0], sizes = [16, 16, 64], strides = [1, 1, 1]} : vector<18x18x64xf32> to vector<16x16x64xf32>
    %37 = vector.shape_cast %36 : vector<16x16x64xf32> to vector<256x64xf32>
    %c5 = arith.constant 5 : index
    %c0_22 = arith.constant 0 : index
    %c0_23 = arith.constant 0 : index
    %38 = vector.load %arg2[%c5, %c0_22, %c0_23] : memref<9x64x128xf32, #tpu.memory_space<vmem>>, vector<1x64x128xf32>
    %39 = vector.shape_cast %38 : vector<1x64x128xf32> to vector<64x128xf32>
    %cst_24 = arith.constant dense<0.000000e+00> : vector<256x128xf32>
    %40 = tpu.matmul %37, %39, %cst_24 {dimension_numbers = #tpu.dot_dimension_numbers<[1], [0], [0], [1], [0, 0, 1, 1], [], []>} : vector<256x64xf32>, vector<64x128xf32>, vector<256x128xf32> -> vector<256x128xf32>
    %41 = arith.addf %35, %40 : vector<256x128xf32>
    %42 = vector.extract_strided_slice %6 {offsets = [2, 0, 0], sizes = [16, 16, 64], strides = [1, 1, 1]} : vector<18x18x64xf32> to vector<16x16x64xf32>
    %43 = vector.shape_cast %42 : vector<16x16x64xf32> to vector<256x64xf32>
    %c6 = arith.constant 6 : index
    %c0_25 = arith.constant 0 : index
    %c0_26 = arith.constant 0 : index
    %44 = vector.load %arg2[%c6, %c0_25, %c0_26] : memref<9x64x128xf32, #tpu.memory_space<vmem>>, vector<1x64x128xf32>
    %45 = vector.shape_cast %44 : vector<1x64x128xf32> to vector<64x128xf32>
    %cst_27 = arith.constant dense<0.000000e+00> : vector<256x128xf32>
    %46 = tpu.matmul %43, %45, %cst_27 {dimension_numbers = #tpu.dot_dimension_numbers<[1], [0], [0], [1], [0, 0, 1, 1], [], []>} : vector<256x64xf32>, vector<64x128xf32>, vector<256x128xf32> -> vector<256x128xf32>
    %47 = arith.addf %41, %46 : vector<256x128xf32>
    %48 = vector.extract_strided_slice %6 {offsets = [2, 1, 0], sizes = [16, 16, 64], strides = [1, 1, 1]} : vector<18x18x64xf32> to vector<16x16x64xf32>
    %49 = vector.shape_cast %48 : vector<16x16x64xf32> to vector<256x64xf32>
    %c7 = arith.constant 7 : index
    %c0_28 = arith.constant 0 : index
    %c0_29 = arith.constant 0 : index
    %50 = vector.load %arg2[%c7, %c0_28, %c0_29] : memref<9x64x128xf32, #tpu.memory_space<vmem>>, vector<1x64x128xf32>
    %51 = vector.shape_cast %50 : vector<1x64x128xf32> to vector<64x128xf32>
    %cst_30 = arith.constant dense<0.000000e+00> : vector<256x128xf32>
    %52 = tpu.matmul %49, %51, %cst_30 {dimension_numbers = #tpu.dot_dimension_numbers<[1], [0], [0], [1], [0, 0, 1, 1], [], []>} : vector<256x64xf32>, vector<64x128xf32>, vector<256x128xf32> -> vector<256x128xf32>
    %53 = arith.addf %47, %52 : vector<256x128xf32>
    %54 = vector.extract_strided_slice %6 {offsets = [2, 2, 0], sizes = [16, 16, 64], strides = [1, 1, 1]} : vector<18x18x64xf32> to vector<16x16x64xf32>
    %55 = vector.shape_cast %54 : vector<16x16x64xf32> to vector<256x64xf32>
    %c8 = arith.constant 8 : index
    %c0_31 = arith.constant 0 : index
    %c0_32 = arith.constant 0 : index
    %56 = vector.load %arg2[%c8, %c0_31, %c0_32] : memref<9x64x128xf32, #tpu.memory_space<vmem>>, vector<1x64x128xf32>
    %57 = vector.shape_cast %56 : vector<1x64x128xf32> to vector<64x128xf32>
    %cst_33 = arith.constant dense<0.000000e+00> : vector<256x128xf32>
    %58 = tpu.matmul %55, %57, %cst_33 {dimension_numbers = #tpu.dot_dimension_numbers<[1], [0], [0], [1], [0, 0, 1, 1], [], []>} : vector<256x64xf32>, vector<64x128xf32>, vector<256x128xf32> -> vector<256x128xf32>
    %59 = arith.addf %53, %58 : vector<256x128xf32>
    %60 = vector.broadcast %2 : vector<1x128xf32> to vector<256x128xf32>
    %61 = arith.addf %59, %60 : vector<256x128xf32>
    %cst_34 = arith.constant 0.000000e+00 : f32
    %62 = vector.broadcast %cst_34 : f32 to vector<256x128xf32>
    %63 = arith.maximumf %61, %62 : vector<256x128xf32>
    %64 = vector.shape_cast %63 : vector<256x128xf32> to vector<16x16x128xf32>
    %c0_35 = arith.constant 0 : index
    %c0_36 = arith.constant 0 : index
    %65 = vector.load %arg5[%c0_35, %c0_36] : memref<1x128xf32, #tpu.memory_space<vmem>>, vector<1x128xf32>
    %cst_37 = arith.constant 0.000000e+00 : f32
    %66 = vector.broadcast %cst_37 : f32 to vector<1x16x128xf32>
    %67 = tpu.concatenate %66, %64, %66 in 0 : vector<1x16x128xf32>, vector<16x16x128xf32>, vector<1x16x128xf32> -> vector<18x16x128xf32>
    %cst_38 = arith.constant 0.000000e+00 : f32
    %68 = vector.broadcast %cst_38 : f32 to vector<18x1x128xf32>
    %69 = tpu.concatenate %68, %67, %68 in 1 : vector<18x1x128xf32>, vector<18x16x128xf32>, vector<18x1x128xf32> -> vector<18x18x128xf32>
    %70 = vector.extract_strided_slice %69 {offsets = [0, 0, 0], sizes = [16, 16, 128], strides = [1, 1, 1]} : vector<18x18x128xf32> to vector<16x16x128xf32>
    %71 = vector.shape_cast %70 : vector<16x16x128xf32> to vector<256x128xf32>
    %c0_39 = arith.constant 0 : index
    %c0_40 = arith.constant 0 : index
    %c0_41 = arith.constant 0 : index
    %72 = vector.load %arg4[%c0_39, %c0_40, %c0_41] : memref<9x128x128xf32, #tpu.memory_space<vmem>>, vector<1x128x128xf32>
    %73 = vector.shape_cast %72 : vector<1x128x128xf32> to vector<128x128xf32>
    %cst_42 = arith.constant dense<0.000000e+00> : vector<256x128xf32>
    %74 = tpu.matmul %71, %73, %cst_42 {dimension_numbers = #tpu.dot_dimension_numbers<[1], [0], [0], [1], [0, 0, 1, 1], [], []>} : vector<256x128xf32>, vector<128x128xf32>, vector<256x128xf32> -> vector<256x128xf32>
    %75 = vector.extract_strided_slice %69 {offsets = [0, 1, 0], sizes = [16, 16, 128], strides = [1, 1, 1]} : vector<18x18x128xf32> to vector<16x16x128xf32>
    %76 = vector.shape_cast %75 : vector<16x16x128xf32> to vector<256x128xf32>
    %c1_43 = arith.constant 1 : index
    %c0_44 = arith.constant 0 : index
    %c0_45 = arith.constant 0 : index
    %77 = vector.load %arg4[%c1_43, %c0_44, %c0_45] : memref<9x128x128xf32, #tpu.memory_space<vmem>>, vector<1x128x128xf32>
    %78 = vector.shape_cast %77 : vector<1x128x128xf32> to vector<128x128xf32>
    %cst_46 = arith.constant dense<0.000000e+00> : vector<256x128xf32>
    %79 = tpu.matmul %76, %78, %cst_46 {dimension_numbers = #tpu.dot_dimension_numbers<[1], [0], [0], [1], [0, 0, 1, 1], [], []>} : vector<256x128xf32>, vector<128x128xf32>, vector<256x128xf32> -> vector<256x128xf32>
    %80 = arith.addf %74, %79 : vector<256x128xf32>
    %81 = vector.extract_strided_slice %69 {offsets = [0, 2, 0], sizes = [16, 16, 128], strides = [1, 1, 1]} : vector<18x18x128xf32> to vector<16x16x128xf32>
    %82 = vector.shape_cast %81 : vector<16x16x128xf32> to vector<256x128xf32>
    %c2_47 = arith.constant 2 : index
    %c0_48 = arith.constant 0 : index
    %c0_49 = arith.constant 0 : index
    %83 = vector.load %arg4[%c2_47, %c0_48, %c0_49] : memref<9x128x128xf32, #tpu.memory_space<vmem>>, vector<1x128x128xf32>
    %84 = vector.shape_cast %83 : vector<1x128x128xf32> to vector<128x128xf32>
    %cst_50 = arith.constant dense<0.000000e+00> : vector<256x128xf32>
    %85 = tpu.matmul %82, %84, %cst_50 {dimension_numbers = #tpu.dot_dimension_numbers<[1], [0], [0], [1], [0, 0, 1, 1], [], []>} : vector<256x128xf32>, vector<128x128xf32>, vector<256x128xf32> -> vector<256x128xf32>
    %86 = arith.addf %80, %85 : vector<256x128xf32>
    %87 = vector.extract_strided_slice %69 {offsets = [1, 0, 0], sizes = [16, 16, 128], strides = [1, 1, 1]} : vector<18x18x128xf32> to vector<16x16x128xf32>
    %88 = vector.shape_cast %87 : vector<16x16x128xf32> to vector<256x128xf32>
    %c3_51 = arith.constant 3 : index
    %c0_52 = arith.constant 0 : index
    %c0_53 = arith.constant 0 : index
    %89 = vector.load %arg4[%c3_51, %c0_52, %c0_53] : memref<9x128x128xf32, #tpu.memory_space<vmem>>, vector<1x128x128xf32>
    %90 = vector.shape_cast %89 : vector<1x128x128xf32> to vector<128x128xf32>
    %cst_54 = arith.constant dense<0.000000e+00> : vector<256x128xf32>
    %91 = tpu.matmul %88, %90, %cst_54 {dimension_numbers = #tpu.dot_dimension_numbers<[1], [0], [0], [1], [0, 0, 1, 1], [], []>} : vector<256x128xf32>, vector<128x128xf32>, vector<256x128xf32> -> vector<256x128xf32>
    %92 = arith.addf %86, %91 : vector<256x128xf32>
    %93 = vector.extract_strided_slice %69 {offsets = [1, 1, 0], sizes = [16, 16, 128], strides = [1, 1, 1]} : vector<18x18x128xf32> to vector<16x16x128xf32>
    %94 = vector.shape_cast %93 : vector<16x16x128xf32> to vector<256x128xf32>
    %c4_55 = arith.constant 4 : index
    %c0_56 = arith.constant 0 : index
    %c0_57 = arith.constant 0 : index
    %95 = vector.load %arg4[%c4_55, %c0_56, %c0_57] : memref<9x128x128xf32, #tpu.memory_space<vmem>>, vector<1x128x128xf32>
    %96 = vector.shape_cast %95 : vector<1x128x128xf32> to vector<128x128xf32>
    %cst_58 = arith.constant dense<0.000000e+00> : vector<256x128xf32>
    %97 = tpu.matmul %94, %96, %cst_58 {dimension_numbers = #tpu.dot_dimension_numbers<[1], [0], [0], [1], [0, 0, 1, 1], [], []>} : vector<256x128xf32>, vector<128x128xf32>, vector<256x128xf32> -> vector<256x128xf32>
    %98 = arith.addf %92, %97 : vector<256x128xf32>
    %99 = vector.extract_strided_slice %69 {offsets = [1, 2, 0], sizes = [16, 16, 128], strides = [1, 1, 1]} : vector<18x18x128xf32> to vector<16x16x128xf32>
    %100 = vector.shape_cast %99 : vector<16x16x128xf32> to vector<256x128xf32>
    %c5_59 = arith.constant 5 : index
    %c0_60 = arith.constant 0 : index
    %c0_61 = arith.constant 0 : index
    %101 = vector.load %arg4[%c5_59, %c0_60, %c0_61] : memref<9x128x128xf32, #tpu.memory_space<vmem>>, vector<1x128x128xf32>
    %102 = vector.shape_cast %101 : vector<1x128x128xf32> to vector<128x128xf32>
    %cst_62 = arith.constant dense<0.000000e+00> : vector<256x128xf32>
    %103 = tpu.matmul %100, %102, %cst_62 {dimension_numbers = #tpu.dot_dimension_numbers<[1], [0], [0], [1], [0, 0, 1, 1], [], []>} : vector<256x128xf32>, vector<128x128xf32>, vector<256x128xf32> -> vector<256x128xf32>
    %104 = arith.addf %98, %103 : vector<256x128xf32>
    %105 = vector.extract_strided_slice %69 {offsets = [2, 0, 0], sizes = [16, 16, 128], strides = [1, 1, 1]} : vector<18x18x128xf32> to vector<16x16x128xf32>
    %106 = vector.shape_cast %105 : vector<16x16x128xf32> to vector<256x128xf32>
    %c6_63 = arith.constant 6 : index
    %c0_64 = arith.constant 0 : index
    %c0_65 = arith.constant 0 : index
    %107 = vector.load %arg4[%c6_63, %c0_64, %c0_65] : memref<9x128x128xf32, #tpu.memory_space<vmem>>, vector<1x128x128xf32>
    %108 = vector.shape_cast %107 : vector<1x128x128xf32> to vector<128x128xf32>
    %cst_66 = arith.constant dense<0.000000e+00> : vector<256x128xf32>
    %109 = tpu.matmul %106, %108, %cst_66 {dimension_numbers = #tpu.dot_dimension_numbers<[1], [0], [0], [1], [0, 0, 1, 1], [], []>} : vector<256x128xf32>, vector<128x128xf32>, vector<256x128xf32> -> vector<256x128xf32>
    %110 = arith.addf %104, %109 : vector<256x128xf32>
    %111 = vector.extract_strided_slice %69 {offsets = [2, 1, 0], sizes = [16, 16, 128], strides = [1, 1, 1]} : vector<18x18x128xf32> to vector<16x16x128xf32>
    %112 = vector.shape_cast %111 : vector<16x16x128xf32> to vector<256x128xf32>
    %c7_67 = arith.constant 7 : index
    %c0_68 = arith.constant 0 : index
    %c0_69 = arith.constant 0 : index
    %113 = vector.load %arg4[%c7_67, %c0_68, %c0_69] : memref<9x128x128xf32, #tpu.memory_space<vmem>>, vector<1x128x128xf32>
    %114 = vector.shape_cast %113 : vector<1x128x128xf32> to vector<128x128xf32>
    %cst_70 = arith.constant dense<0.000000e+00> : vector<256x128xf32>
    %115 = tpu.matmul %112, %114, %cst_70 {dimension_numbers = #tpu.dot_dimension_numbers<[1], [0], [0], [1], [0, 0, 1, 1], [], []>} : vector<256x128xf32>, vector<128x128xf32>, vector<256x128xf32> -> vector<256x128xf32>
    %116 = arith.addf %110, %115 : vector<256x128xf32>
    %117 = vector.extract_strided_slice %69 {offsets = [2, 2, 0], sizes = [16, 16, 128], strides = [1, 1, 1]} : vector<18x18x128xf32> to vector<16x16x128xf32>
    %118 = vector.shape_cast %117 : vector<16x16x128xf32> to vector<256x128xf32>
    %c8_71 = arith.constant 8 : index
    %c0_72 = arith.constant 0 : index
    %c0_73 = arith.constant 0 : index
    %119 = vector.load %arg4[%c8_71, %c0_72, %c0_73] : memref<9x128x128xf32, #tpu.memory_space<vmem>>, vector<1x128x128xf32>
    %120 = vector.shape_cast %119 : vector<1x128x128xf32> to vector<128x128xf32>
    %cst_74 = arith.constant dense<0.000000e+00> : vector<256x128xf32>
    %121 = tpu.matmul %118, %120, %cst_74 {dimension_numbers = #tpu.dot_dimension_numbers<[1], [0], [0], [1], [0, 0, 1, 1], [], []>} : vector<256x128xf32>, vector<128x128xf32>, vector<256x128xf32> -> vector<256x128xf32>
    %122 = arith.addf %116, %121 : vector<256x128xf32>
    %123 = vector.broadcast %65 : vector<1x128xf32> to vector<256x128xf32>
    %124 = arith.addf %122, %123 : vector<256x128xf32>
    %cst_75 = arith.constant 0.000000e+00 : f32
    %125 = vector.broadcast %cst_75 : f32 to vector<256x128xf32>
    %126 = arith.maximumf %124, %125 : vector<256x128xf32>
    %127 = vector.shape_cast %126 : vector<256x128xf32> to vector<1x256x128xf32>
    %c0_76 = arith.constant 0 : index
    %c0_77 = arith.constant 0 : index
    %c0_78 = arith.constant 0 : index
    %128 = vector.load %arg6[%c0_76, %c0_77, %c0_78] : memref<1x256x128xf32, #tpu.memory_space<vmem>>, vector<1x256x128xf32>
    tpu.vector_store %arg6[%c0_76, %c0_77, %c0_78], %127 {strides = array<i32>} : memref<1x256x128xf32, #tpu.memory_space<vmem>>, vector<1x256x128xf32>,
    return
  }
  func.func @transform_0(%arg0: i32) -> (i32, i32, i32, i32) {
    %c0_i32 = arith.constant 0 : i32
    %c0_i32_0 = arith.constant 0 : i32
    %c0_i32_1 = arith.constant 0 : i32
    %c0_i32_2 = arith.constant 0 : i32
    return %arg0, %c0_i32, %c0_i32_0, %c0_i32_1 : i32, i32, i32, i32
  }
  func.func @transform_1(%arg0: i32) -> (i32, i32, i32) {
    %c0_i32 = arith.constant 0 : i32
    %c0_i32_0 = arith.constant 0 : i32
    %c0_i32_1 = arith.constant 0 : i32
    %c0_i32_2 = arith.constant 0 : i32
    return %c0_i32, %c0_i32_0, %c0_i32_1 : i32, i32, i32
  }
  func.func @transform_2(%arg0: i32) -> (i32, i32) {
    %c0_i32 = arith.constant 0 : i32
    %c0_i32_0 = arith.constant 0 : i32
    %c0_i32_1 = arith.constant 0 : i32
    return %c0_i32, %c0_i32_0 : i32, i32
  }
  func.func @transform_3(%arg0: i32) -> (i32, i32, i32) {
    %c0_i32 = arith.constant 0 : i32
    %c0_i32_0 = arith.constant 0 : i32
    %c0_i32_1 = arith.constant 0 : i32
    %c0_i32_2 = arith.constant 0 : i32
    return %c0_i32, %c0_i32_0, %c0_i32_1 : i32, i32, i32
  }
  func.func @transform_4(%arg0: i32) -> (i32, i32) {
    %c0_i32 = arith.constant 0 : i32
    %c0_i32_0 = arith.constant 0 : i32
    %c0_i32_1 = arith.constant 0 : i32
    return %c0_i32, %c0_i32_0 : i32, i32
  }
  func.func @transform_5(%arg0: i32) -> (i32, i32, i32) {
    %c0_i32 = arith.constant 0 : i32
    %c0_i32_0 = arith.constant 0 : i32
    %c0_i32_1 = arith.constant 0 : i32
    return %arg0, %c0_i32, %c0_i32_0 : i32, i32, i32
  }
}

</mosaic_0001>

<bundles_post_ra>
// kernel: tile.14
= control target key start
LH: loop header
LB: loop body
LE: loop exit
PB: predicated region body
PF: predicated region fallthrough
CT: control target
= control target key end

     0   :  { %s131_s10 = smov 120   ;;  %s132_s11 = smov 104   ;;  %vm3_vm0 = vcmask 64512   ;;  %vm9_vm1 = vcmask 1048512   ;;  %vm15_vm2 = vcmask 982912   ;;  %vm21_vm3 = vcmask 917312   ;;  %s207_s0 = inlined_call_operand.vmem [shape: f32[16,8], index: 0, kind: input, shape index: {}]   ;;  %s208_s1 = inlined_call_operand.vmem [shape: f32[1,128], index: 1, kind: output, shape index: {}]  }
   0x1   :  { %v101_v0 = vld [vmem:[%s207_s0 + $0xf] sm:$0x1]   ;;  %v103_v1 = vld [vmem:[%s207_s0 + $0xd] sm:$0x1]   ;;  %v105_v2 = vld [vmem:[%s207_s0 + $0xb] sm:$0x1]  }
   0x2   :  { %7 = vrot.lane.b32.xlu0 %v101_v0, %s131_s10  ;;  %19 = vrot.lane.b32.xlu1 %v103_v1, %s132_s11  ;;  %s133_s14 = smov 88   ;;  %v102_v3 = vld [vmem:[%s207_s0 + $0xe] sm:$0x1]   ;;  %v104_v4 = vld [vmem:[%s207_s0 + $0xc] sm:$0x1]   ;;  %s134_s19 = smov 112  }
   0x3   :  { %31 = vrot.lane.b32.xlu2 %v105_v2, %s133_s14  ;;  %s135_s20 = smov 96   ;;  %v106_v5 = vld [vmem:[%s207_s0 + $0xa] sm:$0x1]   ;;  %s136_s23 = smov 80   ;;  %v107_v6 = vld [vmem:[%s207_s0 + $0x9] sm:$0x1]  }
   0x4   :  { %v108_v7 = vld [vmem:[%s207_s0 + $0x8] sm:$0x1]   ;;  %s137_s28 = smov 72   ;;  %s138_s29 = smov 64   ;;  %v109_v8 = vld [vmem:[%s207_s0 + $0x7] sm:$0x1]  }
   0x5   :  { %s139_s3 = smov 56   ;;  %v110_v9 = vld [vmem:[%s207_s0 + $0x6] sm:$0x1]   ;;  %v111_v10 = vld [vmem:[%s207_s0 + $0x5] sm:$0x1]   ;;  %s140_s8 = smov 48  }
   0x6   :  { %s141_s9 = smov 40   ;;  %v112_v11 = vld [vmem:[%s207_s0 + $0x4] sm:$0x1]   ;;  %s142_s12 = smov 32   ;;  %v113_v12 = vld [vmem:[%s207_s0 + $0x3] sm:$0x1]  }
   0x7   :  { %v114_v13 = vld [vmem:[%s207_s0 + $0x2] sm:$0x1]   ;;  %s143_s17 = smov 24   ;;  %s144_s18 = smov 16   ;;  %v115_v14 = vld [vmem:[%s207_s0 + $0x1] sm:$0x1]  }
   0x8   :  { %s145_s21 = smov 8   ;;  %v2_v15 = vld [vmem:[%s207_s0] sm:$0x1]   ;;  %vm27_vm4 = vcmask 851712   ;;  %vm33_vm5 = vcmask 786112   ;;  %vm39_vm6 = vcmask 720512  }
   0x9   :  { %4 = vst.msk [vmem:[#allocation0] sm:$0x1] %vm3_vm0, %v2_v15   ;;  %vm45_vm7 = vcmask 654912   ;;  %vm51_vm8 = vcmask 589312   ;;  %vm57_vm9 = vcmask 523712   ;;  %vm63_vm10 = vcmask 458112  }
   0xa   :  { %13 = vrot.lane.b32.xlu0 %v102_v3, %s134_s19  ;;  %25 = vrot.lane.b32.xlu1 %v104_v4, %s135_s20  ;;  %vm69_vm11 = vcmask 392512   ;;  %vm75_vm12 = vcmask 326912   ;;  %vm81_vm13 = vcmask 261312   ;;  %vm87_vm14 = vcmask 195712  }
   0xb   :  { %37 = vrot.lane.b32.xlu2 %v106_v5, %s136_s23  ;;  %vm93_vm15 = vcmask 130112  }
  0x12   :  { %43 = vrot.lane.b32.xlu0 %v107_v6, %s137_s28  ;;  %49 = vrot.lane.b32.xlu1 %v108_v7, %s138_s29 }
  0x13   :  { %55 = vrot.lane.b32.xlu2 %v109_v8, %s139_s3 }
  0x1a   :  { %61 = vrot.lane.b32.xlu0 %v110_v9, %s140_s8  ;;  %67 = vrot.lane.b32.xlu1 %v111_v10, %s141_s9 }
  0x1b   :  { %73 = vrot.lane.b32.xlu2 %v112_v11, %s142_s12 }
  0x22   :  { %79 = vrot.lane.b32.xlu0 %v113_v12, %s143_s17  ;;  %85 = vrot.lane.b32.xlu1 %v114_v13, %s144_s18 }
  0x23   :  { %91 = vrot.lane.b32.xlu2 %v115_v14, %s145_s21 }
  0x5d   :  { %v32_v16 = vpop.permute.xlu2 %31  }
  0x65   :  { %v38_v17 = vpop.permute.xlu2 %37  }
  0x6d   :  { %v56_v18 = vpop.permute.xlu2 %55  }
  0x74   :  { %v8_v19 = vpop.permute.xlu0 %7   ;;  %v20_v20 = vpop.permute.xlu1 %19  }
  0x75   :  { %10 = vst.msk [vmem:[#allocation0] sm:$0x1] %vm9_vm1, %v8_v19   ;;  %v74_v21 = vpop.permute.xlu2 %73  }
  0x7c   :  { %v14_v22 = vpop.permute.xlu0 %13   ;;  %v26_v23 = vpop.permute.xlu1 %25  }
  0x7d   :  { %16 = vst.msk [vmem:[#allocation0] sm:$0x1] %vm15_vm2, %v14_v22   ;;  %v92_v24 = vpop.permute.xlu2 %91  }
  0x7e   :  { %22 = vst.msk [vmem:[#allocation0] sm:$0x1] %vm21_vm3, %v20_v20  }
  0x7f   :  { %28 = vst.msk [vmem:[#allocation0] sm:$0x1] %vm27_vm4, %v26_v23  }
  0x80   :  { %34 = vst.msk [vmem:[#allocation0] sm:$0x1] %vm33_vm5, %v32_v16  }
  0x81   :  { %40 = vst.msk [vmem:[#allocation0] sm:$0x1] %vm39_vm6, %v38_v17  }
  0x84   :  { %v44_v25 = vpop.permute.xlu0 %43   ;;  %v50_v26 = vpop.permute.xlu1 %49  }
  0x85   :  { %46 = vst.msk [vmem:[#allocation0] sm:$0x1] %vm45_vm7, %v44_v25  }
  0x86   :  { %52 = vst.msk [vmem:[#allocation0] sm:$0x1] %vm51_vm8, %v50_v26  }
  0x87   :  { %58 = vst.msk [vmem:[#allocation0] sm:$0x1] %vm57_vm9, %v56_v18  }
  0x8c   :  { %v62_v27 = vpop.permute.xlu0 %61   ;;  %v68_v28 = vpop.permute.xlu1 %67  }
  0x8d   :  { %64 = vst.msk [vmem:[#allocation0] sm:$0x1] %vm63_vm10, %v62_v27  }
  0x8e   :  { %70 = vst.msk [vmem:[#allocation0] sm:$0x1] %vm69_vm11, %v68_v28  }
  0x8f   :  { %76 = vst.msk [vmem:[#allocation0] sm:$0x1] %vm75_vm12, %v74_v21  }
  0x94   :  { %v80_v29 = vpop.permute.xlu0 %79   ;;  %v86_v30 = vpop.permute.xlu1 %85  }
  0x95   :  { %82 = vst.msk [vmem:[#allocation0] sm:$0x1] %vm81_vm13, %v80_v29  }
  0x96   :  { %88 = vst.msk [vmem:[#allocation0] sm:$0x1] %vm87_vm14, %v86_v30  }
  0x97   :  { %94 = vst.msk [vmem:[#allocation0] sm:$0x1] %vm93_vm15, %v92_v24  }
  0x9e   :  { %v97_v31 = vld [vmem:[#allocation0] sm:$0x1] }
  0x9f   :  { %100 = vst [vmem:[%s208_s1] sm:$0x1] %v97_v31 }

// kernel: tile.13
= control target key start
LH: loop header
LB: loop body
LE: loop exit
PB: predicated region body
PF: predicated region fallthrough
CT: control target
= control target key end

     0   :  { %s28_s0 = inlined_call_operand.vmem [shape: f32[8], index: 0, kind: input, shape index: {}]   ;;  %s29_s1 = inlined_call_operand.vmem [shape: f32[16,8], index: 1, kind: output, shape index: {}]  }
   0x1   :  { %v4_v0 = vld [vmem:[%s28_s0] ss:$0 sm:$0xff] }
   0x2   :  { %5 = vst [vmem:[%s29_s1] sm:$0xff] %v4_v0 }
   0x3   :  { %8 = vst [vmem:[%s29_s1 + $0x8] sm:$0xff] %v4_v0 }

// kernel: conv_block_forward.1
= control target key start
LH: loop header
LB: loop body
LE: loop exit
PB: predicated region body
PF: predicated region fallthrough
CT: control target
= control target key end

     0   :  { %s4833_s18 = smov 0   ;;  %s8213_s0 = inlined_call_operand.vmem [shape: f32[2,16,16,64], index: 0, kind: input, shape index: {}]   ;;  %s8214_s1 = inlined_call_operand.vmem [shape: f32[9,64,128], index: 1, kind: input, shape index: {}]   ;;  %s8215_s2 = inlined_call_operand.vmem [shape: f32[1,128], index: 2, kind: input, shape index: {}]   ;;  %s8216_s3 = inlined_call_operand.vmem [shape: f32[9,128,128], index: 3, kind: input, shape index: {}]   ;;  %s8217_s4 = inlined_call_operand.vmem [shape: f32[1,128], index: 4, kind: input, shape index: {}]   ;;  %s8218_s5 = inlined_call_operand.vmem [shape: f32[2,256,128], index: 5, kind: output, shape index: {}]  }
   0x1 LB: > { %s4177_s19 = sadd.s32 4294967295, %s4800_s18   ;;  %p4181_p0 = scmp.ge.s32.totalorder %s4800_s18, 1  ;;  %s4800_s18 = sphi %s4833_s18, %s15_s18  }
   0x2   : > { %p187_p1 = scmp.lt.s32.totalorder %s4800_s18, 3 }
   0x4   : > { %p188_p2 = pnand %p4181_p0, %p187_p1 }
   0x6   : > { %191 = sbr.rel (%p188_p2) target bundleno = 1445 (0x5a5), region = 40 }
   0xb   : > { %v4193_v0 = vld [vmem:[%s8214_s1 + $0x78] sm:$0xff]  ;;  %v4192_v2 = vld [vmem:[%s8214_s1 + $0x70] sm:$0xff]  ;;  %p215_p3 = scmp.lt.s32.totalorder %s4177_s19, 1  ;;  %v4191_v4 = vld [vmem:[%s8214_s1 + $0x68] sm:$0xff]  ;;  %v4802_v5 = vmov 0.0   ;;  %vm291_vm0 = vcmask 1040384  }
   0xc   : > { %v416_v1 = vld [vmem:[%s8214_s1 + $0x38] sm:$0xff]  ;;  %612 = vmatpush.msra.mxu0 %v4193_v0  ;;  %4766 = vmatpush.msra.mxu2 %v4193_v0  ;;  %v415_v3 = vld [vmem:[%s8214_s1 + $0x30] sm:$0xff]  ;;  %v4856_v6 = vrot.slane %v4802_v5, 7  ;;  %v414_v7 = vld [vmem:[%s8214_s1 + $0x28] sm:$0xff]  ;;  %vm449_vm1 = vcmask 1046528   ;;  %vm539_vm2 = vcmask 523264  }
   0xd   : > { %4774 = vmatpush.msra.mxu3 %v416_v1  ;;  %789 = vmatpush.msra.mxu1 %v416_v1  ;;  %s8928_s19 = smov (!%p215_p3, %s4177_s19), 1  ;;  %v4190_v8 = vld [vmem:[%s8214_s1 + $0x60] sm:$0xff]  ;;  %v4189_v10 = vld [vmem:[%s8214_s1 + $0x58] sm:$0xff]  ;;  %v4188_v15 = vld [vmem:[%s8214_s1 + $0x50] sm:$0xff]  ;;  %vm894_vm3 = vcmask 1045504  }
   0xe   : > { %8450 = vst [vmem:[#allocation2_spill] sm:$0xff] %v4856_v6  ;;  %613 = vmatpush.msra.mxu0 %v4192_v2  ;;  %4767 = vmatpush.msra.mxu2 %v4192_v2  ;;  %v413_v9 = vld [vmem:[%s8214_s1 + $0x20] sm:$0xff]  ;;  %s4764_s11 = sshll.u32 %s8928_s19, 8  ;;  %v4875_v11 = vsel %vm291_vm0, 0.0, %v4856_v6  ;;  %v412_v12 = vld [vmem:[%s8214_s1 + $0x18] sm:$0xff]  ;;  %v411_v18 = vld [vmem:[%s8214_s1 + $0x10] sm:$0xff] }
   0xf   : > { %4775 = vmatpush.msra.mxu3 %v415_v3  ;;  %790 = vmatpush.msra.mxu1 %v415_v3  ;;  %8451 = vst [vmem:[#allocation3_spill] sm:$0xff] %v4875_v11  ;;  %s4882_s16 = scalar_lea.vmem %s8213_s0, %s4764_s11  ;;  %v450_v19 = vrot.slane %v4875_v11, 1  ;;  %v451_v20 = vrot.slane %v4856_v6, 1  ;;  %v4187_v21 = vld [vmem:[%s8214_s1 + $0x48] sm:$0xff]  ;;  %v4186_v27 = vld [vmem:[%s8214_s1 + $0x40] sm:$0xff]  ;;  %v4265_v31 = vld [vmem:[%s8214_s1 + $0xb8] sm:$0xff]  ;;  %s8069_s29 = scalar_lea.vmem %s8218_s5, %s4764_s11 }
  0x10   : > { %614 = vmatpush.msra.mxu0 %v4191_v4  ;;  %4768 = vmatpush.msra.mxu2 %v4191_v4  ;;  %v239_v13 = vld [vmem:[%s4882_s16 + $0x70] sm:$0xff]  ;;  %v240_v14 = vld [vmem:[%s4882_s16 + $0x78] sm:$0xff]  ;;  %v410_v24 = vld [vmem:[%s8214_s1 + $0x8] sm:$0xff]  ;;  %v4928_v32 = vsel %vm291_vm0, %v4856_v6, 0.0 }
  0x11   : > { %4776 = vmatpush.msra.mxu3 %v414_v7  ;;  %791 = vmatpush.msra.mxu1 %v414_v7  ;;  %v315_v16 = vrot.slane %v239_v13, 7  ;;  %v316_v17 = vrot.slane %v240_v14, 7  ;;  %v409_v28 = vld [vmem:[%s8214_s1] sm:$0xff]  ;;  %v4918_v29 = vsel %vm449_vm1, %v450_v19, %v451_v20  ;;  %v4305_v33 = vld [vmem:[%s8214_s1 + $0xf8] sm:$0xff]  ;;  %v226_v36 = vld [vmem:[%s4882_s16 + $0x8] sm:$0xff]  ;;  %v453_v40 = vrot.slane %v4928_v32, 1 }
  0x12   : > { %615 = vmatpush.msra.mxu0 %v4190_v8  ;;  %4769 = vmatpush.msra.mxu2 %v4190_v8  ;;  %8454 = vst [vmem:[#allocation6_spill] sm:$0xff] %v4918_v29  ;;  %v225_v35 = vld [vmem:[%s4882_s16] sm:$0xff]  ;;  %v4345_v37 = vld [vmem:[%s8214_s1 + $0x138] sm:$0xff]  ;;  %v242_v39 = vld [vmem:[%s4882_s16 + $0x88] sm:$0xff]  ;;  %v295_v44 = vrot.slane %v226_v36, 7 }
  0x13   : > { %4777 = vmatpush.msra.mxu3 %v413_v9  ;;  %792 = vmatpush.msra.mxu1 %v413_v9  ;;  %v4901_v22 = vsel %vm291_vm0, %v315_v16, %v316_v17  ;;  %v4904_v23 = vsel %vm291_vm0, 0.0, %v315_v16  ;;  %v4934_v34 = vsel %vm291_vm0, %v316_v17, 0.0  ;;  %v241_v38 = vld [vmem:[%s4882_s16 + $0x80] sm:$0xff]  ;;  %v4264_v41 = vld [vmem:[%s8214_s1 + $0xb0] sm:$0xff]  ;;  %v294_v43 = vrot.slane %v225_v35, 7  ;;  %v4263_v49 = vld [vmem:[%s8214_s1 + $0xa8] sm:$0xff] }
  0x14   : > { %616 = vmatpush.msra.mxu0 %v4189_v10  ;;  %4770 = vmatpush.msra.mxu2 %v4189_v10  ;;  %8452 = vst [vmem:[#allocation4_spill] sm:$0xff] %v4901_v22  ;;  %v490_v25 = vrot.slane %v4904_v23, 1  ;;  %v491_v26 = vrot.slane %v4901_v22, 1  ;;  %v493_v42 = vrot.slane %v4934_v34, 1  ;;  %v4304_v45 = vld [vmem:[%s8214_s1 + $0xf0] sm:$0xff]  ;;  %v318_v47 = vrot.slane %v241_v38, 7  ;;  %vm6803_vm4 = vmneg %vm291_vm0 }
  0x15   : > { %4778 = vmatpush.msra.mxu3 %v412_v12  ;;  %8453 = vst [vmem:[#allocation5_spill] sm:$0xff] %v4904_v23  ;;  %793 = vmatpush.msra.mxu1 %v412_v12  ;;  %v4344_v46 = vld [vmem:[%s8214_s1 + $0x130] sm:$0xff]  ;;  %v319_v48 = vrot.slane %v242_v39, 7  ;;  %v4303_v50 = vld [vmem:[%s8214_s1 + $0xe8] sm:$0xff]  ;;  %v4969_v51 = vsel %vm449_vm1, %v451_v20, %v453_v40  ;;  %v4975_v53 = vsel %vm291_vm0, %v294_v43, %v295_v44  ;;  %v4978_v54 = vsel %vm291_vm0, 0.0, %v294_v43  ;;  %v228_v3 = vld [vmem:[%s4882_s16 + $0x18] sm:$0xff] }
  0x16   : > { %617 = vmatpush.msra.mxu0 %v4188_v15  ;;  %4771 = vmatpush.msra.mxu2 %v4188_v15  ;;  %v4921_v30 = vsel %vm449_vm1, %v490_v25, %v491_v26  ;;  %8456 = vst [vmem:[#allocation8_spill] sm:$0xff] %v4969_v51  ;;  %v4972_v52 = vsel %vm449_vm1, %v491_v26, %v493_v42  ;;  %v4984_v56 = vsel %vm291_vm0, 0.0, %v318_v47  ;;  %v455_v57 = vrot.slane %v4978_v54, 1  ;;  %v4343_v59 = vld [vmem:[%s8214_s1 + $0x128] sm:$0xff]  ;;  %v227_v2 = vld [vmem:[%s4882_s16 + $0x10] sm:$0xff]  ;;  %v244_v5 = vld [vmem:[%s4882_s16 + $0x98] sm:$0xff] }
  0x17   : > { %4779 = vmatpush.msra.mxu3 %v411_v18  ;;  %794 = vmatpush.msra.mxu1 %v411_v18  ;;  %8455 = vst [vmem:[#allocation7_spill] sm:$0xff] %v4921_v30  ;;  %v4981_v55 = vsel %vm291_vm0, %v318_v47, %v319_v48  ;;  %v456_v58 = vrot.slane %v4975_v53, 1  ;;  %v495_v60 = vrot.slane %v4984_v56, 1  ;;  %v5008_v0 = vsel %vm291_vm0, %v295_v44, 0.0  ;;  %v243_v4 = vld [vmem:[%s4882_s16 + $0x90] sm:$0xff]  ;;  %v4262_v8 = vld [vmem:[%s8214_s1 + $0xa0] sm:$0xff] }
  0x18   : > { %618 = vmatpush.msra.mxu0 %v4187_v21  ;;  %4772 = vmatpush.msra.mxu2 %v4187_v21  ;;  %8457 = vst [vmem:[#allocation9_spill] sm:$0xff] %v4972_v52  ;;  %v496_v61 = vrot.slane %v4981_v55, 1  ;;  %v5011_v1 = vsel %vm291_vm0, %v319_v48, 0.0  ;;  %v458_v7 = vrot.slane %v5008_v0, 1  ;;  %v4302_v9 = vld [vmem:[%s8214_s1 + $0xe0] sm:$0xff]  ;;  %v297_v12 = vrot.slane %v227_v2, 7 }
  0x19   : > { %4780 = vmatpush.msra.mxu3 %v410_v24  ;;  %795 = vmatpush.msra.mxu1 %v410_v24  ;;  %8458 = vst [vmem:[#allocation10_spill] sm:$0xff] %v4984_v56  ;;  %v5002_v62 = vsel %vm449_vm1, %v455_v57, %v456_v58  ;;  %v498_v10 = vrot.slane %v5011_v1, 1  ;;  %v298_v13 = vrot.slane %v228_v3, 7  ;;  %v321_v14 = vrot.slane %v243_v4, 7  ;;  %v4342_v26 = vld [vmem:[%s8214_s1 + $0x120] sm:$0xff]  ;;  %v230_v38 = vld [vmem:[%s4882_s16 + $0x28] sm:$0xff] }
  0x1a   : > { %619 = vmatpush.msra.mxu0 %v4186_v27  ;;  %4773 = vmatpush.msra.mxu2 %v4186_v27  ;;  %v5005_v63 = vsel %vm449_vm1, %v495_v60, %v496_v61  ;;  %v322_v15 = vrot.slane %v244_v5, 7  ;;  %v5034_v16 = vsel %vm449_vm1, %v456_v58, %v458_v7  ;;  %v5043_v19 = vsel %vm291_vm0, 0.0, %v297_v12  ;;  %v245_v39 = vld [vmem:[%s4882_s16 + $0xa0] sm:$0xff]  ;;  %v246_v40 = vld [vmem:[%s4882_s16 + $0xa8] sm:$0xff]  ;;  %v4261_v42 = vld [vmem:[%s8214_s1 + $0x98] sm:$0xff] }
  0x1b   : > { %4781 = vmatpush.msra.mxu3 %v409_v28  ;;  %4194 = vmatmul.msk.f32.vlgmr.msra.gmra.mxu0 %vm539_vm2, %v4918_v29  ;;  %8459 = vst [vmem:[#allocation11_spill] sm:$0xff] %v5005_v63  ;;  %v5037_v17 = vsel %vm449_vm1, %v496_v61, %v498_v10  ;;  %v5040_v18 = vsel %vm291_vm0, %v297_v12, %v298_v13  ;;  %v5049_v21 = vsel %vm291_vm0, 0.0, %v321_v14  ;;  %v460_v24 = vrot.slane %v5043_v19, 1  ;;  %v4301_v43 = vld [vmem:[%s8214_s1 + $0xd8] sm:$0xff]  ;;  %v231_v12 = vld [vmem:[%s4882_s16 + $0x30] sm:$0xff] }
  0x1c   : > { %4210 = vmatmul.msk.f32.vlgmr.msra.gmra.mxu2 %vm539_vm2, %v4921_v30  ;;  %4242 = vmatmul.msk.f32.vlgmr.msra.gmra.mxu3 %vm539_vm2, %v4904_v23  ;;  %8460 = vst [vmem:[#allocation12_spill] sm:$0xff] %v5040_v18  ;;  %v5046_v20 = vsel %vm291_vm0, %v321_v14, %v322_v15  ;;  %v461_v25 = vrot.slane %v5040_v18, 1  ;;  %v500_v27 = vrot.slane %v5049_v21, 1  ;;  %v5073_v35 = vsel %vm291_vm0, %v298_v13, 0.0  ;;  %v4341_v3 = vld [vmem:[%s8214_s1 + $0x118] sm:$0xff]  ;;  %v247_v14 = vld [vmem:[%s4882_s16 + $0xb0] sm:$0xff] }
  0x1d   : > { %1056 = vmatpush.msrb.mxu2 %v4265_v31  ;;  %1215 = vmatpush.msrb.mxu3 %v4305_v33  ;;  %8461 = vst [vmem:[#allocation13_spill] sm:$0xff] %v5049_v21  ;;  %v5076_v36 = vsel %vm291_vm0, %v322_v15, 0.0  ;;  %v324_v47 = vrot.slane %v245_v39, 7  ;;  %v325_v48 = vrot.slane %v246_v40, 7  ;;  %v232_v13 = vld [vmem:[%s4882_s16 + $0x38] sm:$0xff] }
  0x1e   : > { %796 = vmatpush.msra.mxu1 %v409_v28  ;;  %1379 = vmatpush.msrb.mxu0 %v4345_v37  ;;  %v501_v28 = vrot.slane %v5046_v20, 1  ;;  %v5067_v31 = vsel %vm449_vm1, %v460_v24, %v461_v25  ;;  %8463 = vst [vmem:[#allocation15_spill] sm:$0xff] %v5076_v36  ;;  %v229_v37 = vld [vmem:[%s4882_s16 + $0x20] sm:$0xff]  ;;  %v503_v44 = vrot.slane %v5076_v36, 1  ;;  %v248_v15 = vld [vmem:[%s4882_s16 + $0xb8] sm:$0xff] }
  0x1f   : > { %4226 = vmatmul.msk.f32.vlgmr.msra.gmra.mxu1 %vm539_vm2, %v4875_v11  ;;  %1057 = vmatpush.msrb.mxu2 %v4264_v41  ;;  %v463_v41 = vrot.slane %v5073_v35, 1  ;;  %v5114_v60 = vsel %vm291_vm0, 0.0, %v324_v47  ;;  %v5141_v10 = vsel %vm291_vm0, %v325_v48, 0.0  ;;  %v328_v39 = vrot.slane %v248_v15, 7  ;;  %v249_v15 = vld [vmem:[%s4882_s16 + $0xc0] sm:$0xff] }
  0x20   : > { %1216 = vmatpush.msrb.mxu3 %v4304_v45  ;;  %1380 = vmatpush.msrb.mxu0 %v4344_v46  ;;  %v5070_v33 = vsel %vm449_vm1, %v500_v27, %v501_v28  ;;  %v300_v45 = vrot.slane %v229_v37, 7  ;;  %v301_v46 = vrot.slane %v230_v38, 7  ;;  %8469 = vst [vmem:[#allocation21_spill] sm:$0xff] %v5114_v60  ;;  %v505_v4 = vrot.slane %v5114_v60, 1 }
  0x21   : > { %1058 = vmatpush.msrb.mxu2 %v4263_v49  ;;  %8462 = vst [vmem:[#allocation14_spill] sm:$0xff] %v5070_v33  ;;  %v5099_v49 = vsel %vm449_vm1, %v461_v25, %v463_v41  ;;  %v4260_v25 = vld [vmem:[%s8214_s1 + $0x90] sm:$0xff]  ;;  %v508_v27 = vrot.slane %v5141_v10, 1  ;;  %v304_v37 = vrot.slane %v232_v13, 7  ;;  %v327_v38 = vrot.slane %v247_v14, 7  ;;  %v233_v13 = vld [vmem:[%s4882_s16 + $0x40] sm:$0xff] }
  0x22   : > { %1217 = vmatpush.msrb.mxu3 %v4303_v50  ;;  %1381 = vmatpush.msrb.mxu0 %v4343_v59  ;;  %8464 = vst [vmem:[#allocation16_spill] sm:$0xff] %v5099_v49  ;;  %v5102_v50 = vsel %vm449_vm1, %v501_v28, %v503_v44  ;;  %v5105_v57 = vsel %vm291_vm0, %v300_v45, %v301_v46  ;;  %v5108_v58 = vsel %vm291_vm0, 0.0, %v300_v45  ;;  %v303_v28 = vrot.slane %v231_v12, 7  ;;  %v234_v14 = vld [vmem:[%s4882_s16 + $0x48] sm:$0xff] }
  0x23   : > { %4195 = vmatmul.msk.f32.gmra.mxu0 %vm539_vm2, %v4969_v51  ;;  %1059 = vmatpush.msrb.mxu2 %v4262_v8  ;;  %8465 = vst [vmem:[#allocation17_spill] sm:$0xff] %v5102_v50  ;;  %v5111_v59 = vsel %vm291_vm0, %v324_v47, %v325_v48  ;;  %v465_v61 = vrot.slane %v5108_v58, 1  ;;  %v466_v2 = vrot.slane %v5105_v57, 1  ;;  %v5176_v44 = vsel %vm291_vm0, %v327_v38, %v328_v39  ;;  %v4340_v48 = vld [vmem:[%s8214_s1 + $0x110] sm:$0xff] }
  0x24   : > { %4211 = vmatmul.msk.f32.gmra.mxu2 %vm539_vm2, %v4972_v52  ;;  %4243 = vmatmul.msk.f32.gmra.mxu3 %vm539_vm2, %v4901_v22  ;;  %8466 = vst [vmem:[#allocation18_spill] sm:$0xff] %v5105_v57  ;;  %v506_v5 = vrot.slane %v5111_v59, 1  ;;  %v5179_v45 = vsel %vm291_vm0, 0.0, %v327_v38  ;;  %v5206_v12 = vsel %vm291_vm0, %v328_v39, 0.0  ;;  %v307_v38 = vrot.slane %v234_v14, 7 }
  0x25   : > { %1218 = vmatpush.msrb.mxu3 %v4302_v9  ;;  %1382 = vmatpush.msrb.mxu0 %v4342_v26  ;;  %8467 = vst [vmem:[#allocation19_spill] sm:$0xff] %v5108_v58  ;;  %v5132_v7 = vsel %vm449_vm1, %v465_v61, %v466_v2  ;;  %v5138_v9 = vsel %vm291_vm0, %v301_v46, 0.0  ;;  %v4300_v26 = vld [vmem:[%s8214_s1 + $0xd0] sm:$0xff]  ;;  %v510_v61 = vrot.slane %v5179_v45, 1  ;;  %v330_v39 = vrot.slane %v249_v15, 7  ;;  %v4339_v15 = vld [vmem:[%s8214_s1 + $0x108] sm:$0xff] }
  0x26   : > { %1060 = vmatpush.msrb.mxu2 %v4261_v42  ;;  %8468 = vst [vmem:[#allocation20_spill] sm:$0xff] %v5111_v59  ;;  %v5135_v8 = vsel %vm449_vm1, %v505_v4, %v506_v5  ;;  %v468_v24 = vrot.slane %v5138_v9, 1  ;;  %v5167_v41 = vsel %vm449_vm1, %v506_v5, %v508_v27  ;;  %v5170_v42 = vsel %vm291_vm0, %v303_v28, %v304_v37  ;;  %v4299_v27 = vld [vmem:[%s8214_s1 + $0xc8] sm:$0xff] }
  0x27   : > { %4227 = vmatmul.msk.f32.gmra.mxu1 %vm539_vm2, %v4856_v6  ;;  %1219 = vmatpush.msrb.mxu3 %v4301_v43  ;;  %8470 = vst [vmem:[#allocation22_spill] sm:$0xff] %v5132_v7  ;;  %v5173_v43 = vsel %vm291_vm0, 0.0, %v303_v28  ;;  %v471_v47 = vrot.slane %v5170_v42, 1  ;;  %v5203_v5 = vsel %vm291_vm0, %v304_v37, 0.0  ;;  %v513_v28 = vrot.slane %v5206_v12, 1 }
  0x28   : > { %1383 = vmatpush.msrb.mxu0 %v4341_v3  ;;  %8471 = vst [vmem:[#allocation23_spill] sm:$0xff] %v5135_v8  ;;  %1061 = vmatpush.msrb.mxu2 %v4260_v25  ;;  %v5164_v40 = vsel %vm449_vm1, %v466_v2, %v468_v24  ;;  %v470_v46 = vrot.slane %v5173_v43, 1  ;;  %v511_v2 = vrot.slane %v5176_v44, 1  ;;  %v250_v24 = vld [vmem:[%s4882_s16 + $0xc8] sm:$0xff]  ;;  %v473_v25 = vrot.slane %v5203_v5, 1 }
  0x29   : > { %8472 = vst [vmem:[#allocation24_spill] sm:$0xff] %v5141_v10  ;;  %1220 = vmatpush.msrb.mxu3 %v4300_v26  ;;  %v4259_v26 = vld [vmem:[%s8214_s1 + $0x88] sm:$0xff]  ;;  %v306_v37 = vrot.slane %v233_v13, 7  ;;  %v5244_v14 = vsel %vm291_vm0, 0.0, %v330_v39 }
  0x2a   : > { %8473 = vst [vmem:[#allocation25_spill] sm:$0xff] %v5164_v40  ;;  %1384 = vmatpush.msrb.mxu0 %v4340_v48  ;;  %v5197_v3 = vsel %vm449_vm1, %v470_v46, %v471_v47  ;;  %v5200_v4 = vsel %vm449_vm1, %v510_v61, %v511_v2  ;;  %1062 = vmatpush.msrb.mxu2 %v4259_v26  ;;  %v331_v46 = vrot.slane %v250_v24, 7  ;;  %v515_v24 = vrot.slane %v5244_v14, 1 }
  0x2b   : > { %4196 = vmatmul.msk.f32.gmra.mxu0 %vm539_vm2, %v5002_v62  ;;  %8474 = vst [vmem:[#allocation26_spill] sm:$0xff] %v5167_v41  ;;  %1221 = vmatpush.msrb.mxu3 %v4299_v27  ;;  %v5229_v48 = vsel %vm449_vm1, %v471_v47, %v473_v25  ;;  %v5232_v61 = vsel %vm449_vm1, %v511_v2, %v513_v28  ;;  %v5238_v29 = vsel %vm291_vm0, 0.0, %v306_v37  ;;  %v5268_v28 = vsel %vm291_vm0, %v307_v38, 0.0 }
  0x2c   : > { %4212 = vmatmul.msk.f32.gmra.mxu2 %vm539_vm2, %v5005_v63  ;;  %4244 = vmatmul.msk.f32.gmra.mxu3 %vm539_vm2, %v4984_v56  ;;  %8475 = vst [vmem:[#allocation27_spill] sm:$0xff] %v5170_v42  ;;  %v5235_v51 = vsel %vm291_vm0, %v306_v37, %v307_v38  ;;  %v5241_v13 = vsel %vm291_vm0, %v330_v39, %v331_v46  ;;  %v475_v47 = vrot.slane %v5238_v29, 1  ;;  %v5271_v37 = vsel %vm291_vm0, %v331_v46, 0.0  ;;  %v235_v39 = vld [vmem:[%s4882_s16 + $0x50] sm:$0xff]  ;;  %v4258_v38 = vld [vmem:[%s8214_s1 + $0x80] sm:$0xff] }
  0x2d   : > { %8476 = vst [vmem:[#allocation28_spill] sm:$0xff] %v5173_v43  ;;  %v476_v2 = vrot.slane %v5235_v51, 1  ;;  %v516_v25 = vrot.slane %v5241_v13, 1  ;;  %1385 = vmatpush.msrb.mxu0 %v4339_v15  ;;  %v251_v15 = vld [vmem:[%s4882_s16 + $0xd0] sm:$0xff]  ;;  %v4298_v46 = vld [vmem:[%s8214_s1 + $0xc0] sm:$0xff]  ;;  %1063 = vmatpush.msrb.mxu2 %v4258_v38 }
  0x2e   : > { %8477 = vst [vmem:[#allocation29_spill] sm:$0xff] %v5176_v44  ;;  %1222 = vmatpush.msrb.mxu3 %v4298_v46  ;;  %v4384_v38 = vld [vmem:[%s8214_s1 + $0x170] sm:$0xff] }
  0x2f   : > { %4228 = vmatmul.msk.f32.gmra.mxu1 %vm539_vm2, %v4978_v54  ;;  %8478 = vst [vmem:[#allocation30_spill] sm:$0xff] %v5179_v45  ;;  %v5262_v26 = vsel %vm449_vm1, %v475_v47, %v476_v2  ;;  %v5265_v27 = vsel %vm449_vm1, %v515_v24, %v516_v25  ;;  %v478_v47 = vrot.slane %v5268_v28, 1  ;;  %v518_v24 = vrot.slane %v5271_v37, 1 }
  0x30   : > { %8479 = vst [vmem:[#allocation31_spill] sm:$0xff] %v5197_v3 }
  0x31   : > { %8480 = vst [vmem:[#allocation32_spill] sm:$0xff] %v5200_v4 }
  0x32   : > { %8481 = vst [vmem:[#allocation33_spill] sm:$0xff] %v5206_v12  ;;  %v252_v12 = vld [vmem:[%s4882_s16 + $0xd8] sm:$0xff] }
  0x33   : > { %4197 = vmatmul.msk.f32.gmra.mxu0 %vm539_vm2, %v5034_v16  ;;  %8482 = vst [vmem:[#allocation34_spill] sm:$0xff] %v5229_v48 }
  0x34   : > { %4213 = vmatmul.msk.f32.gmra.mxu2 %vm539_vm2, %v5037_v17  ;;  %4245 = vmatmul.msk.f32.gmra.mxu3 %vm539_vm2, %v4981_v55  ;;  %8483 = vst [vmem:[#allocation35_spill] sm:$0xff] %v5232_v61 }
  0x35   : > { %8484 = vst [vmem:[#allocation36_spill] sm:$0xff] %v5235_v51 }
  0x36   : > { %8485 = vst [vmem:[#allocation37_spill] sm:$0xff] %v5238_v29 }
  0x37   : > { %4229 = vmatmul.msk.f32.gmra.mxu1 %vm539_vm2, %v4975_v53  ;;  %8486 = vst [vmem:[#allocation38_spill] sm:$0xff] %v5241_v13 }
  0x38   : > { %8487 = vst [vmem:[#allocation39_spill] sm:$0xff] %v5244_v14 }
  0x39   : > { %8488 = vst [vmem:[#allocation40_spill] sm:$0xff] %v5262_v26 }
  0x3a   : > { %8489 = vst [vmem:[#allocation41_spill] sm:$0xff] %v5265_v27 }
  0x3b   : > { %4198 = vmatmul.msk.f32.gmra.mxu0 %vm539_vm2, %v5067_v31  ;;  %8490 = vst [vmem:[#allocation42_spill] sm:$0xff] %v5271_v37 }
  0x3c   : > { %4214 = vmatmul.msk.f32.gmra.mxu2 %vm539_vm2, %v5070_v33  ;;  %4246 = vmatmul.msk.f32.gmra.mxu3 %vm539_vm2, %v5049_v21 }
  0x3f   : > { %4230 = vmatmul.msk.f32.gmra.mxu1 %vm539_vm2, %v5043_v19 }
  0x43   : > { %4199 = vmatmul.msk.f32.gmra.mxu0 %vm539_vm2, %v5099_v49 }
  0x44   : > { %4215 = vmatmul.msk.f32.gmra.mxu2 %vm539_vm2, %v5102_v50  ;;  %4247 = vmatmul.msk.f32.gmra.mxu3 %vm539_vm2, %v5046_v20  ;;  %v4382_v50 = vld [vmem:[%s8214_s1 + $0x160] sm:$0xff] }
  0x47   : > { %4231 = vmatmul.msk.f32.gmra.mxu1 %vm539_vm2, %v5040_v18 }
  0x4b   : > { %4200 = vmatmul.msk.f32.gmra.mxu0 %vm539_vm2, %v5132_v7 }
  0x4c   : > { %4216 = vmatmul.msk.f32.gmra.mxu2 %vm539_vm2, %v5135_v8  ;;  %4248 = vmatmul.msk.f32.gmra.mxu3 %vm539_vm2, %v5114_v60  ;;  %v254_v8 = vld [vmem:[%s4882_s16 + $0xe8] sm:$0xff] }
  0x4d   : > { %v337_v60 = vrot.slane %v254_v8, 7 }
  0x4f   : > { %4232 = vmatmul.msk.f32.gmra.mxu1 %vm539_vm2, %v5108_v58 }
  0x53   : > { %4201 = vmatmul.msk.f32.gmra.mxu0 %vm539_vm2, %v5164_v40 }
  0x54   : > { %4217 = vmatmul.msk.f32.gmra.mxu2 %vm539_vm2, %v5167_v41  ;;  %4249 = vmatmul.msk.f32.gmra.mxu3 %vm539_vm2, %v5111_v59  ;;  %v5297_v41 = vsel %vm449_vm1, %v516_v25, %v518_v24  ;;  %v4338_v25 = vld [vmem:[%s8214_s1 + $0x100] sm:$0xff] }
  0x55   : > { %8492 = vst [vmem:[#allocation44_spill] sm:$0xff] %v5297_v41  ;;  %1386 = vmatpush.msrb.mxu0 %v4338_v25 }
  0x57   : > { %4233 = vmatmul.msk.f32.gmra.mxu1 %vm539_vm2, %v5105_v57 }
  0x5b   : > { %4202 = vmatmul.msk.f32.gmra.mxu0 %vm539_vm2, %v5197_v3 }
  0x5c   : > { %4218 = vmatmul.msk.f32.gmra.mxu2 %vm539_vm2, %v5200_v4  ;;  %4250 = vmatmul.msk.f32.gmra.mxu3 %vm539_vm2, %v5179_v45  ;;  %v309_v4 = vrot.slane %v235_v39, 7  ;;  %v334_v45 = vrot.slane %v252_v12, 7 }
  0x5e   : > { %v5303_v37 = vsel %vm291_vm0, 0.0, %v309_v4  ;;  %v5342_v25 = vsel %vm291_vm0, %v334_v45, 0.0 }
  0x5f   : > { %4234 = vmatmul.msk.f32.gmra.mxu1 %vm539_vm2, %v5173_v43  ;;  %8494 = vst [vmem:[#allocation46_spill] sm:$0xff] %v5303_v37 }
  0x60   : > { %8498 = vst [vmem:[#allocation50_spill] sm:$0xff] %v5342_v25 }
  0x63   : > { %4203 = vmatmul.msk.f32.gmra.mxu0 %vm539_vm2, %v5229_v48 }
  0x64   : > { %4219 = vmatmul.msk.f32.gmra.mxu2 %vm539_vm2, %v5232_v61  ;;  %4251 = vmatmul.msk.f32.gmra.mxu3 %vm539_vm2, %v5176_v44  ;;  %v236_v61 = vld [vmem:[%s4882_s16 + $0x58] sm:$0xff] }
  0x65   : > { %v310_v44 = vrot.slane %v236_v61, 7 }
  0x67   : > { %4235 = vmatmul.msk.f32.gmra.mxu1 %vm539_vm2, %v5170_v42  ;;  %v5300_v10 = vsel %vm291_vm0, %v309_v4, %v310_v44  ;;  %v480_v4 = vrot.slane %v5303_v37, 1  ;;  %v5339_v24 = vsel %vm291_vm0, %v310_v44, 0.0 }
  0x68   : > { %8493 = vst [vmem:[#allocation45_spill] sm:$0xff] %v5300_v10  ;;  %v483_v44 = vrot.slane %v5339_v24, 1 }
  0x6b   : > { %4204 = vmatmul.msk.f32.gmra.mxu0 %vm539_vm2, %v5262_v26 }
  0x6c   : > { %4220 = vmatmul.msk.f32.gmra.mxu2 %vm539_vm2, %v5265_v27  ;;  %4252 = vmatmul.msk.f32.gmra.mxu3 %vm539_vm2, %v5244_v14  ;;  %v333_v27 = vrot.slane %v251_v15, 7  ;;  %v5294_v14 = vsel %vm449_vm1, %v476_v2, %v478_v47  ;;  %v481_v2 = vrot.slane %v5300_v10, 1  ;;  %v4385_v47 = vld [vmem:[%s8214_s1 + $0x178] sm:$0xff] }
  0x6d   : > { %8491 = vst [vmem:[#allocation43_spill] sm:$0xff] %v5294_v14  ;;  %1542 = vmatpush.msrb.mxu1 %v4385_v47  ;;  %v4465_v47 = vld [vmem:[%s8214_s1 + $0x1f8] sm:$0xff] }
  0x6e   : > { %v5306_v61 = vsel %vm291_vm0, %v333_v27, %v334_v45  ;;  %v5309_v12 = vsel %vm291_vm0, 0.0, %v333_v27  ;;  %v5327_v15 = vsel %vm449_vm1, %v480_v4, %v481_v2  ;;  %v237_v4 = vld [vmem:[%s4882_s16 + $0x60] sm:$0xff]  ;;  %v4425_v45 = vld [vmem:[%s8214_s1 + $0x1b8] sm:$0xff]  ;;  %1850 = vmatpush.msra.mxu3 %v4465_v47  ;;  %v5371_v36 = vsel %vm449_vm1, %v481_v2, %v483_v44  ;;  %v4379_v47 = vld [vmem:[%s8214_s1 + $0x148] sm:$0xff] }
  0x6f   : > { %4236 = vmatmul.msk.f32.gmra.mxu1 %vm539_vm2, %v5238_v29  ;;  %8495 = vst [vmem:[#allocation47_spill] sm:$0xff] %v5309_v12  ;;  %v520_v27 = vrot.slane %v5309_v12, 1  ;;  %v521_v39 = vrot.slane %v5306_v61, 1  ;;  %1696 = vmatpush.msra.mxu2 %v4425_v45 }
  0x70   : > { %8496 = vst [vmem:[#allocation48_spill] sm:$0xff] %v5327_v15  ;;  %1543 = vmatpush.msrb.mxu1 %v4384_v38  ;;  %v523_v38 = vrot.slane %v5342_v25, 1  ;;  %v5425_v25 = vsel %vm291_vm0, %v337_v60, 0.0 }
  0x71   : > { %v5336_v46 = vsel %vm449_vm1, %v520_v27, %v521_v39  ;;  %v4383_v27 = vld [vmem:[%s8214_s1 + $0x168] sm:$0xff]  ;;  %8499 = vst [vmem:[#allocation51_spill] sm:$0xff] %v5371_v36 }
  0x72   : > { %8497 = vst [vmem:[#allocation49_spill] sm:$0xff] %v5336_v46  ;;  %1544 = vmatpush.msrb.mxu1 %v4383_v27 }
  0x73   : > { %4205 = vmatmul.msk.f32.gmra.mxu0 %vm539_vm2, %v5294_v14  ;;  %8505 = vst [vmem:[#allocation57_spill] sm:$0xff] %v5425_v25 }
  0x74   : > { %4221 = vmatmul.msk.f32.gmra.mxu2 %vm539_vm2, %v5297_v41  ;;  %4253 = vmatmul.msk.f32.gmra.mxu3 %vm539_vm2, %v5241_v13  ;;  %v238_v41 = vld [vmem:[%s4882_s16 + $0x68] sm:$0xff]  ;;  %v253_v13 = vld [vmem:[%s4882_s16 + $0xe0] sm:$0xff] }
  0x75   : > { %v313_v59 = vrot.slane %v238_v41, 7  ;;  %1545 = vmatpush.msrb.mxu1 %v4382_v50  ;;  %v4381_v41 = vld [vmem:[%s8214_s1 + $0x158] sm:$0xff]  ;;  %v4380_v50 = vld [vmem:[%s8214_s1 + $0x150] sm:$0xff] }
  0x77   : > { %4237 = vmatmul.msk.f32.gmra.mxu1 %vm539_vm2, %v5235_v51 }
  0x78   : > { %1546 = vmatpush.msrb.mxu1 %v4381_v41 }
  0x7a   : > { %1547 = vmatpush.msrb.mxu1 %v4380_v50  ;;  %v5422_v50 = vsel %vm291_vm0, %v313_v59, 0.0 }
  0x7b   : > { %4206 = vmatmul.msk.f32.gmra.mxu0 %vm539_vm2, %v5327_v15 }
  0x7c   : > { %4222 = vmatmul.msk.f32.gmra.mxu2 %vm539_vm2, %v5336_v46  ;;  %4254 = vmatmul.msk.f32.gmra.mxu3 %vm539_vm2, %v5309_v12  ;;  %v312_v46 = vrot.slane %v237_v4, 7  ;;  %v336_v12 = vrot.slane %v253_v13, 7  ;;  %v5377_v4 = vsel %vm449_vm1, %v521_v39, %v523_v38  ;;  %v4378_v38 = vld [vmem:[%s8214_s1 + $0x140] sm:$0xff] }
  0x7d   : > { %8500 = vst [vmem:[#allocation52_spill] sm:$0xff] %v5377_v4  ;;  %1548 = vmatpush.msrb.mxu1 %v4379_v47  ;;  %v896_v47 = vrot.slane %v4856_v6, 2 }
  0x7e   : > { %v5380_v8 = vsel %vm291_vm0, %v312_v46, %v313_v59  ;;  %v5383_v13 = vsel %vm291_vm0, 0.0, %v312_v46  ;;  %v5386_v45 = vsel %vm291_vm0, %v336_v12, %v337_v60  ;;  %v5389_v2 = vsel %vm291_vm0, 0.0, %v336_v12  ;;  %v4505_v12 = vld [vmem:[%s8214_s1 + $0x238] sm:$0xff] }
  0x7f   : > { %4238 = vmatmul.msk.f32.gmra.mxu1 %vm539_vm2, %v5303_v37  ;;  %8501 = vst [vmem:[#allocation53_spill] sm:$0xff] %v5380_v8  ;;  %v485_v39 = vrot.slane %v5383_v13, 1  ;;  %v486_v46 = vrot.slane %v5380_v8, 1  ;;  %v525_v44 = vrot.slane %v5389_v2, 1  ;;  %v526_v27 = vrot.slane %v5386_v45, 1  ;;  %2004 = vmatpush.msra.mxu0 %v4505_v12 }
  0x80   : > { %8502 = vst [vmem:[#allocation54_spill] sm:$0xff] %v5383_v13  ;;  %1549 = vmatpush.msrb.mxu1 %v4378_v38  ;;  %v528_v12 = vrot.slane %v5425_v25, 1  ;;  %v901_v38 = vrot.slane %v4975_v53, 2 }
  0x81   : > { %v5416_v41 = vsel %vm449_vm1, %v485_v39, %v486_v46  ;;  %v488_v39 = vrot.slane %v5422_v50, 1 }
  0x82   : > { %8503 = vst [vmem:[#allocation55_spill] sm:$0xff] %v5416_v41  ;;  %v5441_v60 = vsel %vm449_vm1, %v526_v27, %v528_v12 }
  0x83   : > { %4207 = vmatmul.msk.f32.gmra.mxu0 %vm539_vm2, %v5371_v36  ;;  %v5438_v59 = vsel %vm449_vm1, %v486_v46, %v488_v39  ;;  %8507 = vst [vmem:[#allocation59_spill] sm:$0xff] %v5441_v60 }
  0x84   : > { %4223 = vmatmul.msk.f32.gmra.mxu2 %vm539_vm2, %v5377_v4  ;;  %4255 = vmatmul.msk.f32.gmra.mxu3 %vm539_vm2, %v5306_v61  ;;  %v5419_v4 = vsel %vm449_vm1, %v525_v44, %v526_v27  ;;  %8506 = vst [vmem:[#allocation58_spill] sm:$0xff] %v5438_v59  ;;  %v895_v44 = vrot.slane %v4875_v11, 2  ;;  %v900_v27 = vrot.slane %v4978_v54, 2  ;;  %v4424_v11 = vld [vmem:[%s8214_s1 + $0x1b0] sm:$0xff] }
  0x85   : > { %8504 = vst [vmem:[#allocation56_spill] sm:$0xff] %v5419_v4  ;;  %1697 = vmatpush.msra.mxu2 %v4424_v11 }
  0x86   : > { %v5458_v39 = vsel %vm894_vm3, %v895_v44, %v896_v47  ;;  %v902_v6 = vsel %vm894_vm3, %v900_v27, %v901_v38  ;;  %v4464_v44 = vld [vmem:[%s8214_s1 + $0x1f0] sm:$0xff]  ;;  %v903_v27 = vrot.slane %v5008_v0, 2 }
  0x87   : > { %4239 = vmatmul.msk.f32.gmra.mxu1 %vm539_vm2, %v5300_v10  ;;  %8508 = vst [vmem:[#allocation60_spill] sm:$0xff] %v5458_v39  ;;  %1851 = vmatpush.msra.mxu3 %v4464_v44  ;;  %v4504_v0 = vld [vmem:[%s8214_s1 + $0x230] sm:$0xff]  ;;  %v905_v44 = vrot.slane %v5043_v19, 2 }
  0x88   : > { %2005 = vmatpush.msra.mxu0 %v4504_v0 }
  0x8b   : > { %4208 = vmatmul.msk.f32.gmra.mxu0 %vm539_vm2, %v5416_v41 }
  0x8c   : > { %4224 = vmatmul.msk.f32.gmra.mxu2 %vm539_vm2, %v5419_v4  ;;  %4256 = vmatmul.msk.f32.gmra.mxu3 %vm539_vm2, %v5389_v2 }
  0x8f   : > { %4240 = vmatmul.msk.f32.gmra.mxu1 %vm539_vm2, %v5383_v13 }
  0x93   : > { %4209 = vmatmul.msk.f32.gmra.mxu0 %vm539_vm2, %v5438_v59 }
  0x94   : > { %4225 = vmatmul.msk.f32.gmra.mxu2 %vm539_vm2, %v5441_v60  ;;  %4257 = vmatmul.msk.f32.gmra.mxu3 %vm539_vm2, %v5386_v45 }
  0x97   : > { %4241 = vmatmul.msk.f32.gmra.mxu1 %vm539_vm2, %v5380_v8 }
  0x98   : > { %v5453_v46 = vpop.f32.mrf.mxu0 }
  0x9b   : > { %4346 = vmatmul.msk.f32.vlgmr.msrb.gmra.mxu0 %vm539_vm2, %v5002_v62  ;;  %v898_v62 = vrot.slane %v4928_v32, 2  ;;  %v904_v32 = vsel %vm894_vm3, %v901_v38, %v903_v27 }
  0x9c   : > { %4266 = vmatmul.msk.f32.vlgmr.msrb.gmra.mxu2 %vm539_vm2, %v5458_v39  ;;  %4306 = vmatmul.msk.f32.vlgmr.msrb.gmra.mxu3 %vm539_vm2, %v4978_v54  ;;  %v5466_v12 = vpop.f32.mrf.mxu1 }
  0x9d   : > { %v5483_v4 = vsel %vm894_vm3, %v896_v47, %v898_v62 }
  0x9e   : > { %8509 = vst [vmem:[#allocation61_spill] sm:$0xff] %v5483_v4 }
  0x9f   : > { %v669_v39 = vpop.f32.mrf.mxu2  ;;  %v846_v60 = vpop.f32.mrf.mxu3  ;;  %4386 = vmatmul.msk.f32.vlgmr.msrb.gmra.mxu1 %vm539_vm2, %v902_v6 }
  0xa0   : > { %v5477_v54 = vadd.f32 %v846_v60, %v669_v39  ;;  %v5479_v25 = vpop.f32.mrf.mxu0 }
  0xa3   : > { %4347 = vmatmul.msk.f32.gmra.mxu0 %vm539_vm2, %v5034_v16 }
  0xa4   : > { %4267 = vmatmul.msk.f32.gmra.mxu2 %vm539_vm2, %v5483_v4  ;;  %4307 = vmatmul.msk.f32.gmra.mxu3 %vm539_vm2, %v4975_v53  ;;  %v5491_v11 = vpop.f32.mrf.mxu1  ;;  %v906_v53 = vrot.slane %v5040_v18, 2  ;;  %v908_v4 = vrot.slane %v5073_v35, 2 }
  0xa6   : > { %v5512_v62 = vsel %vm894_vm3, %v905_v44, %v906_v53  ;;  %v5529_v44 = vsel %vm894_vm3, %v906_v53, %v908_v4  ;;  %v4423_v53 = vld [vmem:[%s8214_s1 + $0x1a8] sm:$0xff] }
  0xa7   : > { %v672_v60 = vpop.f32.mrf.mxu2  ;;  %v849_v47 = vpop.f32.mrf.mxu3  ;;  %4387 = vmatmul.msk.f32.gmra.mxu1 %vm539_vm2, %v904_v32  ;;  %1698 = vmatpush.msra.mxu2 %v4423_v53 }
  0xa8   : > { %v5498_v16 = vadd.f32 %v849_v47, %v672_v60  ;;  %v5500_v39 = vpop.f32.mrf.mxu0 }
  0xaa   : > { %8510 = vst [vmem:[#allocation62_spill] sm:$0xff] %v5498_v16 }
  0xab   : > { %4348 = vmatmul.msk.f32.gmra.mxu0 %vm539_vm2, %v5067_v31 }
  0xac   : > { %4268 = vmatmul.msk.f32.gmra.mxu2 %vm539_vm2, %v902_v6  ;;  %4308 = vmatmul.msk.f32.gmra.mxu3 %vm539_vm2, %v5043_v19  ;;  %v5509_v38 = vpop.f32.mrf.mxu1 }
  0xaf   : > { %v675_v27 = vpop.f32.mrf.mxu2  ;;  %v852_v0 = vpop.f32.mrf.mxu3  ;;  %4388 = vmatmul.msk.f32.gmra.mxu1 %vm539_vm2, %v5512_v62 }
  0xb0   : > { %v5516_v60 = vadd.f32 %v852_v0, %v675_v27  ;;  %v5518_v47 = vpop.f32.mrf.mxu0 }
  0xb2   : > { %8511 = vst [vmem:[#allocation63_spill] sm:$0xff] %v5516_v60  ;;  %v910_v60 = vrot.slane %v5108_v58, 2 }
  0xb3   : > { %4349 = vmatmul.msk.f32.gmra.mxu0 %vm539_vm2, %v5099_v49 }
  0xb4   : > { %4269 = vmatmul.msk.f32.gmra.mxu2 %vm539_vm2, %v904_v32  ;;  %4309 = vmatmul.msk.f32.gmra.mxu3 %vm539_vm2, %v5040_v18  ;;  %v5526_v6 = vpop.f32.mrf.mxu1  ;;  %v911_v32 = vrot.slane %v5105_v57, 2  ;;  %v916_v18 = vrot.slane %v5170_v42, 2 }
  0xb7   : > { %v678_v16 = vpop.f32.mrf.mxu2  ;;  %v855_v27 = vpop.f32.mrf.mxu3  ;;  %4389 = vmatmul.msk.f32.gmra.mxu1 %vm539_vm2, %v5529_v44 }
  0xb8   : > { %v5533_v0 = vadd.f32 %v855_v27, %v678_v16  ;;  %v5535_v35 = vpop.f32.mrf.mxu0  ;;  %v5548_v16 = vsel %vm894_vm3, %v910_v60, %v911_v32  ;;  %v4463_v27 = vld [vmem:[%s8214_s1 + $0x1e8] sm:$0xff]  ;;  %v913_v60 = vrot.slane %v5138_v9, 2 }
  0xb9   : > { %1852 = vmatpush.msra.mxu3 %v4463_v27 }
  0xba   : > { %8512 = vst [vmem:[#allocation64_spill] sm:$0xff] %v5533_v0  ;;  %v5572_v27 = vsel %vm894_vm3, %v911_v32, %v913_v60 }
  0xbb   : > { %4350 = vmatmul.msk.f32.gmra.mxu0 %vm539_vm2, %v5132_v7  ;;  %8514 = vst [vmem:[#allocation66_spill] sm:$0xff] %v5572_v27 }
  0xbc   : > { %4270 = vmatmul.msk.f32.gmra.mxu2 %vm539_vm2, %v5512_v62  ;;  %4310 = vmatmul.msk.f32.gmra.mxu3 %vm539_vm2, %v5108_v58  ;;  %v5545_v4 = vpop.f32.mrf.mxu1 }
  0xbf   : > { %v681_v0 = vpop.f32.mrf.mxu2  ;;  %v858_v7 = vpop.f32.mrf.mxu3  ;;  %4390 = vmatmul.msk.f32.gmra.mxu1 %vm539_vm2, %v5548_v16 }
  0xc0   : > { %v5558_v58 = vadd.f32 %v858_v7, %v681_v0  ;;  %v5560_v49 = vpop.f32.mrf.mxu0  ;;  %v4503_v7 = vld [vmem:[%s8214_s1 + $0x228] sm:$0xff] }
  0xc1   : > { %2006 = vmatpush.msra.mxu0 %v4503_v7 }
  0xc2   : > { %8513 = vst [vmem:[#allocation65_spill] sm:$0xff] %v5558_v58 }
  0xc3   : > { %4351 = vmatmul.msk.f32.gmra.mxu0 %vm539_vm2, %v5164_v40 }
  0xc4   : > { %4271 = vmatmul.msk.f32.gmra.mxu2 %vm539_vm2, %v5529_v44  ;;  %4311 = vmatmul.msk.f32.gmra.mxu3 %vm539_vm2, %v5105_v57  ;;  %v5569_v53 = vpop.f32.mrf.mxu1  ;;  %v915_v57 = vrot.slane %v5173_v43, 2 }
  0xc6   : > { %v5594_v60 = vsel %vm894_vm3, %v915_v57, %v916_v18 }
  0xc7   : > { %v684_v9 = vpop.f32.mrf.mxu2  ;;  %v861_v0 = vpop.f32.mrf.mxu3  ;;  %4391 = vmatmul.msk.f32.gmra.mxu1 %vm539_vm2, %v5572_v27 }
  0xc8   : > { %v5579_v58 = vadd.f32 %v861_v0, %v684_v9  ;;  %v5581_v40 = vpop.f32.mrf.mxu0 }
  0xca   : > { %8515 = vst [vmem:[#allocation67_spill] sm:$0xff] %v5579_v58 }
  0xcb   : > { %4352 = vmatmul.msk.f32.gmra.mxu0 %vm539_vm2, %v5197_v3  ;;  %v918_v3 = vrot.slane %v5203_v5, 2 }
  0xcc   : > { %4272 = vmatmul.msk.f32.gmra.mxu2 %vm539_vm2, %v5548_v16  ;;  %4312 = vmatmul.msk.f32.gmra.mxu3 %vm539_vm2, %v5173_v43  ;;  %v5591_v32 = vpop.f32.mrf.mxu1 }
  0xcd   : > { %v5612_v43 = vsel %vm894_vm3, %v916_v18, %v918_v3 }
  0xce   : > { %8517 = vst [vmem:[#allocation69_spill] sm:$0xff] %v5612_v43 }
  0xcf   : > { %v687_v7 = vpop.f32.mrf.mxu2  ;;  %v864_v9 = vpop.f32.mrf.mxu3  ;;  %4392 = vmatmul.msk.f32.gmra.mxu1 %vm539_vm2, %v5594_v60 }
  0xd0   : > { %v5598_v0 = vadd.f32 %v864_v9, %v687_v7  ;;  %v5600_v58 = vpop.f32.mrf.mxu0 }
  0xd2   : > { %8516 = vst [vmem:[#allocation68_spill] sm:$0xff] %v5598_v0 }
  0xd3   : > { %4353 = vmatmul.msk.f32.gmra.mxu0 %vm539_vm2, %v5229_v48  ;;  %v920_v48 = vrot.slane %v5238_v29, 2 }
  0xd4   : > { %4273 = vmatmul.msk.f32.gmra.mxu2 %vm539_vm2, %v5572_v27  ;;  %4313 = vmatmul.msk.f32.gmra.mxu3 %vm539_vm2, %v5170_v42  ;;  %v5609_v57 = vpop.f32.mrf.mxu1  ;;  %v921_v27 = vrot.slane %v5235_v51, 2 }
  0xd6   : > { %v5631_v3 = vsel %vm894_vm3, %v920_v48, %v921_v27  ;;  %v923_v48 = vrot.slane %v5268_v28, 2 }
  0xd7   : > { %v690_v7 = vpop.f32.mrf.mxu2  ;;  %v867_v9 = vpop.f32.mrf.mxu3  ;;  %4393 = vmatmul.msk.f32.gmra.mxu1 %vm539_vm2, %v5612_v43 }
  0xd8   : > { %v5616_v5 = vadd.f32 %v867_v9, %v690_v7  ;;  %v5618_v0 = vpop.f32.mrf.mxu0  ;;  %v4422_v7 = vld [vmem:[%s8214_s1 + $0x1a0] sm:$0xff] }
  0xd9   : > { %v4462_v9 = vld [vmem:[%s8214_s1 + $0x1e0] sm:$0xff]  ;;  %1699 = vmatpush.msra.mxu2 %v4422_v7 }
  0xda   : > { %8518 = vst [vmem:[#allocation70_spill] sm:$0xff] %v5616_v5  ;;  %1853 = vmatpush.msra.mxu3 %v4462_v9  ;;  %v5655_v9 = vsel %vm894_vm3, %v921_v27, %v923_v48 }
  0xdb   : > { %4354 = vmatmul.msk.f32.gmra.mxu0 %vm539_vm2, %v5262_v26  ;;  %8520 = vst [vmem:[#allocation72_spill] sm:$0xff] %v5655_v9 }
  0xdc   : > { %4274 = vmatmul.msk.f32.gmra.mxu2 %vm539_vm2, %v5594_v60  ;;  %4314 = vmatmul.msk.f32.gmra.mxu3 %vm539_vm2, %v5238_v29  ;;  %v5628_v18 = vpop.f32.mrf.mxu1 }
  0xdf   : > { %v693_v5 = vpop.f32.mrf.mxu2  ;;  %v870_v26 = vpop.f32.mrf.mxu3  ;;  %4394 = vmatmul.msk.f32.gmra.mxu1 %vm539_vm2, %v5631_v3 }
  0xe0   : > { %v5641_v29 = vadd.f32 %v870_v26, %v693_v5  ;;  %v5643_v42 = vpop.f32.mrf.mxu0  ;;  %v4502_v26 = vld [vmem:[%s8214_s1 + $0x220] sm:$0xff] }
  0xe1   : > { %2007 = vmatpush.msra.mxu0 %v4502_v26 }
  0xe2   : > { %8519 = vst [vmem:[#allocation71_spill] sm:$0xff] %v5641_v29 }
  0xe3   : > { %4355 = vmatmul.msk.f32.gmra.mxu0 %vm539_vm2, %v5294_v14 }
  0xe4   : > { %4275 = vmatmul.msk.f32.gmra.mxu2 %vm539_vm2, %v5612_v43  ;;  %4315 = vmatmul.msk.f32.gmra.mxu3 %vm539_vm2, %v5235_v51  ;;  %v5652_v7 = vpop.f32.mrf.mxu1  ;;  %v925_v51 = vrot.slane %v5303_v37, 2  ;;  %v926_v43 = vrot.slane %v5300_v10, 2 }
  0xe6   : > { %v5677_v48 = vsel %vm894_vm3, %v925_v51, %v926_v43 }
  0xe7   : > { %v696_v28 = vpop.f32.mrf.mxu2  ;;  %v873_v5 = vpop.f32.mrf.mxu3  ;;  %4395 = vmatmul.msk.f32.gmra.mxu1 %vm539_vm2, %v5655_v9 }
  0xe8   : > { %v5662_v29 = vadd.f32 %v873_v5, %v696_v28  ;;  %v5664_v14 = vpop.f32.mrf.mxu0 }
  0xea   : > { %8521 = vst [vmem:[#allocation73_spill] sm:$0xff] %v5662_v29 }
  0xeb   : > { %4356 = vmatmul.msk.f32.gmra.mxu0 %vm539_vm2, %v5327_v15  ;;  %v928_v15 = vrot.slane %v5339_v24, 2 }
  0xec   : > { %4276 = vmatmul.msk.f32.gmra.mxu2 %vm539_vm2, %v5631_v3  ;;  %4316 = vmatmul.msk.f32.gmra.mxu3 %vm539_vm2, %v5303_v37  ;;  %v5674_v27 = vpop.f32.mrf.mxu1 }
  0xed   : > { %v5695_v37 = vsel %vm894_vm3, %v926_v43, %v928_v15 }
  0xee   : > { %8523 = vst [vmem:[#allocation75_spill] sm:$0xff] %v5695_v37 }
  0xef   : > { %v699_v26 = vpop.f32.mrf.mxu2  ;;  %v876_v28 = vpop.f32.mrf.mxu3  ;;  %4396 = vmatmul.msk.f32.gmra.mxu1 %vm539_vm2, %v5677_v48 }
  0xf0   : > { %v5681_v5 = vadd.f32 %v876_v28, %v699_v26  ;;  %v5683_v29 = vpop.f32.mrf.mxu0 }
  0xf2   : > { %8522 = vst [vmem:[#allocation74_spill] sm:$0xff] %v5681_v5 }
  0xf3   : > { %4357 = vmatmul.msk.f32.gmra.mxu0 %vm539_vm2, %v5371_v36  ;;  %v930_v36 = vrot.slane %v5383_v13, 2 }
  0xf4   : > { %4277 = vmatmul.msk.f32.gmra.mxu2 %vm539_vm2, %v5655_v9  ;;  %4317 = vmatmul.msk.f32.gmra.mxu3 %vm539_vm2, %v5300_v10  ;;  %v5692_v51 = vpop.f32.mrf.mxu1  ;;  %v931_v9 = vrot.slane %v5380_v8, 2 }
  0xf6   : > { %v5714_v15 = vsel %vm894_vm3, %v930_v36, %v931_v9  ;;  %v933_v36 = vrot.slane %v5422_v50, 2 }
  0xf7   : > { %v702_v26 = vpop.f32.mrf.mxu2  ;;  %v879_v28 = vpop.f32.mrf.mxu3  ;;  %4397 = vmatmul.msk.f32.gmra.mxu1 %vm539_vm2, %v5695_v37  ;;  %8525 = vst [vmem:[#allocation77_spill] sm:$0xff] %v5714_v15 }
  0xf8   : > { %v5699_v24 = vadd.f32 %v879_v28, %v702_v26  ;;  %v5701_v5 = vpop.f32.mrf.mxu0  ;;  %v4421_v26 = vld [vmem:[%s8214_s1 + $0x198] sm:$0xff] }
  0xf9   : > { %v4461_v28 = vld [vmem:[%s8214_s1 + $0x1d8] sm:$0xff]  ;;  %1700 = vmatpush.msra.mxu2 %v4421_v26 }
  0xfa   : > { %8524 = vst [vmem:[#allocation76_spill] sm:$0xff] %v5699_v24  ;;  %1854 = vmatpush.msra.mxu3 %v4461_v28  ;;  %v5738_v28 = vsel %vm894_vm3, %v931_v9, %v933_v36  ;;  %v4553_v9 = vld [vmem:[%s8216_s3 + $0xf8] sm:$0xff] }
  0xfb   : > { %4358 = vmatmul.msk.f32.gmra.mxu0 %vm539_vm2, %v5416_v41  ;;  %8527 = vst [vmem:[#allocation79_spill] sm:$0xff] %v5738_v28  ;;  %2540 = vmatpush.msra.mxu1 %v4553_v9  ;;  %v938_v9 = vrot.slane %v4934_v34, 2 }
  0xfc   : > { %4278 = vmatmul.msk.f32.gmra.mxu2 %vm539_vm2, %v5677_v48  ;;  %4318 = vmatmul.msk.f32.gmra.mxu3 %vm539_vm2, %v5383_v13  ;;  %v5711_v43 = vpop.f32.mrf.mxu1 }
  0xff   : > { %v705_v24 = vpop.f32.mrf.mxu2  ;;  %v882_v41 = vpop.f32.mrf.mxu3  ;;  %4398 = vmatmul.msk.f32.gmra.mxu1 %vm539_vm2, %v5714_v15 }
 0x100   : > { %v5724_v13 = vadd.f32 %v882_v41, %v705_v24  ;;  %v5726_v10 = vpop.f32.mrf.mxu0  ;;  %v4501_v41 = vld [vmem:[%s8214_s1 + $0x218] sm:$0xff] }
 0x101   : > { %2008 = vmatpush.msra.mxu0 %v4501_v41 }
 0x102   : > { %8526 = vst [vmem:[#allocation78_spill] sm:$0xff] %v5724_v13 }
 0x103   : > { %4359 = vmatmul.msk.f32.gmra.mxu0 %vm539_vm2, %v5438_v59 }
 0x104   : > { %4279 = vmatmul.msk.f32.gmra.mxu2 %vm539_vm2, %v5695_v37  ;;  %4319 = vmatmul.msk.f32.gmra.mxu3 %vm539_vm2, %v5380_v8  ;;  %v5735_v26 = vpop.f32.mrf.mxu1  ;;  %v935_v8 = vrot.slane %v4904_v23, 2  ;;  %v936_v37 = vrot.slane %v4901_v22, 2 }
 0x106   : > { %v5763_v41 = vsel %vm894_vm3, %v935_v8, %v936_v37 }
 0x107   : > { %v708_v24 = vpop.f32.mrf.mxu2  ;;  %v885_v50 = vpop.f32.mrf.mxu3  ;;  %4399 = vmatmul.msk.f32.gmra.mxu1 %vm539_vm2, %v5738_v28  ;;  %8529 = vst [vmem:[#allocation81_spill] sm:$0xff] %v5763_v41 }
 0x108   : > { %v5745_v13 = vadd.f32 %v885_v50, %v708_v24  ;;  %v5747_v59 = vpop.f32.mrf.mxu0 }
 0x10a   : > { %8528 = vst [vmem:[#allocation80_spill] sm:$0xff] %v5745_v13 }
 0x10b   : > { %4360 = vmatmul.msk.f32.gmra.mxu0 %vm539_vm2, %v4921_v30 }
 0x10c   : > { %4280 = vmatmul.msk.f32.gmra.mxu2 %vm539_vm2, %v5714_v15  ;;  %4320 = vmatmul.msk.f32.gmra.mxu3 %vm539_vm2, %v4904_v23  ;;  %v5760_v36 = vpop.f32.mrf.mxu1  ;;  %v5781_v23 = vsel %vm894_vm3, %v936_v37, %v938_v9 }
 0x10f   : > { %v711_v24 = vpop.f32.mrf.mxu2  ;;  %v888_v50 = vpop.f32.mrf.mxu3  ;;  %4400 = vmatmul.msk.f32.gmra.mxu1 %vm539_vm2, %v5763_v41 }
 0x110   : > { %v5767_v13 = vadd.f32 %v888_v50, %v711_v24  ;;  %v5769_v30 = vpop.f32.mrf.mxu0 }
 0x112   : > { %8530 = vst [vmem:[#allocation82_spill] sm:$0xff] %v5767_v13 }
 0x113   : > { %4361 = vmatmul.msk.f32.gmra.mxu0 %vm539_vm2, %v4972_v52  ;;  %v940_v52 = vrot.slane %v4984_v56, 2 }
 0x114   : > { %4281 = vmatmul.msk.f32.gmra.mxu2 %vm539_vm2, %v5738_v28  ;;  %4321 = vmatmul.msk.f32.gmra.mxu3 %vm539_vm2, %v4901_v22  ;;  %v5778_v8 = vpop.f32.mrf.mxu1  ;;  %v941_v28 = vrot.slane %v4981_v55, 2  ;;  %v4552_v22 = vld [vmem:[%s8216_s3 + $0xf0] sm:$0xff] }
 0x115   : > { %2541 = vmatpush.msra.mxu1 %v4552_v22  ;;  %v4460_v22 = vld [vmem:[%s8214_s1 + $0x1d0] sm:$0xff] }
 0x116   : > { %v5799_v9 = vsel %vm894_vm3, %v940_v52, %v941_v28  ;;  %1855 = vmatpush.msra.mxu3 %v4460_v22 }
 0x117   : > { %v714_v24 = vpop.f32.mrf.mxu2  ;;  %v891_v50 = vpop.f32.mrf.mxu3  ;;  %4401 = vmatmul.msk.f32.gmra.mxu1 %vm539_vm2, %v5781_v23 }
 0x118   : > { %v5785_v34 = vadd.f32 %v891_v50, %v714_v24  ;;  %v1388_v13 = vpop.f32.mrf.mxu0  ;;  %v4420_v24 = vld [vmem:[%s8214_s1 + $0x190] sm:$0xff]  ;;  %v799_v50 = vadd.f32 %v5466_v12, %v5453_v46 }
 0x119   : > { %1701 = vmatpush.msra.mxu2 %v4420_v24 }
 0x11a   : > { %8531 = vst [vmem:[#allocation83_spill] sm:$0xff] %v5785_v34 }
 0x11b   : > { %4362 = vmatmul.msk.f32.gmra.mxu0 %vm539_vm2, %v5005_v63 }
 0x11c   : > { %4282 = vmatmul.msk.f32.gmra.mxu2 %vm539_vm2, %v5763_v41  ;;  %4322 = vmatmul.msk.f32.gmra.mxu3 %vm539_vm2, %v4984_v56  ;;  %v1551_v37 = vpop.f32.mrf.mxu1  ;;  %v943_v41 = vrot.slane %v5011_v1, 2 }
 0x11e   : > { %v5819_v24 = vsel %vm894_vm3, %v941_v28, %v943_v41  ;;  %v945_v28 = vrot.slane %v5049_v21, 2  ;;  %v946_v41 = vrot.slane %v5046_v20, 2 }
 0x11f   : > { %v1065_v34 = vpop.f32.mrf.mxu2  ;;  %v1224_v63 = vpop.f32.mrf.mxu3  ;;  %4402 = vmatmul.msk.f32.gmra.mxu1 %vm539_vm2, %v5799_v9 }
 0x120   : > { %v1161_v52 = vadd.f32 %v1065_v34, %v799_v50  ;;  %v1391_v56 = vpop.f32.mrf.mxu0  ;;  %v802_v34 = vadd.f32 %v5491_v11, %v5479_v25  ;;  %v4551_v25 = vld [vmem:[%s8216_s3 + $0xe8] sm:$0xff] }
 0x121   : > { %2542 = vmatpush.msra.mxu1 %v4551_v25 }
 0x122   : > { %v1320_v15 = vadd.f32 %v1224_v63, %v1161_v52  ;;  %v4500_v63 = vld [vmem:[%s8214_s1 + $0x210] sm:$0xff] }
 0x123   : > { %4363 = vmatmul.msk.f32.gmra.mxu0 %vm539_vm2, %v5037_v17 }
 0x124   : > { %4283 = vmatmul.msk.f32.gmra.mxu2 %vm539_vm2, %v5781_v23  ;;  %4323 = vmatmul.msk.f32.gmra.mxu3 %vm539_vm2, %v4981_v55  ;;  %v1484_v46 = vadd.f32 %v1388_v13, %v1320_v15  ;;  %v1554_v12 = vpop.f32.mrf.mxu1 }
 0x125   : > { %2009 = vmatpush.msra.mxu0 %v4500_v63 }
 0x126   : > { %v5823_v50 = vadd.f32 %v1551_v37, %v1484_v46  ;;  %v5842_v46 = vsel %vm894_vm3, %v945_v28, %v946_v41  ;;  %v808_v28 = vadd.f32 %v5526_v6, %v5518_v47 }
 0x127   : > { %v1068_v1 = vpop.f32.mrf.mxu2  ;;  %v1227_v22 = vpop.f32.mrf.mxu3  ;;  %4403 = vmatmul.msk.f32.gmra.mxu1 %vm539_vm2, %v5819_v24 }
 0x128   : > { %8532 = vst [vmem:[#allocation84_spill] sm:$0xff] %v5823_v50  ;;  %v1162_v13 = vadd.f32 %v1068_v1, %v802_v34  ;;  %v1394_v15 = vpop.f32.mrf.mxu0  ;;  %v805_v34 = vadd.f32 %v5509_v38, %v5500_v39  ;;  %v8534_v50 = vld [vmem:[#allocation15_spill] sm:$0xff] }
 0x12a   : > { %v1321_v52 = vadd.f32 %v1227_v22, %v1162_v13 }
 0x12b   : > { %4364 = vmatmul.msk.f32.gmra.mxu0 %vm539_vm2, %v5070_v33  ;;  %v948_v33 = vrot.slane %v8534_v50, 2 }
 0x12c   : > { %4284 = vmatmul.msk.f32.gmra.mxu2 %vm539_vm2, %v5799_v9  ;;  %4324 = vmatmul.msk.f32.gmra.mxu3 %vm539_vm2, %v5049_v21  ;;  %v1485_v11 = vadd.f32 %v1391_v56, %v1321_v52  ;;  %v1557_v37 = vpop.f32.mrf.mxu1  ;;  %v8535_v56 = vld [vmem:[#allocation17_spill] sm:$0xff] }
 0x12e   : > { %v5846_v63 = vadd.f32 %v1554_v12, %v1485_v11  ;;  %v5858_v12 = vsel %vm894_vm3, %v946_v41, %v948_v33  ;;  %v4550_v33 = vld [vmem:[%s8216_s3 + $0xe0] sm:$0xff]  ;;  %v8539_v41 = vld [vmem:[#allocation23_spill] sm:$0xff] }
 0x12f   : > { %v1071_v1 = vpop.f32.mrf.mxu2  ;;  %v1230_v22 = vpop.f32.mrf.mxu3  ;;  %4404 = vmatmul.msk.f32.gmra.mxu1 %vm539_vm2, %v5842_v46 }
 0x130   : > { %8533 = vst [vmem:[#allocation85_spill] sm:$0xff] %v5846_v63  ;;  %v1163_v13 = vadd.f32 %v1071_v1, %v805_v34  ;;  %v1397_v25 = vpop.f32.mrf.mxu0  ;;  %v8538_v63 = vld [vmem:[#allocation20_spill] sm:$0xff]  ;;  %2543 = vmatpush.msra.mxu1 %v4550_v33 }
 0x131   : > { %v8541_v33 = vld [vmem:[#allocation24_spill] sm:$0xff] }
 0x132   : > { %v1322_v21 = vadd.f32 %v1230_v22, %v1163_v13  ;;  %v8537_v22 = vld [vmem:[#allocation21_spill] sm:$0xff] }
 0x133   : > { %4365 = vmatmul.msk.f32.gmra.mxu0 %vm539_vm2, %v8535_v56  ;;  %v950_v13 = vrot.slane %v8537_v22, 2 }
 0x134   : > { %4285 = vmatmul.msk.f32.gmra.mxu2 %vm539_vm2, %v5819_v24  ;;  %4325 = vmatmul.msk.f32.gmra.mxu3 %vm539_vm2, %v5046_v20  ;;  %v1486_v39 = vadd.f32 %v1394_v15, %v1322_v21  ;;  %v1560_v38 = vpop.f32.mrf.mxu1  ;;  %v951_v21 = vrot.slane %v8538_v63, 2 }
 0x136   : > { %v5862_v52 = vadd.f32 %v1557_v37, %v1486_v39  ;;  %v5878_v37 = vsel %vm894_vm3, %v950_v13, %v951_v21  ;;  %v4419_v39 = vld [vmem:[%s8214_s1 + $0x188] sm:$0xff] }
 0x137   : > { %v1074_v50 = vpop.f32.mrf.mxu2  ;;  %v1233_v11 = vpop.f32.mrf.mxu3  ;;  %4405 = vmatmul.msk.f32.gmra.mxu1 %vm539_vm2, %v5858_v12  ;;  %1702 = vmatpush.msra.mxu2 %v4419_v39 }
 0x138   : > { %8536 = vst [vmem:[#allocation15_spill] sm:$0xff] %v5862_v52  ;;  %v1164_v34 = vadd.f32 %v1074_v50, %v808_v28  ;;  %v1400_v1 = vpop.f32.mrf.mxu0  ;;  %v811_v28 = vadd.f32 %v5545_v4, %v5535_v35  ;;  %v953_v52 = vrot.slane %v8541_v33, 2  ;;  %v8545_v33 = vld [vmem:[#allocation29_spill] sm:$0xff] }
 0x13a   : > { %v1323_v15 = vadd.f32 %v1233_v11, %v1164_v34  ;;  %v4459_v11 = vld [vmem:[%s8214_s1 + $0x1c8] sm:$0xff]  ;;  %v5900_v4 = vsel %vm894_vm3, %v951_v21, %v953_v52  ;;  %v8544_v52 = vld [vmem:[#allocation30_spill] sm:$0xff] }
 0x13b   : > { %4366 = vmatmul.msk.f32.gmra.mxu0 %vm539_vm2, %v8539_v41  ;;  %1856 = vmatpush.msra.mxu3 %v4459_v11  ;;  %v8542_v41 = vld [vmem:[#allocation26_spill] sm:$0xff]  ;;  %v4499_v11 = vld [vmem:[%s8214_s1 + $0x208] sm:$0xff]  ;;  %v955_v21 = vrot.slane %v8544_v52, 2 }
 0x13c   : > { %4286 = vmatmul.msk.f32.gmra.mxu2 %vm539_vm2, %v5842_v46  ;;  %4326 = vmatmul.msk.f32.gmra.mxu3 %vm539_vm2, %v8537_v22  ;;  %v1487_v47 = vadd.f32 %v1397_v25, %v1323_v15  ;;  %v1563_v6 = vpop.f32.mrf.mxu1 }
 0x13d   : > { %2010 = vmatpush.msra.mxu0 %v4499_v11  ;;  %v817_v11 = vadd.f32 %v5591_v32, %v5581_v40 }
 0x13e   : > { %v5885_v50 = vadd.f32 %v1560_v38, %v1487_v47  ;;  %v814_v38 = vadd.f32 %v5569_v53, %v5560_v49  ;;  %v4549_v53 = vld [vmem:[%s8216_s3 + $0xd8] sm:$0xff] }
 0x13f   : > { %v1077_v34 = vpop.f32.mrf.mxu2  ;;  %v1236_v25 = vpop.f32.mrf.mxu3  ;;  %4406 = vmatmul.msk.f32.gmra.mxu1 %vm539_vm2, %v5878_v37 }
 0x140   : > { %8540 = vst [vmem:[#allocation17_spill] sm:$0xff] %v5885_v50  ;;  %v1165_v13 = vadd.f32 %v1077_v34, %v811_v28  ;;  %v1403_v15 = vpop.f32.mrf.mxu0  ;;  %2544 = vmatpush.msra.mxu1 %v4549_v53 }
 0x142   : > { %v1324_v39 = vadd.f32 %v1236_v25, %v1165_v13 }
 0x143   : > { %4367 = vmatmul.msk.f32.gmra.mxu0 %vm539_vm2, %v8542_v41 }
 0x144   : > { %4287 = vmatmul.msk.f32.gmra.mxu2 %vm539_vm2, %v5858_v12  ;;  %4327 = vmatmul.msk.f32.gmra.mxu3 %vm539_vm2, %v8538_v63  ;;  %v1488_v35 = vadd.f32 %v1400_v1, %v1324_v39  ;;  %v1566_v28 = vpop.f32.mrf.mxu1  ;;  %v956_v39 = vrot.slane %v8545_v33, 2 }
 0x146   : > { %v5904_v47 = vadd.f32 %v1563_v6, %v1488_v35  ;;  %v8546_v6 = vld [vmem:[#allocation32_spill] sm:$0xff] }
 0x147   : > { %v1080_v34 = vpop.f32.mrf.mxu2  ;;  %v1239_v25 = vpop.f32.mrf.mxu3  ;;  %4407 = vmatmul.msk.f32.gmra.mxu1 %vm539_vm2, %v5900_v4 }
 0x148   : > { %8543 = vst [vmem:[#allocation21_spill] sm:$0xff] %v5904_v47  ;;  %v1166_v1 = vadd.f32 %v1080_v34, %v814_v38  ;;  %v1406_v13 = vpop.f32.mrf.mxu0  ;;  %v5923_v38 = vsel %vm894_vm3, %v955_v21, %v956_v39 }
 0x14a   : > { %v1325_v49 = vadd.f32 %v1239_v25, %v1166_v1 }
 0x14b   : > { %4368 = vmatmul.msk.f32.gmra.mxu0 %vm539_vm2, %v8546_v6  ;;  %v8548_v6 = vld [vmem:[#allocation33_spill] sm:$0xff] }
 0x14c   : > { %4288 = vmatmul.msk.f32.gmra.mxu2 %vm539_vm2, %v5878_v37  ;;  %4328 = vmatmul.msk.f32.gmra.mxu3 %vm539_vm2, %v8544_v52  ;;  %v1489_v35 = vadd.f32 %v1403_v15, %v1325_v49  ;;  %v958_v50 = vrot.slane %v8548_v6, 2  ;;  %v1569_v41 = vpop.f32.mrf.mxu1  ;;  %v8549_v15 = vld [vmem:[#allocation35_spill] sm:$0xff] }
 0x14e   : > { %v5927_v34 = vadd.f32 %v1566_v28, %v1489_v35  ;;  %v5939_v32 = vsel %vm894_vm3, %v956_v39, %v958_v50  ;;  %v820_v28 = vadd.f32 %v5609_v57, %v5600_v58  ;;  %v4548_v50 = vld [vmem:[%s8216_s3 + $0xd0] sm:$0xff]  ;;  %v4418_v39 = vld [vmem:[%s8214_s1 + $0x180] sm:$0xff] }
 0x14f   : > { %v1083_v25 = vpop.f32.mrf.mxu2  ;;  %v1242_v1 = vpop.f32.mrf.mxu3  ;;  %4408 = vmatmul.msk.f32.gmra.mxu1 %vm539_vm2, %v5923_v38  ;;  %1703 = vmatpush.msra.mxu2 %v4418_v39 }
 0x150   : > { %8547 = vst [vmem:[#allocation20_spill] sm:$0xff] %v5927_v34  ;;  %v1167_v53 = vadd.f32 %v1083_v25, %v817_v11  ;;  %v1409_v47 = vpop.f32.mrf.mxu0  ;;  %v8551_v25 = vld [vmem:[#allocation39_spill] sm:$0xff]  ;;  %2545 = vmatpush.msra.mxu1 %v4548_v50 }
 0x152   : > { %v1326_v52 = vadd.f32 %v1242_v1, %v1167_v53  ;;  %v960_v1 = vrot.slane %v8551_v25, 2  ;;  %v8552_v53 = vld [vmem:[#allocation38_spill] sm:$0xff] }
 0x153   : > { %4369 = vmatmul.msk.f32.gmra.mxu0 %vm539_vm2, %v8549_v15  ;;  %v961_v34 = vrot.slane %v8552_v53, 2 }
 0x154   : > { %4289 = vmatmul.msk.f32.gmra.mxu2 %vm539_vm2, %v5900_v4  ;;  %4329 = vmatmul.msk.f32.gmra.mxu3 %vm539_vm2, %v8545_v33  ;;  %v1490_v40 = vadd.f32 %v1406_v13, %v1326_v52  ;;  %v8553_v52 = vld [vmem:[#allocation41_spill] sm:$0xff]  ;;  %v1572_v58 = vpop.f32.mrf.mxu1 }
 0x156   : > { %v5943_v21 = vadd.f32 %v1569_v41, %v1490_v40  ;;  %v5959_v41 = vsel %vm894_vm3, %v960_v1, %v961_v34  ;;  %v823_v40 = vadd.f32 %v5628_v18, %v5618_v0 }
 0x157   : > { %v1086_v49 = vpop.f32.mrf.mxu2  ;;  %v1245_v6 = vpop.f32.mrf.mxu3  ;;  %4409 = vmatmul.msk.f32.gmra.mxu1 %vm539_vm2, %v5939_v32 }
 0x158   : > { %8550 = vst [vmem:[#allocation24_spill] sm:$0xff] %v5943_v21  ;;  %v1168_v35 = vadd.f32 %v1086_v49, %v820_v28  ;;  %v1412_v11 = vpop.f32.mrf.mxu0  ;;  %v4458_v49 = vld [vmem:[%s8214_s1 + $0x1c0] sm:$0xff]  ;;  %v8555_v21 = vld [vmem:[#allocation44_spill] sm:$0xff] }
 0x159   : > { %1857 = vmatpush.msra.mxu3 %v4458_v49 }
 0x15a   : > { %v1327_v13 = vadd.f32 %v1245_v6, %v1168_v35 }
 0x15b   : > { %4370 = vmatmul.msk.f32.gmra.mxu0 %vm539_vm2, %v8553_v52 }
 0x15c   : > { %4290 = vmatmul.msk.f32.gmra.mxu2 %vm539_vm2, %v5923_v38  ;;  %4330 = vmatmul.msk.f32.gmra.mxu3 %vm539_vm2, %v8551_v25  ;;  %v1491_v57 = vadd.f32 %v1409_v47, %v1327_v13  ;;  %v8554_v13 = vld [vmem:[#allocation42_spill] sm:$0xff] }
 0x15d   : > { %v963_v50 = vrot.slane %v8554_v13, 2 }
 0x15e   : > { %v5966_v28 = vadd.f32 %v1572_v58, %v1491_v57  ;;  %v826_v58 = vadd.f32 %v5652_v7, %v5643_v42  ;;  %v4498_v57 = vld [vmem:[%s8214_s1 + $0x200] sm:$0xff]  ;;  %v4547_v42 = vld [vmem:[%s8216_s3 + $0xc8] sm:$0xff]  ;;  %v8558_v7 = vld [vmem:[#allocation49_spill] sm:$0xff] }
 0x15f   : > { %v1089_v6 = vpop.f32.mrf.mxu2  ;;  %v1248_v35 = vpop.f32.mrf.mxu3  ;;  %4410 = vmatmul.msk.f32.gmra.mxu1 %vm539_vm2, %v5959_v41  ;;  %v5983_v18 = vsel %vm894_vm3, %v961_v34, %v963_v50  ;;  %2011 = vmatpush.msra.mxu0 %v4498_v57  ;;  %v966_v34 = vrot.slane %v5306_v61, 2 }
 0x160   : > { %v1169_v47 = vadd.f32 %v1089_v6, %v823_v40  ;;  %v1415_v1 = vpop.f32.mrf.mxu0  ;;  %2546 = vmatpush.msra.mxu1 %v4547_v42  ;;  %v8560_v42 = vld [vmem:[#allocation50_spill] sm:$0xff] }
 0x162   : > { %v1328_v39 = vadd.f32 %v1248_v35, %v1169_v47 }
 0x163   : > { %4371 = vmatmul.msk.f32.gmra.mxu0 %vm539_vm2, %v8555_v21 }
 0x164   : > { %4291 = vmatmul.msk.f32.gmra.mxu2 %vm539_vm2, %v5939_v32  ;;  %4331 = vmatmul.msk.f32.gmra.mxu3 %vm539_vm2, %v8552_v53  ;;  %v5980_v0 = vadd.f32 %v1412_v11, %v1328_v39  ;;  %v8557_v11 = vld [vmem:[#allocation47_spill] sm:$0xff] }
 0x165   : > { %v965_v47 = vrot.slane %v8557_v11, 2 }
 0x166   : > { %8556 = vst [vmem:[#allocation29_spill] sm:$0xff] %v5980_v0  ;;  %v968_v0 = vrot.slane %v8560_v42, 2 }
 0x167   : > { %v1092_v40 = vpop.f32.mrf.mxu2  ;;  %v1251_v49 = vpop.f32.mrf.mxu3  ;;  %4411 = vmatmul.msk.f32.gmra.mxu1 %vm539_vm2, %v5983_v18  ;;  %v6006_v39 = vsel %vm894_vm3, %v965_v47, %v966_v34 }
 0x168   : > { %v1170_v6 = vadd.f32 %v1092_v40, %v826_v58  ;;  %v1418_v35 = vpop.f32.mrf.mxu0  ;;  %v829_v58 = vadd.f32 %v5674_v27, %v5664_v14  ;;  %v6022_v27 = vsel %vm894_vm3, %v966_v34, %v968_v0  ;;  %v4546_v0 = vld [vmem:[%s8216_s3 + $0xc0] sm:$0xff]  ;;  %v8563_v34 = vld [vmem:[#allocation56_spill] sm:$0xff] }
 0x169   : > { %2547 = vmatpush.msra.mxu1 %v4546_v0 }
 0x16a   : > { %v1329_v13 = vadd.f32 %v1251_v49, %v1170_v6 }
 0x16b   : > { %4372 = vmatmul.msk.f32.gmra.mxu0 %vm539_vm2, %v8558_v7 }
 0x16c   : > { %4292 = vmatmul.msk.f32.gmra.mxu2 %vm539_vm2, %v5959_v41  ;;  %4332 = vmatmul.msk.f32.gmra.mxu3 %vm539_vm2, %v8557_v11  ;;  %v6003_v50 = vadd.f32 %v1415_v1, %v1329_v13  ;;  %v8561_v11 = vld [vmem:[#allocation52_spill] sm:$0xff]  ;;  %v832_v1 = vadd.f32 %v5692_v51, %v5683_v29 }
 0x16e   : > { %8559 = vst [vmem:[#allocation33_spill] sm:$0xff] %v6003_v50  ;;  %v8564_v50 = vld [vmem:[#allocation57_spill] sm:$0xff] }
 0x16f   : > { %v1095_v57 = vpop.f32.mrf.mxu2  ;;  %v1254_v40 = vpop.f32.mrf.mxu3  ;;  %4412 = vmatmul.msk.f32.gmra.mxu1 %vm539_vm2, %v6006_v39 }
 0x170   : > { %v1171_v49 = vadd.f32 %v1095_v57, %v829_v58  ;;  %v1421_v6 = vpop.f32.mrf.mxu0 }
 0x172   : > { %v1330_v7 = vadd.f32 %v1254_v40, %v1171_v49  ;;  %v970_v40 = vrot.slane %v5389_v2, 2  ;;  %v971_v49 = vrot.slane %v5386_v45, 2 }
 0x173   : > { %4373 = vmatmul.msk.f32.gmra.mxu0 %vm539_vm2, %v8561_v11  ;;  %v973_v11 = vrot.slane %v8564_v50, 2 }
 0x174   : > { %4293 = vmatmul.msk.f32.gmra.mxu2 %vm539_vm2, %v5983_v18  ;;  %4333 = vmatmul.msk.f32.gmra.mxu3 %vm539_vm2, %v5306_v61  ;;  %v6019_v14 = vadd.f32 %v1418_v35, %v1330_v7  ;;  %v255_v35 = vld [vmem:[%s4882_s16 + $0xf0] sm:$0xff]  ;;  %v256_v7 = vld [vmem:[%s4882_s16 + $0xf8] sm:$0xff]  ;;  %v6044_v51 = vsel %vm894_vm3, %v970_v40, %v971_v49 }
 0x176   : > { %8562 = vst [vmem:[#allocation35_spill] sm:$0xff] %v6019_v14 }
 0x177   : > { %v1098_v47 = vpop.f32.mrf.mxu2  ;;  %v1257_v13 = vpop.f32.mrf.mxu3  ;;  %4413 = vmatmul.msk.f32.gmra.mxu1 %vm539_vm2, %v6022_v27 }
 0x178   : > { %v1172_v58 = vadd.f32 %v1098_v47, %v832_v1  ;;  %v1424_v57 = vpop.f32.mrf.mxu0  ;;  %v339_v1 = vrot.slane %v255_v35, 7  ;;  %v340_v47 = vrot.slane %v256_v7, 7  ;;  %v8566_v35 = vld [vmem:[#allocation59_spill] sm:$0xff]  ;;  %v6068_v7 = vsel %vm894_vm3, %v971_v49, %v973_v11 }
 0x17a   : > { %v1331_v42 = vadd.f32 %v1257_v13, %v1172_v58  ;;  %v835_v13 = vadd.f32 %v5711_v43, %v5701_v5  ;;  %v6055_v40 = vsel %vm291_vm0, 0.0, %v339_v1  ;;  %v408_v11 = vsel %vm291_vm0, %v340_v47, 0.0 }
 0x17b   : > { %4374 = vmatmul.msk.f32.gmra.mxu0 %vm539_vm2, %v8563_v34  ;;  %8565 = vst [vmem:[#allocation39_spill] sm:$0xff] %v6055_v40  ;;  %v1353_v43 = vrot.slane %v6055_v40, 1 }
 0x17c   : > { %4294 = vmatmul.msk.f32.gmra.mxu2 %vm539_vm2, %v6006_v39  ;;  %4334 = vmatmul.msk.f32.gmra.mxu3 %vm539_vm2, %v5389_v2  ;;  %v6041_v29 = vadd.f32 %v1421_v6, %v1331_v42  ;;  %v6052_v6 = vsel %vm291_vm0, %v339_v1, %v340_v47 }
 0x17d   : > { %v1354_v50 = vrot.slane %v6052_v6, 1 }
 0x17f   : > { %v1101_v58 = vpop.f32.mrf.mxu2  ;;  %v1260_v14 = vpop.f32.mrf.mxu3  ;;  %4414 = vmatmul.msk.f32.gmra.mxu1 %vm539_vm2, %v6044_v51 }
 0x180   : > { %v1173_v0 = vadd.f32 %v1101_v58, %v835_v13  ;;  %v1427_v34 = vpop.f32.mrf.mxu0 }
 0x182   : > { %v1332_v42 = vadd.f32 %v1260_v14, %v1173_v0  ;;  %v838_v14 = vadd.f32 %v5735_v26, %v5726_v10  ;;  %v4545_v10 = vld [vmem:[%s8216_s3 + $0xb8] sm:$0xff] }
 0x183   : > { %4375 = vmatmul.msk.f32.gmra.mxu0 %vm539_vm2, %v8566_v35  ;;  %2548 = vmatpush.msra.mxu1 %v4545_v10 }
 0x184   : > { %4295 = vmatmul.msk.f32.gmra.mxu2 %vm539_vm2, %v6022_v27  ;;  %4335 = vmatmul.msk.f32.gmra.mxu3 %vm539_vm2, %v5386_v45  ;;  %v6063_v5 = vadd.f32 %v1424_v57, %v1332_v42  ;;  %v1516_v57 = vrot.slane %v6055_v40, 2  ;;  %v6076_v42 = vsel %vm449_vm1, %v1353_v43, %v1354_v50  ;;  %v1356_v43 = vrot.slane %v408_v11, 1 }
 0x185   : > { %8568 = vst [vmem:[#allocation41_spill] sm:$0xff] %v6076_v42 }
 0x186   : > { %8567 = vst [vmem:[#allocation38_spill] sm:$0xff] %v6063_v5  ;;  %v1517_v5 = vrot.slane %v6052_v6, 2 }
 0x187   : > { %v1104_v1 = vpop.f32.mrf.mxu2  ;;  %v1263_v13 = vpop.f32.mrf.mxu3  ;;  %4415 = vmatmul.msk.f32.gmra.mxu1 %vm539_vm2, %v6068_v7 }
 0x188   : > { %v1174_v58 = vadd.f32 %v1104_v1, %v838_v14  ;;  %v1430_v0 = vpop.f32.mrf.mxu0  ;;  %v6092_v47 = vsel %vm894_vm3, %v1516_v57, %v1517_v5  ;;  %v841_v14 = vadd.f32 %v5760_v36, %v5747_v59 }
 0x18a   : > { %v1333_v49 = vadd.f32 %v1263_v13, %v1174_v58 }
 0x18b   : > { %4376 = vmatmul.msk.f32.gmra.mxu0 %vm539_vm2, %v6076_v42  ;;  %v6099_v42 = vsel %vm449_vm1, %v1354_v50, %v1356_v43  ;;  %v844_v50 = vadd.f32 %v5778_v8, %v5769_v30 }
 0x18c   : > { %4296 = vmatmul.msk.f32.gmra.mxu2 %vm539_vm2, %v6044_v51  ;;  %4336 = vmatmul.msk.f32.gmra.mxu3 %vm539_vm2, %v6055_v40  ;;  %v6089_v26 = vadd.f32 %v1427_v34, %v1333_v49  ;;  %v1519_v40 = vrot.slane %v408_v11, 2 }
 0x18e   : > { %v6110_v36 = vsel %vm894_vm3, %v1517_v5, %v1519_v40 }
 0x18f   : > { %v1107_v1 = vpop.f32.mrf.mxu2  ;;  %v1266_v13 = vpop.f32.mrf.mxu3  ;;  %4416 = vmatmul.msk.f32.gmra.mxu1 %vm539_vm2, %v6092_v47 }
 0x190   : > { %v1175_v58 = vadd.f32 %v1107_v1, %v841_v14  ;;  %v1433_v10 = vpop.f32.mrf.mxu0  ;;  %v4544_v1 = vld [vmem:[%s8216_s3 + $0xb0] sm:$0xff] }
 0x191   : > { %2549 = vmatpush.msra.mxu1 %v4544_v1 }
 0x192   : > { %v1334_v34 = vadd.f32 %v1266_v13, %v1175_v58  ;;  %v8569_v58 = vld [vmem:[#allocation12_spill] sm:$0xff] }
 0x193   : > { %4377 = vmatmul.msk.f32.gmra.mxu0 %vm539_vm2, %v6099_v42 }
 0x194   : > { %4297 = vmatmul.msk.f32.gmra.mxu2 %vm539_vm2, %v6068_v7  ;;  %4337 = vmatmul.msk.f32.gmra.mxu3 %vm539_vm2, %v6052_v6  ;;  %v6107_v59 = vadd.f32 %v1430_v0, %v1334_v34  ;;  %v8572_v34 = vld [vmem:[#allocation62_spill] sm:$0xff] }
 0x197   : > { %v1110_v57 = vpop.f32.mrf.mxu2  ;;  %v1269_v11 = vpop.f32.mrf.mxu3  ;;  %4417 = vmatmul.msk.f32.gmra.mxu1 %vm539_vm2, %v6110_v36 }
 0x198   : > { %v1176_v49 = vadd.f32 %v1110_v57, %v844_v50  ;;  %v1436_v43 = vpop.f32.mrf.mxu0 }
 0x19a   : > { %v1335_v14 = vadd.f32 %v1269_v11, %v1176_v49  ;;  %v8574_v49 = vld [vmem:[#allocation22_spill] sm:$0xff] }
 0x19b   : > { %4506 = vmatmul.msk.f32.vlgmr.msra.gmra.mxu0 %vm539_vm2, %v5512_v62  ;;  %v8570_v62 = vld [vmem:[#allocation16_spill] sm:$0xff] }
 0x19c   : > { %4426 = vmatmul.msk.f32.vlgmr.msra.gmra.mxu2 %vm539_vm2, %v5043_v19  ;;  %4466 = vmatmul.msk.f32.vlgmr.msra.gmra.mxu3 %vm539_vm2, %v5067_v31  ;;  %v6125_v30 = vadd.f32 %v1433_v10, %v1335_v14 }
 0x19f   : > { %v1113_v8 = vpop.f32.mrf.mxu2  ;;  %v1272_v40 = vpop.f32.mrf.mxu3 }
 0x1a0   : > { %v1177_v5 = vadd.f32 %v1113_v8, %v5477_v54  ;;  %v1439_v0 = vpop.f32.mrf.mxu0  ;;  %v4543_v54 = vld [vmem:[%s8216_s3 + $0xa8] sm:$0xff] }
 0x1a1   : > { %2550 = vmatpush.msra.mxu1 %v4543_v54  ;;  %v8576_v8 = vld [vmem:[#allocation63_spill] sm:$0xff] }
 0x1a2   : > { %v1336_v13 = vadd.f32 %v1272_v40, %v1177_v5 }
 0x1a3   : > { %4507 = vmatmul.msk.f32.gmra.mxu0 %vm539_vm2, %v5529_v44  ;;  %v8573_v44 = vld [vmem:[#allocation19_spill] sm:$0xff] }
 0x1a4   : > { %4427 = vmatmul.msk.f32.gmra.mxu2 %vm539_vm2, %v8569_v58  ;;  %4467 = vmatmul.msk.f32.gmra.mxu3 %vm539_vm2, %v8570_v62  ;;  %v6134_v19 = vadd.f32 %v1436_v43, %v1336_v13  ;;  %v6149_v13 = vpop.f32.mrf.mxu1  ;;  %v8577_v62 = vld [vmem:[#allocation66_spill] sm:$0xff] }
 0x1a6   : > { %8571 = vst [vmem:[#allocation42_spill] sm:$0xff] %v6134_v19 }
 0x1a7   : > { %v1116_v31 = vpop.f32.mrf.mxu2  ;;  %v1275_v10 = vpop.f32.mrf.mxu3 }
 0x1a8   : > { %v1178_v50 = vadd.f32 %v1116_v31, %v8572_v34  ;;  %v1442_v57 = vpop.f32.mrf.mxu0  ;;  %v8579_v31 = vld [vmem:[#allocation25_spill] sm:$0xff] }
 0x1aa   : > { %v1337_v11 = vadd.f32 %v1275_v10, %v1178_v50  ;;  %v8581_v50 = vld [vmem:[#allocation64_spill] sm:$0xff] }
 0x1ab   : > { %4508 = vmatmul.msk.f32.gmra.mxu0 %vm539_vm2, %v5548_v16  ;;  %v8578_v16 = vld [vmem:[#allocation18_spill] sm:$0xff] }
 0x1ac   : > { %4428 = vmatmul.msk.f32.gmra.mxu2 %vm539_vm2, %v8573_v44  ;;  %4468 = vmatmul.msk.f32.gmra.mxu3 %vm539_vm2, %v8574_v49  ;;  %v6146_v43 = vadd.f32 %v1439_v0, %v1337_v11  ;;  %v4542_v49 = vld [vmem:[%s8216_s3 + $0xa0] sm:$0xff] }
 0x1ad   : > { %2551 = vmatpush.msra.mxu1 %v4542_v49 }
 0x1ae   : > { %8575 = vst [vmem:[#allocation44_spill] sm:$0xff] %v6146_v43 }
 0x1af   : > { %v1119_v14 = vpop.f32.mrf.mxu2  ;;  %v1278_v1 = vpop.f32.mrf.mxu3 }
 0x1b0   : > { %v1179_v40 = vadd.f32 %v1119_v14, %v8576_v8  ;;  %v1445_v5 = vpop.f32.mrf.mxu0  ;;  %v6165_v14 = vpop.f32.mrf.mxu1 }
 0x1b2   : > { %v1338_v58 = vadd.f32 %v1278_v1, %v1179_v40  ;;  %v8582_v1 = vld [vmem:[#allocation28_spill] sm:$0xff] }
 0x1b3   : > { %4509 = vmatmul.msk.f32.gmra.mxu0 %vm539_vm2, %v8577_v62  ;;  %v8585_v62 = vld [vmem:[#allocation65_spill] sm:$0xff] }
 0x1b4   : > { %4429 = vmatmul.msk.f32.gmra.mxu2 %vm539_vm2, %v8578_v16  ;;  %4469 = vmatmul.msk.f32.gmra.mxu3 %vm539_vm2, %v8579_v31  ;;  %v6157_v10 = vadd.f32 %v1442_v57, %v1338_v58  ;;  %v8583_v57 = vld [vmem:[#allocation31_spill] sm:$0xff] }
 0x1b6   : > { %8580 = vst [vmem:[#allocation50_spill] sm:$0xff] %v6157_v10 }
 0x1b7   : > { %v1122_v0 = vpop.f32.mrf.mxu2  ;;  %v1281_v34 = vpop.f32.mrf.mxu3 }
 0x1b8   : > { %v1180_v11 = vadd.f32 %v1122_v0, %v8581_v50  ;;  %v1448_v54 = vpop.f32.mrf.mxu0  ;;  %v8588_v50 = vld [vmem:[#allocation34_spill] sm:$0xff]  ;;  %v6182_v49 = vpop.f32.mrf.mxu1 }
 0x1ba   : > { %v1339_v44 = vadd.f32 %v1281_v34, %v1180_v11  ;;  %v8586_v34 = vld [vmem:[#allocation69_spill] sm:$0xff] }
 0x1bb   : > { %4510 = vmatmul.msk.f32.gmra.mxu0 %vm539_vm2, %v5594_v60  ;;  %v8587_v60 = vld [vmem:[#allocation27_spill] sm:$0xff] }
 0x1bc   : > { %4430 = vmatmul.msk.f32.gmra.mxu2 %vm539_vm2, %v8582_v1  ;;  %4470 = vmatmul.msk.f32.gmra.mxu3 %vm539_vm2, %v8583_v57  ;;  %v6171_v8 = vadd.f32 %v1445_v5, %v1339_v44  ;;  %v8590_v1 = vld [vmem:[#allocation67_spill] sm:$0xff] }
 0x1be   : > { %8584 = vst [vmem:[#allocation57_spill] sm:$0xff] %v6171_v8 }
 0x1bf   : > { %v1125_v40 = vpop.f32.mrf.mxu2  ;;  %v1284_v58 = vpop.f32.mrf.mxu3 }
 0x1c0   : > { %v1181_v16 = vadd.f32 %v1125_v40, %v8585_v62  ;;  %v1451_v31 = vpop.f32.mrf.mxu0 }
 0x1c2   : > { %v1340_v0 = vadd.f32 %v1284_v58, %v1181_v16  ;;  %v4541_v58 = vld [vmem:[%s8216_s3 + $0x98] sm:$0xff] }
 0x1c3   : > { %4511 = vmatmul.msk.f32.gmra.mxu0 %vm539_vm2, %v8586_v34  ;;  %2552 = vmatpush.msra.mxu1 %v4541_v58  ;;  %v8591_v16 = vld [vmem:[#allocation37_spill] sm:$0xff]  ;;  %v8597_v58 = vld [vmem:[#allocation43_spill] sm:$0xff] }
 0x1c4   : > { %4431 = vmatmul.msk.f32.gmra.mxu2 %vm539_vm2, %v8587_v60  ;;  %4471 = vmatmul.msk.f32.gmra.mxu3 %vm539_vm2, %v8588_v50  ;;  %v6180_v11 = vadd.f32 %v1448_v54, %v1340_v0  ;;  %v8592_v54 = vld [vmem:[#allocation40_spill] sm:$0xff]  ;;  %v6196_v50 = vpop.f32.mrf.mxu1 }
 0x1c6   : > { %8589 = vst [vmem:[#allocation59_spill] sm:$0xff] %v6180_v11  ;;  %v8595_v11 = vld [vmem:[#allocation72_spill] sm:$0xff] }
 0x1c7   : > { %v1128_v5 = vpop.f32.mrf.mxu2  ;;  %v1287_v44 = vpop.f32.mrf.mxu3 }
 0x1c8   : > { %v1182_v57 = vadd.f32 %v1128_v5, %v8590_v1  ;;  %v1454_v40 = vpop.f32.mrf.mxu0  ;;  %v8594_v5 = vld [vmem:[#allocation68_spill] sm:$0xff] }
 0x1ca   : > { %v1341_v62 = vadd.f32 %v1287_v44, %v1182_v57 }
 0x1cb   : > { %4512 = vmatmul.msk.f32.gmra.mxu0 %vm539_vm2, %v5631_v3  ;;  %v8596_v3 = vld [vmem:[#allocation36_spill] sm:$0xff] }
 0x1cc   : > { %4432 = vmatmul.msk.f32.gmra.mxu2 %vm539_vm2, %v8591_v16  ;;  %4472 = vmatmul.msk.f32.gmra.mxu3 %vm539_vm2, %v8592_v54  ;;  %v6194_v0 = vadd.f32 %v1451_v31, %v1341_v62  ;;  %v8599_v54 = vld [vmem:[#allocation70_spill] sm:$0xff]  ;;  %v6208_v10 = vpop.f32.mrf.mxu1 }
 0x1ce   : > { %8593 = vst [vmem:[#allocation12_spill] sm:$0xff] %v6194_v0 }
 0x1cf   : > { %v1131_v34 = vpop.f32.mrf.mxu2  ;;  %v1290_v60 = vpop.f32.mrf.mxu3 }
 0x1d0   : > { %v1183_v44 = vadd.f32 %v1131_v34, %v8594_v5  ;;  %v1457_v1 = vpop.f32.mrf.mxu0 }
 0x1d2   : > { %v1342_v57 = vadd.f32 %v1290_v60, %v1183_v44  ;;  %v8600_v60 = vld [vmem:[#allocation46_spill] sm:$0xff] }
 0x1d3   : > { %4513 = vmatmul.msk.f32.gmra.mxu0 %vm539_vm2, %v8595_v11  ;;  %v4540_v11 = vld [vmem:[%s8216_s3 + $0x90] sm:$0xff] }
 0x1d4   : > { %4433 = vmatmul.msk.f32.gmra.mxu2 %vm539_vm2, %v8596_v3  ;;  %4473 = vmatmul.msk.f32.gmra.mxu3 %vm539_vm2, %v8597_v58  ;;  %v6205_v16 = vadd.f32 %v1454_v40, %v1342_v57  ;;  %v8601_v40 = vld [vmem:[#allocation48_spill] sm:$0xff]  ;;  %v8603_v3 = vld [vmem:[#allocation71_spill] sm:$0xff] }
 0x1d5   : > { %2553 = vmatpush.msra.mxu1 %v4540_v11  ;;  %v8606_v11 = vld [vmem:[#allocation51_spill] sm:$0xff] }
 0x1d6   : > { %8598 = vst [vmem:[#allocation16_spill] sm:$0xff] %v6205_v16  ;;  %v8614_v16 = vld [vmem:[#allocation79_spill] sm:$0xff] }
 0x1d7   : > { %v1134_v31 = vpop.f32.mrf.mxu2  ;;  %v1293_v62 = vpop.f32.mrf.mxu3 }
 0x1d8   : > { %v1184_v0 = vadd.f32 %v1134_v31, %v8599_v54  ;;  %v1460_v8 = vpop.f32.mrf.mxu0  ;;  %v6224_v54 = vpop.f32.mrf.mxu1 }
 0x1da   : > { %v1343_v34 = vadd.f32 %v1293_v62, %v1184_v0  ;;  %v8604_v62 = vld [vmem:[#allocation75_spill] sm:$0xff] }
 0x1db   : > { %4514 = vmatmul.msk.f32.gmra.mxu0 %vm539_vm2, %v5677_v48  ;;  %v8605_v48 = vld [vmem:[#allocation45_spill] sm:$0xff] }
 0x1dc   : > { %4434 = vmatmul.msk.f32.gmra.mxu2 %vm539_vm2, %v8600_v60  ;;  %4474 = vmatmul.msk.f32.gmra.mxu3 %vm539_vm2, %v8601_v40  ;;  %v6219_v5 = vadd.f32 %v1457_v1, %v1343_v34  ;;  %v8608_v40 = vld [vmem:[#allocation73_spill] sm:$0xff] }
 0x1de   : > { %8602 = vst [vmem:[#allocation62_spill] sm:$0xff] %v6219_v5 }
 0x1df   : > { %v1137_v44 = vpop.f32.mrf.mxu2  ;;  %v1296_v57 = vpop.f32.mrf.mxu3 }
 0x1e0   : > { %v1185_v0 = vadd.f32 %v1137_v44, %v8603_v3  ;;  %v1463_v58 = vpop.f32.mrf.mxu0 }
 0x1e2   : > { %v1344_v31 = vadd.f32 %v1296_v57, %v1185_v0  ;;  %v4539_v57 = vld [vmem:[%s8216_s3 + $0x88] sm:$0xff]  ;;  %v8609_v0 = vld [vmem:[#allocation77_spill] sm:$0xff] }
 0x1e3   : > { %4515 = vmatmul.msk.f32.gmra.mxu0 %vm539_vm2, %v8604_v62  ;;  %2554 = vmatpush.msra.mxu1 %v4539_v57  ;;  %v8610_v62 = vld [vmem:[#allocation54_spill] sm:$0xff]  ;;  %v8615_v57 = vld [vmem:[#allocation53_spill] sm:$0xff] }
 0x1e4   : > { %4435 = vmatmul.msk.f32.gmra.mxu2 %vm539_vm2, %v8605_v48  ;;  %4475 = vmatmul.msk.f32.gmra.mxu3 %vm539_vm2, %v8606_v11  ;;  %v6230_v60 = vadd.f32 %v1460_v8, %v1344_v31  ;;  %v8611_v48 = vld [vmem:[#allocation55_spill] sm:$0xff]  ;;  %v6244_v31 = vpop.f32.mrf.mxu1 }
 0x1e6   : > { %8607 = vst [vmem:[#allocation19_spill] sm:$0xff] %v6230_v60 }
 0x1e7   : > { %v1140_v1 = vpop.f32.mrf.mxu2  ;;  %v1299_v34 = vpop.f32.mrf.mxu3 }
 0x1e8   : > { %v1186_v5 = vadd.f32 %v1140_v1, %v8608_v40  ;;  %v1466_v44 = vpop.f32.mrf.mxu0  ;;  %v8613_v1 = vld [vmem:[#allocation74_spill] sm:$0xff] }
 0x1ea   : > { %v1345_v3 = vadd.f32 %v1299_v34, %v1186_v5 }
 0x1eb   : > { %4516 = vmatmul.msk.f32.gmra.mxu0 %vm539_vm2, %v8609_v0  ;;  %v8616_v0 = vld [vmem:[#allocation58_spill] sm:$0xff] }
 0x1ec   : > { %4436 = vmatmul.msk.f32.gmra.mxu2 %vm539_vm2, %v8610_v62  ;;  %4476 = vmatmul.msk.f32.gmra.mxu3 %vm539_vm2, %v8611_v48  ;;  %v6242_v8 = vadd.f32 %v1463_v58, %v1345_v3  ;;  %v6255_v48 = vpop.f32.mrf.mxu1 }
 0x1ee   : > { %8612 = vst [vmem:[#allocation22_spill] sm:$0xff] %v6242_v8  ;;  %v8618_v8 = vld [vmem:[#allocation76_spill] sm:$0xff] }
 0x1ef   : > { %v1143_v11 = vpop.f32.mrf.mxu2  ;;  %v1302_v5 = vpop.f32.mrf.mxu3 }
 0x1f0   : > { %v1187_v34 = vadd.f32 %v1143_v11, %v8613_v1  ;;  %v1469_v40 = vpop.f32.mrf.mxu0 }
 0x1f2   : > { %v1346_v60 = vadd.f32 %v1302_v5, %v1187_v34  ;;  %v8619_v5 = vld [vmem:[#allocation81_spill] sm:$0xff] }
 0x1f3   : > { %4517 = vmatmul.msk.f32.gmra.mxu0 %vm539_vm2, %v8614_v16  ;;  %v4538_v16 = vld [vmem:[%s8216_s3 + $0x80] sm:$0xff]  ;;  %v8620_v34 = vld [vmem:[#allocation5_spill] sm:$0xff] }
 0x1f4   : > { %4437 = vmatmul.msk.f32.gmra.mxu2 %vm539_vm2, %v8615_v57  ;;  %4477 = vmatmul.msk.f32.gmra.mxu3 %vm539_vm2, %v8616_v0  ;;  %v6253_v62 = vadd.f32 %v1466_v44, %v1346_v60  ;;  %v8621_v60 = vld [vmem:[#allocation7_spill] sm:$0xff]  ;;  %v4601_v57 = vld [vmem:[%s8216_s3 + $0x178] sm:$0xff] }
 0x1f5   : > { %2555 = vmatpush.msra.mxu1 %v4538_v16  ;;  %2890 = vmatpush.msrb.mxu3 %v4601_v57 }
 0x1f6   : > { %8617 = vst [vmem:[#allocation63_spill] sm:$0xff] %v6253_v62 }
 0x1f7   : > { %v1146_v58 = vpop.f32.mrf.mxu2  ;;  %v1305_v3 = vpop.f32.mrf.mxu3 }
 0x1f8   : > { %v1188_v43 = vadd.f32 %v1146_v58, %v8618_v8  ;;  %v1472_v11 = vpop.f32.mrf.mxu0  ;;  %v8623_v8 = vld [vmem:[#allocation6_spill] sm:$0xff] }
 0x1f9   : > { %2556 = vmatmul.f32.vlgmr.msra.gmra.mxu1 %v8623_v8 }
 0x1fa   : > { %v1347_v1 = vadd.f32 %v1305_v3, %v1188_v43  ;;  %v2385_v43 = vld [vmem:[%s8216_s3 + $0x78] sm:$0xff]  ;;  %v8624_v3 = vld [vmem:[#allocation78_spill] sm:$0xff] }
 0x1fb   : > { %4518 = vmatmul.msk.f32.gmra.mxu0 %vm539_vm2, %v8619_v5  ;;  %2653 = vmatpush.msrb.mxu2 %v2385_v43 }
 0x1fc   : > { %4438 = vmatmul.msk.f32.gmra.mxu2 %vm539_vm2, %v8620_v34  ;;  %4478 = vmatmul.msk.f32.gmra.mxu3 %vm539_vm2, %v8621_v60  ;;  %v6267_v44 = vadd.f32 %v1469_v40, %v1347_v1  ;;  %v6277_v34 = vpop.f32.mrf.mxu1  ;;  %v8626_v1 = vld [vmem:[#allocation4_spill] sm:$0xff]  ;;  %v8627_v60 = vld [vmem:[#allocation9_spill] sm:$0xff] }
 0x1fd   : > { %8625 = vst [vmem:[#allocation18_spill] sm:$0xff] %v6277_v34 }
 0x1fe   : > { %8622 = vst [vmem:[#allocation66_spill] sm:$0xff] %v6267_v44  ;;  %v8629_v44 = vld [vmem:[#allocation8_spill] sm:$0xff] }
 0x1ff   : > { %v1149_v0 = vpop.f32.mrf.mxu2  ;;  %v1308_v58 = vpop.f32.mrf.mxu3 }
 0x200   : > { %v1189_v16 = vadd.f32 %v1149_v0, %v8624_v3  ;;  %v1475_v5 = vpop.f32.mrf.mxu0  ;;  %v8630_v0 = vld [vmem:[#allocation80_spill] sm:$0xff] }
 0x201   : > { %2559 = vmatmul.f32.gmra.mxu1 %v8629_v44 }
 0x202   : > { %v1348_v40 = vadd.f32 %v1308_v58, %v1189_v16  ;;  %v8631_v16 = vld [vmem:[#allocation10_spill] sm:$0xff] }
 0x203   : > { %4519 = vmatmul.msk.f32.gmra.mxu0 %vm539_vm2, %v5781_v23  ;;  %v4617_v23 = vld [vmem:[%s8216_s3 + $0x1f8] sm:$0xff] }
 0x204   : > { %4439 = vmatmul.msk.f32.gmra.mxu2 %vm539_vm2, %v8626_v1  ;;  %4479 = vmatmul.msk.f32.gmra.mxu3 %vm539_vm2, %v8627_v60  ;;  %v6285_v43 = vadd.f32 %v1472_v11, %v1348_v40  ;;  %v6294_v58 = vpop.f32.mrf.mxu1  ;;  %v8632_v11 = vld [vmem:[#allocation11_spill] sm:$0xff]  ;;  %v8634_v60 = vld [vmem:[#allocation82_spill] sm:$0xff] }
 0x205   : > { %3052 = vmatpush.msrb.mxu0 %v4617_v23 }
 0x206   : > { %8628 = vst [vmem:[#allocation25_spill] sm:$0xff] %v6285_v43 }
 0x207   : > { %v1152_v57 = vpop.f32.mrf.mxu2  ;;  %v1311_v62 = vpop.f32.mrf.mxu3 }
 0x208   : > { %v1190_v3 = vadd.f32 %v1152_v57, %v8630_v0  ;;  %v1478_v19 = vpop.f32.mrf.mxu0 }
 0x20a   : > { %v1349_v34 = vadd.f32 %v1311_v62, %v1190_v3 }
 0x20b   : > { %4520 = vmatmul.msk.f32.gmra.mxu0 %vm539_vm2, %v5799_v9  ;;  %v4665_v9 = vld [vmem:[%s8216_s3 + $0x278] sm:$0xff] }
 0x20c   : > { %4440 = vmatmul.msk.f32.gmra.mxu2 %vm539_vm2, %v8631_v16  ;;  %4480 = vmatmul.msk.f32.gmra.mxu3 %vm539_vm2, %v8632_v11  ;;  %v6300_v40 = vadd.f32 %v1475_v5, %v1349_v34  ;;  %v2384_v16 = vld [vmem:[%s8216_s3 + $0x70] sm:$0xff]  ;;  %v6320_v23 = vpop.f32.mrf.mxu1 }
 0x20d   : > { %v4600_v5 = vld [vmem:[%s8216_s3 + $0x170] sm:$0xff]  ;;  %3223 = vmatpush.msrb.mxu1 %v4665_v9  ;;  %2654 = vmatpush.msrb.mxu2 %v2384_v16 }
 0x20e   : > { %8633 = vst [vmem:[#allocation64_spill] sm:$0xff] %v6300_v40  ;;  %2891 = vmatpush.msrb.mxu3 %v4600_v5  ;;  %v8640_v5 = vld [vmem:[#allocation84_spill] sm:$0xff] }
 0x20f   : > { %v1155_v1 = vpop.f32.mrf.mxu2  ;;  %v1314_v62 = vpop.f32.mrf.mxu3 }
 0x210   : > { %v1191_v57 = vadd.f32 %v1155_v1, %v8634_v60  ;;  %v1481_v0 = vpop.f32.mrf.mxu0 }
 0x212   : > { %v1350_v3 = vadd.f32 %v1314_v62, %v1191_v57  ;;  %v8636_v62 = vld [vmem:[#allocation83_spill] sm:$0xff] }
 0x213   : > { %4521 = vmatmul.msk.f32.gmra.mxu0 %vm539_vm2, %v5819_v24  ;;  %v4616_v24 = vld [vmem:[%s8216_s3 + $0x1f0] sm:$0xff] }
 0x214   : > { %4441 = vmatmul.msk.f32.gmra.mxu2 %vm539_vm2, %v4981_v55  ;;  %4481 = vmatmul.msk.f32.gmra.mxu3 %vm539_vm2, %v5037_v17  ;;  %v6318_v34 = vadd.f32 %v1478_v19, %v1350_v3  ;;  %v8637_v55 = vld [vmem:[#allocation13_spill] sm:$0xff]  ;;  %v8638_v17 = vld [vmem:[#allocation14_spill] sm:$0xff]  ;;  %v6334_v16 = vpop.f32.mrf.mxu1 }
 0x215   : > { %3053 = vmatpush.msrb.mxu0 %v4616_v24  ;;  %v4599_v24 = vld [vmem:[%s8216_s3 + $0x168] sm:$0xff] }
 0x216   : > { %8635 = vst [vmem:[#allocation28_spill] sm:$0xff] %v6318_v34  ;;  %2892 = vmatpush.msrb.mxu3 %v4599_v24 }
 0x217   : > { %v1158_v11 = vpop.f32.mrf.mxu2  ;;  %v1317_v1 = vpop.f32.mrf.mxu3 }
 0x218   : > { %v1192_v60 = vadd.f32 %v1158_v11, %v8636_v62  ;;  %v2013_v57 = vpop.f32.mrf.mxu0 }
 0x21a   : > { %v1351_v40 = vadd.f32 %v1317_v1, %v1192_v60 }
 0x21b   : > { %4522 = vmatmul.msk.f32.gmra.mxu0 %vm539_vm2, %v5842_v46  ;;  %v6340_v46 = vld [vmem:[%s8215_s2] ss:$0 sm:$0xff] }
 0x21c   : > { %4442 = vmatmul.msk.f32.gmra.mxu2 %vm539_vm2, %v8637_v55  ;;  %4482 = vmatmul.msk.f32.gmra.mxu3 %vm539_vm2, %v8638_v17  ;;  %v6332_v19 = vadd.f32 %v1481_v0, %v1351_v40  ;;  %v4664_v40 = vld [vmem:[%s8216_s3 + $0x270] sm:$0xff]  ;;  %v2383_v0 = vld [vmem:[%s8216_s3 + $0x68] sm:$0xff] }
 0x21d   : > { %3224 = vmatpush.msrb.mxu1 %v4664_v40  ;;  %2655 = vmatpush.msrb.mxu2 %v2383_v0 }
 0x21e   : > { %8639 = vst [vmem:[#allocation31_spill] sm:$0xff] %v6332_v19 }
 0x21f   : > { %v1705_v3 = vpop.f32.mrf.mxu2  ;;  %v1859_v9 = vpop.f32.mrf.mxu3 }
 0x220   : > { %v1801_v11 = vadd.f32 %v1705_v3, %v8640_v5  ;;  %v2016_v1 = vpop.f32.mrf.mxu0  ;;  %v6359_v3 = vpop.f32.mrf.mxu1 }
 0x222   : > { %v1955_v62 = vadd.f32 %v1859_v9, %v1801_v11  ;;  %v4615_v11 = vld [vmem:[%s8216_s3 + $0x1e8] sm:$0xff] }
 0x223   : > { %4523 = vmatmul.msk.f32.gmra.mxu0 %vm539_vm2, %v5858_v12 }
 0x224   : > { %v2109_v60 = vadd.f32 %v2013_v57, %v1955_v62  ;;  %4443 = vmatmul.msk.f32.gmra.mxu2 %vm539_vm2, %v5046_v20  ;;  %4483 = vmatmul.msk.f32.gmra.mxu3 %vm539_vm2, %v8535_v56  ;;  %v8641_v56 = vld [vmem:[#allocation85_spill] sm:$0xff] }
 0x225   : > { %3054 = vmatpush.msrb.mxu0 %v4615_v11 }
 0x226   : > { %v2144_v12 = vadd.f32 %v6340_v46, %v2109_v60  ;;  %v8642_v60 = vld [vmem:[#allocation23_spill] sm:$0xff] }
 0x227   : > { %v1708_v20 = vpop.f32.mrf.mxu2  ;;  %v1862_v57 = vpop.f32.mrf.mxu3 }
 0x228   : > { %v1802_v55 = vadd.f32 %v1708_v20, %v8641_v56  ;;  %v2019_v17 = vpop.f32.mrf.mxu0  ;;  %v2176_v9 = vmax.f32 %v2144_v12, 0.0 }
 0x22a   : > { %v1956_v5 = vadd.f32 %v1862_v57, %v1802_v55  ;;  %v6370_v40 = vrot.slane %v2176_v9, 7  ;;  %v8643_v57 = vld [vmem:[#allocation15_spill] sm:$0xff] }
 0x22b   : > { %4524 = vmatmul.msk.f32.gmra.mxu0 %vm539_vm2, %v5878_v37 }
 0x22c   : > { %v2110_v62 = vadd.f32 %v2016_v1, %v1956_v5  ;;  %4444 = vmatmul.msk.f32.gmra.mxu2 %vm539_vm2, %v8537_v22  ;;  %4484 = vmatmul.msk.f32.gmra.mxu3 %vm539_vm2, %v8642_v60  ;;  %v6376_v1 = vsel %vm291_vm0, 0.0, %v6370_v40  ;;  %v6380_v22 = vpop.f32.mrf.mxu1  ;;  %v8644_v5 = vld [vmem:[#allocation26_spill] sm:$0xff] }
 0x22e   : > { %v2145_v0 = vadd.f32 %v6340_v46, %v2110_v62  ;;  %v4663_v62 = vld [vmem:[%s8216_s3 + $0x268] sm:$0xff] }
 0x22f   : > { %v1711_v24 = vpop.f32.mrf.mxu2  ;;  %v1865_v12 = vpop.f32.mrf.mxu3  ;;  %3225 = vmatpush.msrb.mxu1 %v4663_v62 }
 0x230   : > { %v2177_v20 = vmax.f32 %v2145_v0, 0.0  ;;  %v1803_v56 = vadd.f32 %v1711_v24, %v8643_v57  ;;  %v2022_v55 = vpop.f32.mrf.mxu0  ;;  %v8646_v57 = vld [vmem:[#allocation17_spill] sm:$0xff] }
 0x232   : > { %v2242_v19 = vrot.slane %v2177_v20, 7  ;;  %v1957_v37 = vadd.f32 %v1865_v12, %v1803_v56 }
 0x233   : > { %4525 = vmatmul.msk.f32.gmra.mxu0 %vm539_vm2, %v5900_v4  ;;  %v2382_v4 = vld [vmem:[%s8216_s3 + $0x60] sm:$0xff] }
 0x234   : > { %v2111_v9 = vadd.f32 %v2019_v17, %v1957_v37  ;;  %4445 = vmatmul.msk.f32.gmra.mxu2 %vm539_vm2, %v8538_v63  ;;  %4485 = vmatmul.msk.f32.gmra.mxu3 %vm539_vm2, %v8644_v5  ;;  %v6388_v11 = vsel %vm291_vm0, %v6370_v40, %v2242_v19  ;;  %v4598_v17 = vld [vmem:[%s8216_s3 + $0x160] sm:$0xff]  ;;  %v2416_v63 = vrot.slane %v6376_v1, 1  ;;  %v6408_v5 = vsel %vm291_vm0, %v2242_v19, 0.0  ;;  %v6420_v19 = vpop.f32.mrf.mxu1 }
 0x235   : > { %v2417_v60 = vrot.slane %v6388_v11, 1  ;;  %2656 = vmatpush.msrb.mxu2 %v2382_v4  ;;  %2893 = vmatpush.msrb.mxu3 %v4598_v17  ;;  %v2419_v62 = vrot.slane %v6408_v5, 1  ;;  %v8647_v17 = vld [vmem:[#allocation30_spill] sm:$0xff] }
 0x236   : > { %v2146_v0 = vadd.f32 %v6340_v46, %v2111_v9  ;;  %v4614_v9 = vld [vmem:[%s8216_s3 + $0x1e0] sm:$0xff] }
 0x237   : > { %v1714_v24 = vpop.f32.mrf.mxu2  ;;  %v1868_v12 = vpop.f32.mrf.mxu3  ;;  %v6403_v20 = vsel %vm449_vm1, %v2416_v63, %v2417_v60  ;;  %v8648_v63 = vld [vmem:[#allocation32_spill] sm:$0xff]  ;;  %3055 = vmatpush.msrb.mxu0 %v4614_v9 }
 0x238   : > { %8645 = vst [vmem:[#allocation65_spill] sm:$0xff] %v6403_v20  ;;  %v1804_v56 = vadd.f32 %v1714_v24, %v8646_v57  ;;  %2562 = vmatmul.f32.gmra.mxu1 %v6403_v20  ;;  %v2025_v37 = vpop.f32.mrf.mxu0  ;;  %v2178_v34 = vmax.f32 %v2146_v0, 0.0 }
 0x23a   : > { %v1958_v43 = vadd.f32 %v1868_v12, %v1804_v56  ;;  %v6422_v0 = vrot.slane %v2178_v34, 7 }
 0x23b   : > { %4526 = vmatmul.msk.f32.gmra.mxu0 %vm539_vm2, %v5923_v38  ;;  %v6426_v38 = vsel %vm449_vm1, %v2417_v60, %v2419_v62  ;;  %v4662_v62 = vld [vmem:[%s8216_s3 + $0x260] sm:$0xff] }
 0x23c   : > { %v2112_v4 = vadd.f32 %v2022_v55, %v1958_v43  ;;  %4446 = vmatmul.msk.f32.gmra.mxu2 %vm539_vm2, %v8647_v17  ;;  %4486 = vmatmul.msk.f32.gmra.mxu3 %vm539_vm2, %v8648_v63  ;;  %8649 = vst [vmem:[#allocation69_spill] sm:$0xff] %v6422_v0  ;;  %v8651_v43 = vld [vmem:[#allocation21_spill] sm:$0xff]  ;;  %v6432_v9 = vsel %vm291_vm0, 0.0, %v6422_v0 }
 0x23d   : > { %8650 = vst [vmem:[#allocation27_spill] sm:$0xff] %v6426_v38  ;;  %3226 = vmatpush.msrb.mxu1 %v4662_v62 }
 0x23e   : > { %v2147_v24 = vadd.f32 %v6340_v46, %v2112_v4  ;;  %v2381_v4 = vld [vmem:[%s8216_s3 + $0x58] sm:$0xff] }
 0x23f   : > { %v1717_v12 = vpop.f32.mrf.mxu2  ;;  %v1871_v57 = vpop.f32.mrf.mxu3  ;;  %2657 = vmatpush.msrb.mxu2 %v2381_v4 }
 0x240   : > { %v2179_v56 = vmax.f32 %v2147_v24, 0.0  ;;  %v1805_v55 = vadd.f32 %v1717_v12, %v8651_v43  ;;  %2565 = vmatmul.f32.gmra.mxu1 %v6426_v38  ;;  %v2028_v17 = vpop.f32.mrf.mxu0  ;;  %v8654_v43 = vld [vmem:[#allocation20_spill] sm:$0xff] }
 0x242   : > { %v2245_v20 = vrot.slane %v2179_v56, 7  ;;  %v1959_v63 = vadd.f32 %v1871_v57, %v1805_v55  ;;  %v6459_v56 = vpop.f32.mrf.mxu1 }
 0x243   : > { %4527 = vmatmul.msk.f32.gmra.mxu0 %vm539_vm2, %v5939_v32  ;;  %v4597_v32 = vld [vmem:[%s8216_s3 + $0x158] sm:$0xff] }
 0x244   : > { %v6438_v34 = vsel %vm291_vm0, %v6422_v0, %v2245_v20  ;;  %v2113_v60 = vadd.f32 %v2025_v37, %v1959_v63  ;;  %4447 = vmatmul.msk.f32.gmra.mxu2 %vm539_vm2, %v8545_v33  ;;  %4487 = vmatmul.msk.f32.gmra.mxu3 %vm539_vm2, %v8549_v15  ;;  %v2421_v37 = vrot.slane %v6432_v9, 1  ;;  %v6464_v38 = vsel %vm291_vm0, %v2245_v20, 0.0 }
 0x245   : > { %8652 = vst [vmem:[#allocation34_spill] sm:$0xff] %v6438_v34  ;;  %v2422_v24 = vrot.slane %v6438_v34, 1  ;;  %2894 = vmatpush.msrb.mxu3 %v4597_v32  ;;  %v2424_v32 = vrot.slane %v6464_v38, 1 }
 0x246   : > { %v2148_v33 = vadd.f32 %v6340_v46, %v2113_v60  ;;  %v4613_v60 = vld [vmem:[%s8216_s3 + $0x1d8] sm:$0xff] }
 0x247   : > { %v1720_v15 = vpop.f32.mrf.mxu2  ;;  %v1874_v12 = vpop.f32.mrf.mxu3  ;;  %v6457_v57 = vsel %vm449_vm1, %v2421_v37, %v2422_v24  ;;  %3056 = vmatpush.msrb.mxu0 %v4613_v60 }
 0x248   : > { %8653 = vst [vmem:[#allocation67_spill] sm:$0xff] %v6457_v57  ;;  %v1806_v55 = vadd.f32 %v1720_v15, %v8654_v43  ;;  %2568 = vmatmul.f32.gmra.mxu1 %v6457_v57  ;;  %v2031_v63 = vpop.f32.mrf.mxu0  ;;  %v2180_v62 = vmax.f32 %v2148_v33, 0.0  ;;  %v6480_v43 = vsel %vm449_vm1, %v2422_v24, %v2424_v32  ;;  %v2380_v32 = vld [vmem:[%s8216_s3 + $0x50] sm:$0xff] }
 0x249   : > { %8656 = vst [vmem:[#allocation40_spill] sm:$0xff] %v6480_v43  ;;  %2658 = vmatpush.msrb.mxu2 %v2380_v32 }
 0x24a   : > { %v1960_v4 = vadd.f32 %v1874_v12, %v1806_v55  ;;  %v6476_v20 = vrot.slane %v2180_v62, 7  ;;  %v8657_v55 = vld [vmem:[#allocation24_spill] sm:$0xff] }
 0x24b   : > { %4528 = vmatmul.msk.f32.gmra.mxu0 %vm539_vm2, %v5959_v41 }
 0x24c   : > { %v2114_v37 = vadd.f32 %v2028_v17, %v1960_v4  ;;  %4448 = vmatmul.msk.f32.gmra.mxu2 %vm539_vm2, %v8551_v25  ;;  %4488 = vmatmul.msk.f32.gmra.mxu3 %vm539_vm2, %v8553_v52  ;;  %8655 = vst [vmem:[#allocation37_spill] sm:$0xff] %v6476_v20  ;;  %v6484_v25 = vpop.f32.mrf.mxu1  ;;  %v6488_v62 = vsel %vm291_vm0, 0.0, %v6476_v20 }
 0x24e   : > { %v2149_v33 = vadd.f32 %v6340_v46, %v2114_v37 }
 0x24f   : > { %v1723_v15 = vpop.f32.mrf.mxu2  ;;  %v1877_v12 = vpop.f32.mrf.mxu3 }
 0x250   : > { %v2181_v41 = vmax.f32 %v2149_v33, 0.0  ;;  %v1807_v57 = vadd.f32 %v1723_v15, %v8657_v55  ;;  %2571 = vmatmul.f32.gmra.mxu1 %v6480_v43  ;;  %v2034_v17 = vpop.f32.mrf.mxu0 }
 0x252   : > { %v2248_v4 = vrot.slane %v2181_v41, 7  ;;  %v1961_v52 = vadd.f32 %v1877_v12, %v1807_v57  ;;  %v4661_v57 = vld [vmem:[%s8216_s3 + $0x258] sm:$0xff] }
 0x253   : > { %4529 = vmatmul.msk.f32.gmra.mxu0 %vm539_vm2, %v5983_v18  ;;  %v4596_v18 = vld [vmem:[%s8216_s3 + $0x150] sm:$0xff]  ;;  %3227 = vmatpush.msrb.mxu1 %v4661_v57 }
 0x254   : > { %v6494_v24 = vsel %vm291_vm0, %v6476_v20, %v2248_v4  ;;  %v2115_v60 = vadd.f32 %v2031_v63, %v1961_v52  ;;  %4449 = vmatmul.msk.f32.gmra.mxu2 %vm539_vm2, %v8552_v53  ;;  %4489 = vmatmul.msk.f32.gmra.mxu3 %vm539_vm2, %v8555_v21  ;;  %v2426_v63 = vrot.slane %v6488_v62, 1  ;;  %v6518_v55 = vsel %vm291_vm0, %v2248_v4, 0.0  ;;  %v6526_v32 = vpop.f32.mrf.mxu1  ;;  %v8663_v4 = vld [vmem:[#allocation29_spill] sm:$0xff] }
 0x255   : > { %8658 = vst [vmem:[#allocation68_spill] sm:$0xff] %v6494_v24  ;;  %v2427_v37 = vrot.slane %v6494_v24, 1  ;;  %2895 = vmatpush.msrb.mxu3 %v4596_v18  ;;  %v2429_v57 = vrot.slane %v6518_v55, 1  ;;  %v8661_v18 = vld [vmem:[#allocation47_spill] sm:$0xff] }
 0x256   : > { %v2150_v21 = vadd.f32 %v6340_v46, %v2115_v60  ;;  %v4612_v60 = vld [vmem:[%s8216_s3 + $0x1d0] sm:$0xff]  ;;  %8660 = vst [vmem:[#allocation36_spill] sm:$0xff] %v6526_v32 }
 0x257   : > { %v1726_v53 = vpop.f32.mrf.mxu2  ;;  %v1880_v33 = vpop.f32.mrf.mxu3  ;;  %v6513_v15 = vsel %vm449_vm1, %v2426_v63, %v2427_v37  ;;  %v8662_v63 = vld [vmem:[#allocation49_spill] sm:$0xff]  ;;  %3057 = vmatpush.msrb.mxu0 %v4612_v60 }
 0x258   : > { %8659 = vst [vmem:[#allocation72_spill] sm:$0xff] %v6513_v15  ;;  %v1808_v12 = vadd.f32 %v1726_v53, %v5966_v28  ;;  %2574 = vmatmul.f32.gmra.mxu1 %v6513_v15  ;;  %v2037_v41 = vpop.f32.mrf.mxu0  ;;  %v2182_v52 = vmax.f32 %v2150_v21, 0.0  ;;  %v1655_v21 = vadd.f32 %v6149_v13, %v8663_v4  ;;  %v6538_v15 = vsel %vm449_vm1, %v2427_v37, %v2429_v57  ;;  %v4660_v57 = vld [vmem:[%s8216_s3 + $0x250] sm:$0xff] }
 0x259   : > { %8665 = vst [vmem:[#allocation70_spill] sm:$0xff] %v6538_v15  ;;  %3228 = vmatpush.msrb.mxu1 %v4660_v57 }
 0x25a   : > { %v1962_v43 = vadd.f32 %v1880_v33, %v1808_v12  ;;  %v6534_v53 = vrot.slane %v2182_v52, 7  ;;  %v8667_v52 = vld [vmem:[#allocation52_spill] sm:$0xff] }
 0x25b   : > { %4530 = vmatmul.msk.f32.gmra.mxu0 %vm539_vm2, %v6006_v39 }
 0x25c   : > { %v2116_v28 = vadd.f32 %v2034_v17, %v1962_v43  ;;  %4450 = vmatmul.msk.f32.gmra.mxu2 %vm539_vm2, %v8661_v18  ;;  %4490 = vmatmul.msk.f32.gmra.mxu3 %vm539_vm2, %v8662_v63  ;;  %8664 = vst [vmem:[#allocation43_spill] sm:$0xff] %v6534_v53  ;;  %v6543_v60 = vsel %vm291_vm0, 0.0, %v6534_v53 }
 0x25e   : > { %v2151_v33 = vadd.f32 %v6340_v46, %v2116_v28  ;;  %v2379_v28 = vld [vmem:[%s8216_s3 + $0x48] sm:$0xff] }
 0x25f   : > { %v1729_v39 = vpop.f32.mrf.mxu2  ;;  %v1883_v12 = vpop.f32.mrf.mxu3  ;;  %2659 = vmatpush.msrb.mxu2 %v2379_v28 }
 0x260   : > { %v2183_v43 = vmax.f32 %v2151_v33, 0.0  ;;  %v1809_v17 = vadd.f32 %v1729_v39, %v1655_v21  ;;  %2577 = vmatmul.f32.gmra.mxu1 %v6538_v15  ;;  %v2040_v18 = vpop.f32.mrf.mxu0  ;;  %v6568_v33 = vpop.f32.mrf.mxu1  ;;  %v4591_v15 = vld [vmem:[%s8216_s3 + $0x128] sm:$0xff] }
 0x262   : > { %v2251_v32 = vrot.slane %v2183_v43, 7  ;;  %v1963_v63 = vadd.f32 %v1883_v12, %v1809_v17 }
 0x263   : > { %4531 = vmatmul.msk.f32.gmra.mxu0 %vm539_vm2, %v6022_v27  ;;  %v4595_v27 = vld [vmem:[%s8216_s3 + $0x148] sm:$0xff] }
 0x264   : > { %v6549_v13 = vsel %vm291_vm0, %v6534_v53, %v2251_v32  ;;  %v2117_v37 = vadd.f32 %v2037_v41, %v1963_v63  ;;  %4451 = vmatmul.msk.f32.gmra.mxu2 %vm539_vm2, %v5306_v61  ;;  %4491 = vmatmul.msk.f32.gmra.mxu3 %vm539_vm2, %v8667_v52  ;;  %v2431_v41 = vrot.slane %v6543_v60, 1  ;;  %v8668_v61 = vld [vmem:[#allocation33_spill] sm:$0xff]  ;;  %v6576_v57 = vsel %vm291_vm0, %v2251_v32, 0.0  ;;  %v4610_v32 = vld [vmem:[%s8216_s3 + $0x1c0] sm:$0xff] }
 0x265   : > { %8666 = vst [vmem:[#allocation46_spill] sm:$0xff] %v6549_v13  ;;  %v2432_v4 = vrot.slane %v6549_v13, 1  ;;  %v1656_v21 = vadd.f32 %v6165_v14, %v8668_v61  ;;  %2896 = vmatpush.msrb.mxu3 %v4595_v27  ;;  %v4611_v14 = vld [vmem:[%s8216_s3 + $0x1c8] sm:$0xff]  ;;  %v2378_v27 = vld [vmem:[%s8216_s3 + $0x40] sm:$0xff]  ;;  %v2434_v61 = vrot.slane %v6576_v57, 1 }
 0x266   : > { %v2152_v39 = vadd.f32 %v6340_v46, %v2117_v37  ;;  %3058 = vmatpush.msrb.mxu0 %v4611_v14  ;;  %2660 = vmatpush.msrb.mxu2 %v2378_v27  ;;  %v4592_v27 = vld [vmem:[%s8216_s3 + $0x130] sm:$0xff] }
 0x267   : > { %v1732_v12 = vpop.f32.mrf.mxu2  ;;  %v1886_v43 = vpop.f32.mrf.mxu3  ;;  %v6572_v17 = vsel %vm449_vm1, %v2431_v41, %v2432_v4  ;;  %v4594_v41 = vld [vmem:[%s8216_s3 + $0x140] sm:$0xff] }
 0x268   : > { %8669 = vst [vmem:[#allocation48_spill] sm:$0xff] %v6572_v17  ;;  %v1810_v63 = vadd.f32 %v1732_v12, %v1656_v21  ;;  %2580 = vmatmul.f32.gmra.mxu1 %v6572_v17  ;;  %v2043_v52 = vpop.f32.mrf.mxu0  ;;  %v2184_v28 = vmax.f32 %v2152_v39, 0.0  ;;  %v8670_v39 = vld [vmem:[#allocation56_spill] sm:$0xff]  ;;  %v2377_v12 = vld [vmem:[%s8216_s3 + $0x38] sm:$0xff]  ;;  %2897 = vmatpush.msrb.mxu3 %v4594_v41  ;;  %v2375_v17 = vld [vmem:[%s8216_s3 + $0x28] sm:$0xff] }
 0x269   : > { %3059 = vmatpush.msrb.mxu0 %v4610_v32  ;;  %2661 = vmatpush.msrb.mxu2 %v2377_v12  ;;  %v4608_v41 = vld [vmem:[%s8216_s3 + $0x1b0] sm:$0xff] }
 0x26a   : > { %v1964_v37 = vadd.f32 %v1886_v43, %v1810_v63  ;;  %v4593_v43 = vld [vmem:[%s8216_s3 + $0x138] sm:$0xff]  ;;  %v6608_v63 = vrot.slane %v2184_v28, 7  ;;  %v6623_v28 = vpop.f32.mrf.mxu1 }
 0x26b   : > { %4532 = vmatmul.msk.f32.gmra.mxu0 %vm539_vm2, %v6044_v51  ;;  %v4609_v51 = vld [vmem:[%s8216_s3 + $0x1b8] sm:$0xff]  ;;  %2898 = vmatpush.msrb.mxu3 %v4593_v43 }
 0x26c   : > { %v2118_v21 = vadd.f32 %v2040_v18, %v1964_v37  ;;  %4452 = vmatmul.msk.f32.gmra.mxu2 %vm539_vm2, %v5389_v2  ;;  %4492 = vmatmul.msk.f32.gmra.mxu3 %vm539_vm2, %v8670_v39  ;;  %v8671_v18 = vld [vmem:[#allocation35_spill] sm:$0xff]  ;;  %8672 = vst [vmem:[#allocation71_spill] sm:$0xff] %v6608_v63  ;;  %v2376_v37 = vld [vmem:[%s8216_s3 + $0x30] sm:$0xff]  ;;  %v6634_v43 = vsel %vm291_vm0, 0.0, %v6608_v63 }
 0x26d   : > { %v1657_v2 = vadd.f32 %v6182_v49, %v8671_v18  ;;  %v6621_v49 = vsel %vm449_vm1, %v2432_v4, %v2434_v61  ;;  %3060 = vmatpush.msrb.mxu0 %v4609_v51  ;;  %2662 = vmatpush.msrb.mxu2 %v2376_v37  ;;  %v4607_v51 = vld [vmem:[%s8216_s3 + $0x1a8] sm:$0xff] }
 0x26e   : > { %v2153_v14 = vadd.f32 %v6340_v46, %v2118_v21  ;;  %8673 = vst [vmem:[#allocation75_spill] sm:$0xff] %v6621_v49  ;;  %2899 = vmatpush.msrb.mxu3 %v4592_v27  ;;  %v2436_v27 = vrot.slane %v6634_v43, 1 }
 0x26f   : > { %v1735_v32 = vpop.f32.mrf.mxu2  ;;  %v1889_v39 = vpop.f32.mrf.mxu3  ;;  %3061 = vmatpush.msrb.mxu0 %v4608_v41  ;;  %2663 = vmatpush.msrb.mxu2 %v2375_v17 }
 0x270   : > { %v2185_v21 = vmax.f32 %v2153_v14, 0.0  ;;  %v1811_v12 = vadd.f32 %v1735_v32, %v1657_v2  ;;  %2583 = vmatmul.f32.gmra.mxu1 %v6621_v49  ;;  %v2046_v18 = vpop.f32.mrf.mxu0  ;;  %2900 = vmatpush.msrb.mxu3 %v4591_v15  ;;  %v2374_v2 = vld [vmem:[%s8216_s3 + $0x20] sm:$0xff]  ;;  %v4589_v32 = vld [vmem:[%s8216_s3 + $0x118] sm:$0xff] }
 0x271   : > { %v4590_v14 = vld [vmem:[%s8216_s3 + $0x120] sm:$0xff]  ;;  %3062 = vmatpush.msrb.mxu0 %v4607_v51  ;;  %2664 = vmatpush.msrb.mxu2 %v2374_v2 }
 0x272   : > { %v2254_v4 = vrot.slane %v2185_v21, 7  ;;  %v1965_v61 = vadd.f32 %v1889_v39, %v1811_v12  ;;  %v4606_v15 = vld [vmem:[%s8216_s3 + $0x1a0] sm:$0xff]  ;;  %2901 = vmatpush.msrb.mxu3 %v4590_v14  ;;  %v4605_v39 = vld [vmem:[%s8216_s3 + $0x198] sm:$0xff]  ;;  %v4588_v14 = vld [vmem:[%s8216_s3 + $0x110] sm:$0xff] }
 0x273   : > { %4533 = vmatmul.msk.f32.gmra.mxu0 %vm539_vm2, %v6068_v7  ;;  %v4659_v7 = vld [vmem:[%s8216_s3 + $0x248] sm:$0xff] }
 0x274   : > { %v6649_v37 = vsel %vm291_vm0, %v6608_v63, %v2254_v4  ;;  %v2119_v17 = vadd.f32 %v2043_v52, %v1965_v61  ;;  %4453 = vmatmul.msk.f32.gmra.mxu2 %vm539_vm2, %v5386_v45  ;;  %4493 = vmatmul.msk.f32.gmra.mxu3 %vm539_vm2, %v8566_v35  ;;  %v2373_v45 = vld [vmem:[%s8216_s3 + $0x18] sm:$0xff]  ;;  %v1658_v35 = vadd.f32 %v6196_v50, %v6041_v29  ;;  %v2372_v29 = vld [vmem:[%s8216_s3 + $0x10] sm:$0xff]  ;;  %v6683_v2 = vsel %vm291_vm0, %v2254_v4, 0.0  ;;  %v2371_v4 = vld [vmem:[%s8216_s3 + $0x8] sm:$0xff] }
 0x275   : > { %8674 = vst [vmem:[#allocation45_spill] sm:$0xff] %v6649_v37  ;;  %v2437_v41 = vrot.slane %v6649_v37, 1  ;;  %3229 = vmatpush.msrb.mxu1 %v4659_v7  ;;  %3063 = vmatpush.msrb.mxu0 %v4606_v15 }
 0x276   : > { %v2154_v52 = vadd.f32 %v6340_v46, %v2119_v17  ;;  %2665 = vmatpush.msrb.mxu2 %v2373_v45  ;;  %2902 = vmatpush.msrb.mxu3 %v4589_v32  ;;  %v6688_v17 = vpop.f32.mrf.mxu1  ;;  %v2439_v45 = vrot.slane %v6683_v2, 1  ;;  %v8676_v32 = vld [vmem:[#allocation39_spill] sm:$0xff] }
 0x277   : > { %v1738_v21 = vpop.f32.mrf.mxu2  ;;  %v1892_v12 = vpop.f32.mrf.mxu3  ;;  %v6676_v61 = vsel %vm449_vm1, %v2436_v27, %v2437_v41  ;;  %3064 = vmatpush.msrb.mxu0 %v4605_v39  ;;  %v4604_v27 = vld [vmem:[%s8216_s3 + $0x190] sm:$0xff]  ;;  %v8677_v39 = vld [vmem:[#allocation41_spill] sm:$0xff] }
 0x278   : > { %8675 = vst [vmem:[#allocation51_spill] sm:$0xff] %v6676_v61  ;;  %v1812_v50 = vadd.f32 %v1738_v21, %v1658_v35  ;;  %2586 = vmatmul.f32.gmra.mxu1 %v6676_v61  ;;  %v2049_v51 = vpop.f32.mrf.mxu0  ;;  %v2186_v7 = vmax.f32 %v2154_v52, 0.0  ;;  %2666 = vmatpush.msrb.mxu2 %v2372_v29  ;;  %v4587_v35 = vld [vmem:[%s8216_s3 + $0x108] sm:$0xff] }
 0x279   : > { %2903 = vmatpush.msrb.mxu3 %v4588_v14  ;;  %v4603_v21 = vld [vmem:[%s8216_s3 + $0x188] sm:$0xff]  ;;  %3065 = vmatpush.msrb.mxu0 %v4604_v27  ;;  %v6724_v27 = vsel %vm449_vm1, %v2437_v41, %v2439_v45 }
 0x27a   : > { %v1966_v15 = vadd.f32 %v1892_v12, %v1812_v50  ;;  %2667 = vmatpush.msrb.mxu2 %v2371_v4  ;;  %v8678_v12 = vld [vmem:[#allocation38_spill] sm:$0xff]  ;;  %v6717_v50 = vrot.slane %v2186_v7, 7  ;;  %8680 = vst [vmem:[#allocation77_spill] sm:$0xff] %v6724_v27 }
 0x27b   : > { %4534 = vmatmul.msk.f32.gmra.mxu0 %vm539_vm2, %v6092_v47  ;;  %v2370_v47 = vld [vmem:[%s8216_s3] sm:$0xff]  ;;  %v1659_v29 = vadd.f32 %v6208_v10, %v8678_v12  ;;  %2904 = vmatpush.msrb.mxu3 %v4587_v35 }
 0x27c   : > { %v2120_v52 = vadd.f32 %v2046_v18, %v1966_v15  ;;  %4454 = vmatmul.msk.f32.gmra.mxu2 %vm539_vm2, %v8676_v32  ;;  %4494 = vmatmul.msk.f32.gmra.mxu3 %vm539_vm2, %v8677_v39  ;;  %v4586_v18 = vld [vmem:[%s8216_s3 + $0x100] sm:$0xff]  ;;  %8679 = vst [vmem:[#allocation73_spill] sm:$0xff] %v6717_v50 }
 0x27d   : > { %v4602_v15 = vld [vmem:[%s8216_s3 + $0x180] sm:$0xff]  ;;  %3066 = vmatpush.msrb.mxu0 %v4603_v21  ;;  %2668 = vmatpush.msrb.mxu2 %v2370_v47 }
 0x27e   : > { %v2155_v14 = vadd.f32 %v6340_v46, %v2120_v52  ;;  %2905 = vmatpush.msrb.mxu3 %v4586_v18  ;;  %v6729_v52 = vsel %vm291_vm0, 0.0, %v6717_v50  ;;  %v6733_v41 = vpop.f32.mrf.mxu1  ;;  %v1660_v18 = vadd.f32 %v6224_v54, %v6089_v26 }
 0x27f   : > { %v1741_v32 = vpop.f32.mrf.mxu2  ;;  %v1895_v39 = vpop.f32.mrf.mxu3  ;;  %3067 = vmatpush.msrb.mxu0 %v4602_v15  ;;  %v2441_v47 = vrot.slane %v6729_v52, 1 }
 0x280   : > { %v2187_v4 = vmax.f32 %v2155_v14, 0.0  ;;  %v1813_v61 = vadd.f32 %v1741_v32, %v1659_v29  ;;  %2589 = vmatmul.f32.gmra.mxu1 %v6724_v27  ;;  %v2052_v10 = vpop.f32.mrf.mxu0 }
 0x282   : > { %v2257_v7 = vrot.slane %v2187_v4, 7  ;;  %v1967_v35 = vadd.f32 %v1895_v39, %v1813_v61  ;;  %v4658_v61 = vld [vmem:[%s8216_s3 + $0x240] sm:$0xff]  ;;  %v8683_v4 = vld [vmem:[#allocation60_spill] sm:$0xff] }
 0x283   : > { %4535 = vmatmul.msk.f32.gmra.mxu0 %vm539_vm2, %v6110_v36  ;;  %3230 = vmatpush.msrb.mxu1 %v4658_v61 }
 0x284   : > { %v6737_v45 = vsel %vm291_vm0, %v6717_v50, %v2257_v7  ;;  %v2121_v21 = vadd.f32 %v2049_v51, %v1967_v35  ;;  %4455 = vmatmul.msk.f32.gmra.mxu2 %vm539_vm2, %v6052_v6  ;;  %4495 = vmatmul.msk.f32.gmra.mxu3 %vm539_vm2, %v6099_v42  ;;  %v6756_v15 = vsel %vm291_vm0, %v2257_v7, 0.0  ;;  %v8684_v35 = vld [vmem:[#allocation3_spill] sm:$0xff] }
 0x285   : > { %8681 = vst [vmem:[#allocation54_spill] sm:$0xff] %v6737_v45  ;;  %v2442_v36 = vrot.slane %v6737_v45, 1  ;;  %v2444_v26 = vrot.slane %v6756_v15, 1 }
 0x286   : > { %v2156_v51 = vadd.f32 %v6340_v46, %v2121_v21  ;;  %v1661_v21 = vadd.f32 %v6244_v31, %v6107_v59  ;;  %v6767_v61 = vpop.f32.mrf.mxu1  ;;  %v8688_v31 = vld [vmem:[#allocation61_spill] sm:$0xff] }
 0x287   : > { %v1744_v12 = vpop.f32.mrf.mxu2  ;;  %v1898_v29 = vpop.f32.mrf.mxu3  ;;  %v6752_v6 = vsel %vm449_vm1, %v2441_v47, %v2442_v36  ;;  %8685 = vst [vmem:[#allocation74_spill] sm:$0xff] %v6767_v61 }
 0x288   : > { %8682 = vst [vmem:[#allocation55_spill] sm:$0xff] %v6752_v6  ;;  %v1814_v42 = vadd.f32 %v1744_v12, %v1660_v18  ;;  %2592 = vmatmul.f32.gmra.mxu1 %v6752_v6  ;;  %v2055_v14 = vpop.f32.mrf.mxu0  ;;  %v2188_v32 = vmax.f32 %v2156_v51, 0.0  ;;  %v6773_v12 = vsel %vm449_vm1, %v2442_v36, %v2444_v26  ;;  %v8690_v26 = vld [vmem:[#allocation2_spill] sm:$0xff] }
 0x289   : > { %8687 = vst [vmem:[#allocation53_spill] sm:$0xff] %v6773_v12 }
 0x28a   : > { %v1968_v39 = vadd.f32 %v1898_v29, %v1814_v42  ;;  %v6769_v7 = vrot.slane %v2188_v32, 7 }
 0x28b   : > { %4536 = vmatmul.msk.f32.gmra.mxu0 %vm539_vm2, %v8683_v4 }
 0x28c   : > { %v2122_v54 = vadd.f32 %v2052_v10, %v1968_v39  ;;  %4456 = vmatmul.msk.f32.gmra.mxu2 %vm539_vm2, %v8684_v35  ;;  %4496 = vmatmul.msk.f32.gmra.mxu3 %vm539_vm2, %v8623_v8  ;;  %8686 = vst [vmem:[#allocation79_spill] sm:$0xff] %v6769_v7  ;;  %v6778_v59 = vsel %vm291_vm0, 0.0, %v6769_v7 }
 0x28e   : > { %v2157_v47 = vadd.f32 %v6340_v46, %v2122_v54  ;;  %v4657_v54 = vld [vmem:[%s8216_s3 + $0x238] sm:$0xff] }
 0x28f   : > { %v1747_v18 = vpop.f32.mrf.mxu2  ;;  %v1901_v51 = vpop.f32.mrf.mxu3  ;;  %3231 = vmatpush.msrb.mxu1 %v4657_v54 }
 0x290   : > { %v2189_v10 = vmax.f32 %v2157_v47, 0.0  ;;  %v1815_v29 = vadd.f32 %v1747_v18, %v1661_v21  ;;  %2595 = vmatmul.f32.gmra.mxu1 %v6773_v12  ;;  %v2058_v42 = vpop.f32.mrf.mxu0  ;;  %v2446_v21 = vrot.slane %v6778_v59, 1  ;;  %v1662_v18 = vadd.f32 %v6255_v48, %v6125_v30  ;;  %v6810_v30 = vpop.f32.mrf.mxu1 }
 0x291   : > { %8694 = vst [vmem:[#allocation81_spill] sm:$0xff] %v6810_v30 }
 0x292   : > { %v2260_v39 = vrot.slane %v2189_v10, 7  ;;  %v1969_v35 = vadd.f32 %v1901_v51, %v1815_v29 }
 0x293   : > { %4537 = vmatmul.msk.f32.gmra.mxu0 %vm539_vm2, %v8688_v31 }
 0x294   : > { %v6784_v32 = vsel %vm291_vm0, %v6769_v7, %v2260_v39  ;;  %v2123_v36 = vadd.f32 %v2055_v14, %v1969_v35  ;;  %4457 = vmatmul.msk.f32.gmra.mxu2 %vm539_vm2, %v8690_v26  ;;  %4497 = vmatmul.msk.f32.gmra.mxu3 %vm539_vm2, %v8629_v44  ;;  %v6808_v54 = vsel %vm291_vm0, %v2260_v39, 0.0  ;;  %v8696_v39 = vld [vmem:[#allocation18_spill] sm:$0xff] }
 0x295   : > { %8689 = vst [vmem:[#allocation58_spill] sm:$0xff] %v6784_v32  ;;  %v2447_v47 = vrot.slane %v6784_v32, 1 }
 0x296   : > { %v2158_v14 = vadd.f32 %v6340_v46, %v2123_v36 }
 0x297   : > { %v1750_v51 = vpop.f32.mrf.mxu2  ;;  %v1904_v10 = vpop.f32.mrf.mxu3  ;;  %v6799_v29 = vsel %vm449_vm1, %v2446_v21, %v2447_v47  ;;  %v2449_v21 = vrot.slane %v6808_v54, 1 }
 0x298   : > { %8691 = vst [vmem:[#allocation76_spill] sm:$0xff] %v6799_v29  ;;  %v1816_v35 = vadd.f32 %v1750_v51, %v1662_v18  ;;  %2598 = vmatmul.f32.gmra.mxu1 %v6799_v29  ;;  %v2061_v44 = vpop.f32.mrf.mxu0  ;;  %v2190_v48 = vmax.f32 %v2158_v14, 0.0  ;;  %v8695_v51 = vld [vmem:[#allocation42_spill] sm:$0xff]  ;;  %v6829_v61 = vpop.f32.mrf.mxu1 }
 0x299   : > { %v1663_v29 = vadd.f32 %v8696_v39, %v8695_v51  ;;  %v6826_v6 = vsel %vm449_vm1, %v2447_v47, %v2449_v21  ;;  %v8699_v51 = vld [vmem:[#allocation44_spill] sm:$0xff] }
 0x29a   : > { %v1970_v36 = vadd.f32 %v1904_v10, %v1816_v35  ;;  %v6822_v12 = vrot.slane %v2190_v48, 7  ;;  %8698 = vst [vmem:[#allocation7_spill] sm:$0xff] %v6826_v6  ;;  %v1664_v39 = vadd.f32 %v6294_v58, %v8699_v51 }
 0x29b   : > { %4619 = vmatmul.msk.f32.vlgmr.msrb.gmra.mxu0 %vm6803_vm4, %v6370_v40 }
 0x29c   : > { %v2124_v18 = vadd.f32 %v2058_v42, %v1970_v36  ;;  %4555 = vmatmul.msk.f32.vlgmr.msrb.gmra.mxu2 %vm6803_vm4, %v8690_v26  ;;  %2906 = vmatmul.f32.vlgmr.msrb.gmra.mxu3 %v8683_v4  ;;  %8697 = vst [vmem:[#allocation5_spill] sm:$0xff] %v6822_v12  ;;  %v6833_v48 = vsel %vm291_vm0, 0.0, %v6822_v12 }
 0x29e   : > { %v2159_v14 = vadd.f32 %v6340_v46, %v2124_v18 }
 0x29f   : > { %v1753_v10 = vpop.f32.mrf.mxu2  ;;  %v1907_v35 = vpop.f32.mrf.mxu3 }
 0x2a0   : > { %v2191_v30 = vmax.f32 %v2159_v14, 0.0  ;;  %v1817_v42 = vadd.f32 %v1753_v10, %v1663_v29  ;;  %2601 = vmatmul.f32.gmra.mxu1 %v6826_v6  ;;  %v2064_v36 = vpop.f32.mrf.mxu0  ;;  %v4656_v29 = vld [vmem:[%s8216_s3 + $0x230] sm:$0xff] }
 0x2a1   : > { %3232 = vmatpush.msrb.mxu1 %v4656_v29  ;;  %v2766_v29 = vrot.slane %v6376_v1, 2  ;;  %v8702_v1 = vld [vmem:[#allocation50_spill] sm:$0xff] }
 0x2a2   : > { %v2263_v4 = vrot.slane %v2191_v30, 7  ;;  %v1971_v27 = vadd.f32 %v1907_v35, %v1817_v42  ;;  %v2451_v30 = vrot.slane %v6833_v48, 1  ;;  %v2767_v35 = vrot.slane %v6388_v11, 2 }
 0x2a3   : > { %3071 = vmatmul.f32.gmra.mxu0 %v6388_v11 }
 0x2a4   : > { %v6838_v18 = vsel %vm291_vm0, %v6822_v12, %v2263_v4  ;;  %v2125_v47 = vadd.f32 %v2061_v44, %v1971_v27  ;;  %2672 = vmatmul.f32.gmra.mxu2 %v8690_v26  ;;  %2909 = vmatmul.f32.gmra.mxu3 %v8688_v31  ;;  %v6856_v26 = vsel %vm291_vm0, %v2263_v4, 0.0  ;;  %v1665_v4 = vadd.f32 %v6320_v23, %v8702_v1  ;;  %v8705_v1 = vld [vmem:[#allocation57_spill] sm:$0xff] }
 0x2a5   : > { %v2452_v21 = vrot.slane %v6838_v18, 1  ;;  %v2454_v51 = vrot.slane %v6856_v26, 1 }
 0x2a6   : > { %v2160_v14 = vadd.f32 %v6340_v46, %v2125_v47  ;;  %v6860_v47 = vsel %vm894_vm3, %v2766_v29, %v2767_v35 }
 0x2a7   : > { %v1756_v10 = vpop.f32.mrf.mxu2  ;;  %v1910_v44 = vpop.f32.mrf.mxu3  ;;  %v6851_v27 = vsel %vm449_vm1, %v2451_v30, %v2452_v21  ;;  %8701 = vst [vmem:[#allocation4_spill] sm:$0xff] %v6860_v47  ;;  %v6878_v29 = vsel %vm449_vm1, %v2452_v21, %v2454_v51 }
 0x2a8   : > { %8700 = vst [vmem:[#allocation78_spill] sm:$0xff] %v6851_v27  ;;  %v1818_v42 = vadd.f32 %v1756_v10, %v1664_v39  ;;  %2604 = vmatmul.f32.gmra.mxu1 %v6851_v27  ;;  %v2067_v31 = vpop.f32.mrf.mxu0  ;;  %v2192_v6 = vmax.f32 %v2160_v14, 0.0  ;;  %v6865_v30 = vpop.f32.mrf.mxu1 }
 0x2a9   : > { %8703 = vst [vmem:[#allocation9_spill] sm:$0xff] %v6878_v29 }
 0x2aa   : > { %v1972_v58 = vadd.f32 %v1910_v44, %v1818_v42  ;;  %v6874_v14 = vrot.slane %v2192_v6, 7 }
 0x2ab   : > { %4621 = vmatmul.msk.f32.gmra.mxu0 %vm6803_vm4, %v6422_v0 }
 0x2ac   : > { %v2126_v39 = vadd.f32 %v2064_v36, %v1972_v58  ;;  %4557 = vmatmul.msk.f32.gmra.mxu2 %vm6803_vm4, %v6370_v40  ;;  %2912 = vmatmul.f32.gmra.mxu3 %v6860_v47  ;;  %v2769_v36 = vrot.slane %v6408_v5, 2  ;;  %v6884_v23 = vsel %vm291_vm0, 0.0, %v6874_v14 }
 0x2ae   : > { %v2161_v10 = vadd.f32 %v6340_v46, %v2126_v39  ;;  %v6887_v6 = vsel %vm894_vm3, %v2767_v35, %v2769_v36  ;;  %v2456_v35 = vrot.slane %v6884_v23, 1 }
 0x2af   : > { %v1759_v44 = vpop.f32.mrf.mxu2  ;;  %v1913_v42 = vpop.f32.mrf.mxu3  ;;  %8704 = vst [vmem:[#allocation80_spill] sm:$0xff] %v6887_v6 }
 0x2b0   : > { %v2193_v58 = vmax.f32 %v2161_v10, 0.0  ;;  %v1819_v27 = vadd.f32 %v1759_v44, %v1665_v4  ;;  %2607 = vmatmul.f32.gmra.mxu1 %v6878_v29  ;;  %v2070_v40 = vpop.f32.mrf.mxu0  ;;  %v1666_v4 = vadd.f32 %v6334_v16, %v8705_v1  ;;  %v2772_v44 = vrot.slane %v6438_v34, 2 }
 0x2b2   : > { %v2266_v47 = vrot.slane %v2193_v58, 7  ;;  %v1973_v49 = vadd.f32 %v1913_v42, %v1819_v27  ;;  %v4655_v27 = vld [vmem:[%s8216_s3 + $0x228] sm:$0xff] }
 0x2b3   : > { %3077 = vmatmul.f32.gmra.mxu0 %v6438_v34  ;;  %3233 = vmatpush.msrb.mxu1 %v4655_v27  ;;  %v2771_v27 = vrot.slane %v6432_v9, 2  ;;  %v8708_v9 = vld [vmem:[#allocation59_spill] sm:$0xff] }
 0x2b4   : > { %v6892_v21 = vsel %vm291_vm0, %v6874_v14, %v2266_v47  ;;  %v2127_v5 = vadd.f32 %v2067_v31, %v1973_v49  ;;  %2678 = vmatmul.f32.gmra.mxu2 %v6388_v11  ;;  %2915 = vmatmul.f32.gmra.mxu3 %v6887_v6  ;;  %v6912_v58 = vsel %vm291_vm0, %v2266_v47, 0.0 }
 0x2b5   : > { %v6899_v51 = vpop.f32.mrf.mxu1  ;;  %v2457_v39 = vrot.slane %v6892_v21, 1 }
 0x2b6   : > { %v2162_v49 = vadd.f32 %v6340_v46, %v2127_v5  ;;  %v6916_v5 = vsel %vm894_vm3, %v2771_v27, %v2772_v44 }
 0x2b7   : > { %v1762_v31 = vpop.f32.mrf.mxu2  ;;  %v1916_v11 = vpop.f32.mrf.mxu3  ;;  %v6907_v10 = vsel %vm449_vm1, %v2456_v35, %v2457_v39  ;;  %8707 = vst [vmem:[#allocation11_spill] sm:$0xff] %v6916_v5  ;;  %v2459_v35 = vrot.slane %v6912_v58, 1 }
 0x2b8   : > { %8706 = vst [vmem:[#allocation10_spill] sm:$0xff] %v6907_v10  ;;  %v1820_v42 = vadd.f32 %v1762_v31, %v1666_v4  ;;  %2610 = vmatmul.f32.gmra.mxu1 %v6907_v10  ;;  %v2073_v36 = vpop.f32.mrf.mxu0  ;;  %v2194_v6 = vmax.f32 %v2162_v49, 0.0  ;;  %v1667_v4 = vadd.f32 %v6359_v3, %v8708_v9  ;;  %v8711_v9 = vld [vmem:[#allocation12_spill] sm:$0xff] }
 0x2b9   : > { %v6934_v27 = vsel %vm449_vm1, %v2457_v39, %v2459_v35 }
 0x2ba   : > { %v1974_v16 = vadd.f32 %v1916_v11, %v1820_v42  ;;  %v6930_v49 = vrot.slane %v2194_v6, 7  ;;  %8709 = vst [vmem:[#allocation82_spill] sm:$0xff] %v6934_v27 }
 0x2bb   : > { %4623 = vmatmul.msk.f32.gmra.mxu0 %vm6803_vm4, %v6476_v20 }
 0x2bc   : > { %v2128_v1 = vadd.f32 %v2070_v40, %v1974_v16  ;;  %4559 = vmatmul.msk.f32.gmra.mxu2 %vm6803_vm4, %v6422_v0  ;;  %2918 = vmatmul.f32.gmra.mxu3 %v6916_v5  ;;  %v2774_v40 = vrot.slane %v6464_v38, 2  ;;  %v6940_v3 = vsel %vm291_vm0, 0.0, %v6930_v49 }
 0x2bd   : > { %v6926_v47 = vpop.f32.mrf.mxu1 }
 0x2be   : > { %v2163_v31 = vadd.f32 %v6340_v46, %v2128_v1  ;;  %v6943_v6 = vsel %vm894_vm3, %v2772_v44, %v2774_v40  ;;  %v2461_v44 = vrot.slane %v6940_v3, 1 }
 0x2bf   : > { %v1765_v11 = vpop.f32.mrf.mxu2  ;;  %v1919_v42 = vpop.f32.mrf.mxu3  ;;  %8710 = vst [vmem:[#allocation83_spill] sm:$0xff] %v6943_v6 }
 0x2c0   : > { %v2195_v16 = vmax.f32 %v2163_v31, 0.0  ;;  %v1821_v10 = vadd.f32 %v1765_v11, %v1667_v4  ;;  %2613 = vmatmul.f32.gmra.mxu1 %v6934_v27  ;;  %v2076_v5 = vpop.f32.mrf.mxu0  ;;  %v1668_v4 = vadd.f32 %v6380_v22, %v8711_v9 }
 0x2c2   : > { %v2269_v29 = vrot.slane %v2195_v16, 7  ;;  %v1975_v0 = vadd.f32 %v1919_v42, %v1821_v10  ;;  %v4654_v10 = vld [vmem:[%s8216_s3 + $0x220] sm:$0xff]  ;;  %v2777_v42 = vrot.slane %v6494_v24, 2 }
 0x2c3   : > { %3083 = vmatmul.f32.gmra.mxu0 %v6494_v24  ;;  %3234 = vmatpush.msrb.mxu1 %v4654_v10  ;;  %v2776_v10 = vrot.slane %v6488_v62, 2  ;;  %v8714_v62 = vld [vmem:[#allocation16_spill] sm:$0xff] }
 0x2c4   : > { %v6948_v39 = vsel %vm291_vm0, %v6930_v49, %v2269_v29  ;;  %v2129_v38 = vadd.f32 %v2073_v36, %v1975_v0  ;;  %2684 = vmatmul.f32.gmra.mxu2 %v6438_v34  ;;  %2921 = vmatmul.f32.gmra.mxu3 %v6943_v6  ;;  %v6968_v6 = vsel %vm291_vm0, %v2269_v29, 0.0 }
 0x2c5   : > { %v6955_v35 = vpop.f32.mrf.mxu1  ;;  %v2462_v1 = vrot.slane %v6948_v39, 1 }
 0x2c6   : > { %v2164_v0 = vadd.f32 %v6340_v46, %v2129_v38  ;;  %v6972_v38 = vsel %vm894_vm3, %v2776_v10, %v2777_v42 }
 0x2c7   : > { %v1768_v36 = vpop.f32.mrf.mxu2  ;;  %v1922_v31 = vpop.f32.mrf.mxu3  ;;  %v6963_v11 = vsel %vm449_vm1, %v2461_v44, %v2462_v1  ;;  %8713 = vst [vmem:[#allocation14_spill] sm:$0xff] %v6972_v38  ;;  %v2464_v44 = vrot.slane %v6968_v6, 1 }
 0x2c8   : > { %8712 = vst [vmem:[#allocation13_spill] sm:$0xff] %v6963_v11  ;;  %v1822_v40 = vadd.f32 %v1768_v36, %v1668_v4  ;;  %2616 = vmatmul.f32.gmra.mxu1 %v6963_v11  ;;  %v2079_v16 = vpop.f32.mrf.mxu0  ;;  %v2196_v27 = vmax.f32 %v2164_v0, 0.0  ;;  %v1669_v4 = vadd.f32 %v6420_v19, %v8714_v62 }
 0x2c9   : > { %v6990_v10 = vsel %vm449_vm1, %v2462_v1, %v2464_v44  ;;  %v4653_v1 = vld [vmem:[%s8216_s3 + $0x218] sm:$0xff] }
 0x2ca   : > { %v1976_v22 = vadd.f32 %v1922_v31, %v1822_v40  ;;  %v6986_v0 = vrot.slane %v2196_v27, 7  ;;  %8716 = vst [vmem:[#allocation85_spill] sm:$0xff] %v6990_v10  ;;  %3235 = vmatpush.msrb.mxu1 %v4653_v1  ;;  %v2781_v1 = vrot.slane %v6543_v60, 2  ;;  %v8722_v60 = vld [vmem:[#allocation19_spill] sm:$0xff] }
 0x2cb   : > { %4625 = vmatmul.msk.f32.gmra.mxu0 %vm6803_vm4, %v6534_v53 }
 0x2cc   : > { %v2130_v9 = vadd.f32 %v2076_v5, %v1976_v22  ;;  %4561 = vmatmul.msk.f32.gmra.mxu2 %vm6803_vm4, %v6476_v20  ;;  %2924 = vmatmul.f32.gmra.mxu3 %v6972_v38  ;;  %8715 = vst [vmem:[#allocation84_spill] sm:$0xff] %v6986_v0  ;;  %v2779_v5 = vrot.slane %v6518_v55, 2  ;;  %v6996_v19 = vsel %vm291_vm0, 0.0, %v6986_v0 }
 0x2cd   : > { %v6982_v29 = vpop.f32.mrf.mxu1 }
 0x2ce   : > { %v2165_v36 = vadd.f32 %v6340_v46, %v2130_v9  ;;  %v6999_v46 = vsel %vm894_vm3, %v2777_v42, %v2779_v5  ;;  %v2466_v42 = vrot.slane %v6996_v19, 1  ;;  %v8719_v9 = vld [vmem:[#allocation62_spill] sm:$0xff] }
 0x2cf   : > { %v1771_v31 = vpop.f32.mrf.mxu2  ;;  %v1925_v40 = vpop.f32.mrf.mxu3  ;;  %8717 = vst [vmem:[#allocation23_spill] sm:$0xff] %v6999_v46  ;;  %v1670_v62 = vadd.f32 %v6459_v56, %v8719_v9 }
 0x2d0   : > { %v2197_v22 = vmax.f32 %v2165_v36, 0.0  ;;  %v1823_v11 = vadd.f32 %v1771_v31, %v1669_v4  ;;  %2619 = vmatmul.f32.gmra.mxu1 %v6990_v10  ;;  %v2082_v38 = vpop.f32.mrf.mxu0 }
 0x2d2   : > { %v2272_v20 = vrot.slane %v2197_v22, 7  ;;  %v1977_v34 = vadd.f32 %v1925_v40, %v1823_v11  ;;  %v2782_v40 = vrot.slane %v6549_v13, 2 }
 0x2d3   : > { %3089 = vmatmul.f32.gmra.mxu0 %v6549_v13 }
 0x2d4   : > { %v7004_v27 = vsel %vm291_vm0, %v6986_v0, %v2272_v20  ;;  %v2131_v55 = vadd.f32 %v2079_v16, %v1977_v34  ;;  %2690 = vmatmul.f32.gmra.mxu2 %v6494_v24  ;;  %2927 = vmatmul.f32.gmra.mxu3 %v6999_v46  ;;  %v7020_v34 = vld [vmem:[%s8215_s2] ss:$0 sm:$0xff]  ;;  %v7029_v56 = vsel %vm291_vm0, %v2272_v20, 0.0 }
 0x2d5   : > { %8718 = vst [vmem:[#allocation15_spill] sm:$0xff] %v7004_v27  ;;  %v7011_v11 = vpop.f32.mrf.mxu1  ;;  %v2467_v44 = vrot.slane %v7004_v27, 1 }
 0x2d6   : > { %v2166_v16 = vadd.f32 %v7020_v34, %v2131_v55  ;;  %v7033_v55 = vsel %vm894_vm3, %v2781_v1, %v2782_v40 }
 0x2d7   : > { %v1774_v4 = vpop.f32.mrf.mxu2  ;;  %v1928_v36 = vpop.f32.mrf.mxu3  ;;  %v7024_v31 = vsel %vm449_vm1, %v2466_v42, %v2467_v44  ;;  %8721 = vst [vmem:[#allocation17_spill] sm:$0xff] %v7033_v55  ;;  %v2469_v42 = vrot.slane %v7029_v56, 1 }
 0x2d8   : > { %8720 = vst [vmem:[#allocation26_spill] sm:$0xff] %v7024_v31  ;;  %v1824_v5 = vadd.f32 %v1774_v4, %v1670_v62  ;;  %2622 = vmatmul.f32.gmra.mxu1 %v7024_v31  ;;  %v2085_v22 = vpop.f32.mrf.mxu0  ;;  %v2198_v9 = vmax.f32 %v2166_v16, 0.0  ;;  %v1671_v16 = vadd.f32 %v6484_v25, %v8722_v60  ;;  %v8727_v60 = vld [vmem:[#allocation22_spill] sm:$0xff] }
 0x2d9   : > { %v7051_v31 = vsel %vm449_vm1, %v2467_v44, %v2469_v42 }
 0x2da   : > { %v1978_v46 = vadd.f32 %v1928_v36, %v1824_v5  ;;  %v7047_v4 = vrot.slane %v2198_v9, 7  ;;  %8724 = vst [vmem:[#allocation32_spill] sm:$0xff] %v7051_v31 }
 0x2db   : > { %4627 = vmatmul.msk.f32.gmra.mxu0 %vm6803_vm4, %v6608_v63 }
 0x2dc   : > { %v2132_v62 = vadd.f32 %v2082_v38, %v1978_v46  ;;  %4563 = vmatmul.msk.f32.gmra.mxu2 %vm6803_vm4, %v6534_v53  ;;  %2930 = vmatmul.f32.gmra.mxu3 %v7033_v55  ;;  %8723 = vst [vmem:[#allocation30_spill] sm:$0xff] %v7047_v4  ;;  %v2784_v38 = vrot.slane %v6576_v57, 2  ;;  %v7057_v25 = vsel %vm291_vm0, 0.0, %v7047_v4 }
 0x2dd   : > { %v7043_v20 = vpop.f32.mrf.mxu1 }
 0x2de   : > { %v2167_v36 = vadd.f32 %v7020_v34, %v2132_v62  ;;  %v7060_v9 = vsel %vm894_vm3, %v2782_v40, %v2784_v38  ;;  %v2471_v40 = vrot.slane %v7057_v25, 1  ;;  %v2787_v38 = vrot.slane %v6649_v37, 2 }
 0x2df   : > { %v1777_v5 = vpop.f32.mrf.mxu2  ;;  %v1931_v1 = vpop.f32.mrf.mxu3  ;;  %8725 = vst [vmem:[#allocation21_spill] sm:$0xff] %v7060_v9 }
 0x2e0   : > { %v2199_v46 = vmax.f32 %v2167_v36, 0.0  ;;  %v1825_v10 = vadd.f32 %v1777_v5, %v1671_v16  ;;  %2625 = vmatmul.f32.gmra.mxu1 %v7051_v31  ;;  %v2088_v55 = vpop.f32.mrf.mxu0  ;;  %v8728_v16 = vld [vmem:[#allocation36_spill] sm:$0xff] }
 0x2e1   : > { %v1672_v36 = vadd.f32 %v8728_v16, %v8727_v60 }
 0x2e2   : > { %v2275_v53 = vrot.slane %v2199_v46, 7  ;;  %v1979_v24 = vadd.f32 %v1931_v1, %v1825_v10  ;;  %v4652_v10 = vld [vmem:[%s8216_s3 + $0x210] sm:$0xff] }
 0x2e3   : > { %3095 = vmatmul.f32.gmra.mxu0 %v6649_v37  ;;  %3236 = vmatpush.msrb.mxu1 %v4652_v10  ;;  %v2786_v10 = vrot.slane %v6634_v43, 2  ;;  %v8732_v43 = vld [vmem:[#allocation63_spill] sm:$0xff] }
 0x2e4   : > { %v7065_v44 = vsel %vm291_vm0, %v7047_v4, %v2275_v53  ;;  %v2133_v57 = vadd.f32 %v2085_v22, %v1979_v24  ;;  %2696 = vmatmul.f32.gmra.mxu2 %v6549_v13  ;;  %2933 = vmatmul.f32.gmra.mxu3 %v7060_v9  ;;  %v7085_v31 = vsel %vm291_vm0, %v2275_v53, 0.0 }
 0x2e5   : > { %8726 = vst [vmem:[#allocation20_spill] sm:$0xff] %v7065_v44  ;;  %v7072_v42 = vpop.f32.mrf.mxu1  ;;  %v2472_v62 = vrot.slane %v7065_v44, 1 }
 0x2e6   : > { %v2168_v24 = vadd.f32 %v7020_v34, %v2133_v57  ;;  %v7089_v57 = vsel %vm894_vm3, %v2786_v10, %v2787_v38 }
 0x2e7   : > { %v1780_v22 = vpop.f32.mrf.mxu2  ;;  %v1934_v5 = vpop.f32.mrf.mxu3  ;;  %v7080_v1 = vsel %vm449_vm1, %v2471_v40, %v2472_v62  ;;  %8730 = vst [vmem:[#allocation47_spill] sm:$0xff] %v7089_v57  ;;  %v2474_v40 = vrot.slane %v7085_v31, 1 }
 0x2e8   : > { %8729 = vst [vmem:[#allocation24_spill] sm:$0xff] %v7080_v1  ;;  %v1826_v46 = vadd.f32 %v1780_v22, %v1672_v36  ;;  %2628 = vmatmul.f32.gmra.mxu1 %v7080_v1  ;;  %v2091_v9 = vpop.f32.mrf.mxu0  ;;  %v2200_v13 = vmax.f32 %v2168_v24, 0.0  ;;  %v1673_v36 = vadd.f32 %v6568_v33, %v8732_v43  ;;  %v8737_v43 = vld [vmem:[#allocation66_spill] sm:$0xff] }
 0x2e9   : > { %v7107_v10 = vsel %vm449_vm1, %v2472_v62, %v2474_v40 }
 0x2ea   : > { %v1980_v60 = vadd.f32 %v1934_v5, %v1826_v46  ;;  %v7103_v24 = vrot.slane %v2200_v13, 7  ;;  %8734 = vst [vmem:[#allocation52_spill] sm:$0xff] %v7107_v10 }
 0x2eb   : > { %4629 = vmatmul.msk.f32.gmra.mxu0 %vm6803_vm4, %v6717_v50 }
 0x2ec   : > { %v2134_v16 = vadd.f32 %v2088_v55, %v1980_v60  ;;  %4565 = vmatmul.msk.f32.gmra.mxu2 %vm6803_vm4, %v6608_v63  ;;  %2936 = vmatmul.f32.gmra.mxu3 %v7089_v57  ;;  %8733 = vst [vmem:[#allocation29_spill] sm:$0xff] %v7103_v24  ;;  %v2789_v55 = vrot.slane %v6683_v2, 2  ;;  %v7113_v13 = vsel %vm291_vm0, 0.0, %v7103_v24 }
 0x2ed   : > { %v7099_v53 = vpop.f32.mrf.mxu1 }
 0x2ee   : > { %8731 = vst [vmem:[#allocation49_spill] sm:$0xff] %v7099_v53  ;;  %v2169_v22 = vadd.f32 %v7020_v34, %v2134_v16  ;;  %v7116_v33 = vsel %vm894_vm3, %v2787_v38, %v2789_v55  ;;  %v2476_v38 = vrot.slane %v7113_v13, 1 }
 0x2ef   : > { %v1783_v5 = vpop.f32.mrf.mxu2  ;;  %v1937_v46 = vpop.f32.mrf.mxu3  ;;  %8735 = vst [vmem:[#allocation33_spill] sm:$0xff] %v7116_v33 }
 0x2f0   : > { %v2201_v60 = vmax.f32 %v2169_v22, 0.0  ;;  %v1827_v1 = vadd.f32 %v1783_v5, %v1673_v36  ;;  %2631 = vmatmul.f32.gmra.mxu1 %v7107_v10  ;;  %v2094_v57 = vpop.f32.mrf.mxu0  ;;  %v1674_v36 = vadd.f32 %v6623_v28, %v8737_v43 }
 0x2f2   : > { %v2278_v63 = vrot.slane %v2201_v60, 7  ;;  %v1981_v53 = vadd.f32 %v1937_v46, %v1827_v1  ;;  %v4651_v1 = vld [vmem:[%s8216_s3 + $0x208] sm:$0xff]  ;;  %v2792_v46 = vrot.slane %v6737_v45, 2 }
 0x2f3   : > { %3101 = vmatmul.f32.gmra.mxu0 %v6737_v45  ;;  %3237 = vmatpush.msrb.mxu1 %v4651_v1  ;;  %v2791_v1 = vrot.slane %v6729_v52, 2  ;;  %v8740_v52 = vld [vmem:[#allocation25_spill] sm:$0xff] }
 0x2f4   : > { %v7121_v62 = vsel %vm291_vm0, %v7103_v24, %v2278_v63  ;;  %v2135_v2 = vadd.f32 %v2091_v9, %v1981_v53  ;;  %2702 = vmatmul.f32.gmra.mxu2 %v6649_v37  ;;  %2939 = vmatmul.f32.gmra.mxu3 %v7116_v33  ;;  %v7141_v33 = vsel %vm291_vm0, %v2278_v63, 0.0 }
 0x2f5   : > { %8736 = vst [vmem:[#allocation56_spill] sm:$0xff] %v7121_v62  ;;  %v7128_v40 = vpop.f32.mrf.mxu1  ;;  %v2477_v16 = vrot.slane %v7121_v62, 1 }
 0x2f6   : > { %v2170_v9 = vadd.f32 %v7020_v34, %v2135_v2  ;;  %v7145_v2 = vsel %vm894_vm3, %v2791_v1, %v2792_v46 }
 0x2f7   : > { %v1786_v53 = vpop.f32.mrf.mxu2  ;;  %v1940_v22 = vpop.f32.mrf.mxu3  ;;  %v7136_v5 = vsel %vm449_vm1, %v2476_v38, %v2477_v16  ;;  %8739 = vst [vmem:[#allocation39_spill] sm:$0xff] %v7145_v2  ;;  %v2479_v38 = vrot.slane %v7141_v33, 1 }
 0x2f8   : > { %8738 = vst [vmem:[#allocation35_spill] sm:$0xff] %v7136_v5  ;;  %v1828_v55 = vadd.f32 %v1786_v53, %v1674_v36  ;;  %2634 = vmatmul.f32.gmra.mxu1 %v7136_v5  ;;  %v2097_v60 = vpop.f32.mrf.mxu0  ;;  %v2202_v10 = vmax.f32 %v2170_v9, 0.0  ;;  %v1675_v36 = vadd.f32 %v6688_v17, %v8740_v52 }
 0x2f9   : > { %v7163_v1 = vsel %vm449_vm1, %v2477_v16, %v2479_v38  ;;  %v4681_v16 = vld [vmem:[%s8216_s3 + $0x2f8] sm:$0xff] }
 0x2fa   : > { %v1982_v28 = vadd.f32 %v1940_v22, %v1828_v55  ;;  %v7159_v9 = vrot.slane %v2202_v10, 7  ;;  %8741 = vst [vmem:[#allocation41_spill] sm:$0xff] %v7163_v1  ;;  %v4650_v10 = vld [vmem:[%s8216_s3 + $0x200] sm:$0xff]  ;;  %3392 = vmatpush.msra.mxu2 %v4681_v16 }
 0x2fb   : > { %4631 = vmatmul.msk.f32.gmra.mxu0 %vm6803_vm4, %v6769_v7  ;;  %3238 = vmatpush.msrb.mxu1 %v4650_v10  ;;  %v2797_v10 = vrot.slane %v6784_v32, 2 }
 0x2fc   : > { %v2136_v43 = vadd.f32 %v2094_v57, %v1982_v28  ;;  %4567 = vmatmul.msk.f32.gmra.mxu2 %vm6803_vm4, %v6717_v50  ;;  %2942 = vmatmul.f32.gmra.mxu3 %v7145_v2  ;;  %v2794_v57 = vrot.slane %v6756_v15, 2  ;;  %v7169_v17 = vsel %vm291_vm0, 0.0, %v7159_v9  ;;  %v4697_v15 = vld [vmem:[%s8216_s3 + $0x378] sm:$0xff] }
 0x2fd   : > { %v7155_v63 = vpop.f32.mrf.mxu1  ;;  %3554 = vmatpush.msra.mxu3 %v4697_v15 }
 0x2fe   : > { %v2171_v53 = vadd.f32 %v7020_v34, %v2136_v43  ;;  %v7181_v38 = vsel %vm894_vm3, %v2792_v46, %v2794_v57  ;;  %v4745_v46 = vld [vmem:[%s8216_s3 + $0x3f8] sm:$0xff] }
 0x2ff   : > { %v1789_v22 = vpop.f32.mrf.mxu2  ;;  %v1943_v55 = vpop.f32.mrf.mxu3  ;;  %8742 = vst [vmem:[#allocation38_spill] sm:$0xff] %v7181_v38  ;;  %3716 = vmatpush.msra.mxu0 %v4745_v46  ;;  %v4761_v46 = vld [vmem:[%s8216_s3 + $0x478] sm:$0xff] }
 0x300   : > { %v2203_v28 = vmax.f32 %v2171_v53, 0.0  ;;  %v1829_v5 = vadd.f32 %v1789_v22, %v1675_v36  ;;  %2637 = vmatmul.f32.gmra.mxu1 %v7163_v1  ;;  %v2100_v2 = vpop.f32.mrf.mxu0  ;;  %v2481_v36 = vrot.slane %v7169_v17, 1  ;;  %v8743_v22 = vld [vmem:[#allocation64_spill] sm:$0xff]  ;;  %v2801_v1 = vrot.slane %v6833_v48, 2  ;;  %v4679_v48 = vld [vmem:[%s8216_s3 + $0x2e8] sm:$0xff] }
 0x301   : > { %3878 = vmatpush.msra.mxu1 %v4761_v46  ;;  %v2799_v46 = vrot.slane %v6808_v54, 2 }
 0x302   : > { %v2281_v50 = vrot.slane %v2203_v28, 7  ;;  %v1983_v37 = vadd.f32 %v1943_v55, %v1829_v5  ;;  %v1676_v55 = vadd.f32 %v6733_v41, %v8743_v22  ;;  %v2796_v41 = vrot.slane %v6778_v59, 2  ;;  %v4680_v59 = vld [vmem:[%s8216_s3 + $0x2f0] sm:$0xff] }
 0x303   : > { %3107 = vmatmul.f32.gmra.mxu0 %v6784_v32  ;;  %3393 = vmatpush.msra.mxu2 %v4680_v59 }
 0x304   : > { %v7186_v5 = vsel %vm291_vm0, %v7159_v9, %v2281_v50  ;;  %v2137_v43 = vadd.f32 %v2097_v60, %v1983_v37  ;;  %2708 = vmatmul.f32.gmra.mxu2 %v6737_v45  ;;  %2945 = vmatmul.f32.gmra.mxu3 %v7181_v38  ;;  %v7208_v15 = vsel %vm291_vm0, %v2281_v50, 0.0 }
 0x305   : > { %v7190_v52 = vpop.f32.mrf.mxu1  ;;  %v2482_v53 = vrot.slane %v7186_v5, 1  ;;  %3394 = vmatpush.msra.mxu2 %v4679_v48 }
 0x306   : > { %v2172_v37 = vadd.f32 %v7020_v34, %v2137_v43 }
 0x307   : > { %v1792_v60 = vpop.f32.mrf.mxu2  ;;  %v1946_v57 = vpop.f32.mrf.mxu3  ;;  %v7201_v28 = vsel %vm449_vm1, %v2481_v36, %v2482_v53  ;;  %v7215_v36 = vsel %vm894_vm3, %v2796_v41, %v2797_v10 }
 0x308   : > { %8744 = vst [vmem:[#allocation3_spill] sm:$0xff] %v7201_v28  ;;  %v1830_v38 = vadd.f32 %v1792_v60, %v1676_v55  ;;  %2640 = vmatmul.f32.gmra.mxu1 %v7201_v28  ;;  %v7205_v16 = vpop.f32.mrf.mxu0  ;;  %v2204_v22 = vmax.f32 %v2172_v37, 0.0  ;;  %v2484_v55 = vrot.slane %v7208_v15, 1  ;;  %v4696_v37 = vld [vmem:[%s8216_s3 + $0x370] sm:$0xff] }
 0x309   : > { %8745 = vst [vmem:[#allocation42_spill] sm:$0xff] %v7215_v36  ;;  %3555 = vmatpush.msra.mxu3 %v4696_v37 }
 0x30a   : > { %v1984_v43 = vadd.f32 %v1946_v57, %v1830_v38  ;;  %v7233_v60 = vrot.slane %v2204_v22, 7 }
 0x30b   : > { %4633 = vmatmul.msk.f32.gmra.mxu0 %vm6803_vm4, %v6822_v12 }
 0x30c   : > { %v2138_v50 = vadd.f32 %v2100_v2, %v1984_v43  ;;  %4569 = vmatmul.msk.f32.gmra.mxu2 %vm6803_vm4, %v6769_v7  ;;  %2948 = vmatmul.f32.gmra.mxu3 %v7215_v36  ;;  %8746 = vst [vmem:[#allocation18_spill] sm:$0xff] %v7233_v60  ;;  %v7241_v43 = vsel %vm449_vm1, %v2482_v53, %v2484_v55  ;;  %v7249_v22 = vsel %vm291_vm0, 0.0, %v7233_v60 }
 0x30d   : > { %v7228_v38 = vpop.f32.mrf.mxu1  ;;  %8747 = vst [vmem:[#allocation44_spill] sm:$0xff] %v7241_v43 }
 0x30e   : > { %v2173_v2 = vadd.f32 %v7020_v34, %v2138_v50  ;;  %v7252_v50 = vsel %vm894_vm3, %v2797_v10, %v2799_v46  ;;  %v4744_v10 = vld [vmem:[%s8216_s3 + $0x3f0] sm:$0xff] }
 0x30f   : > { %v7236_v57 = vpop.f32.mrf.mxu2  ;;  %v7238_v41 = vpop.f32.mrf.mxu3  ;;  %8748 = vst [vmem:[#allocation50_spill] sm:$0xff] %v7252_v50  ;;  %3717 = vmatpush.msra.mxu0 %v4744_v10  ;;  %v4760_v10 = vld [vmem:[%s8216_s3 + $0x470] sm:$0xff] }
 0x310   : > { %v2205_v36 = vmax.f32 %v2173_v2, 0.0  ;;  %2643 = vmatmul.f32.gmra.mxu1 %v7241_v43  ;;  %v7245_v59 = vpop.f32.mrf.mxu0 }
 0x311   : > { %3879 = vmatpush.msra.mxu1 %v4760_v10 }
 0x312   : > { %v2284_v28 = vrot.slane %v2205_v36, 7  ;;  %v2486_v36 = vrot.slane %v7249_v22, 1 }
 0x313   : > { %3113 = vmatmul.f32.gmra.mxu0 %v6838_v18 }
 0x314   : > { %v7257_v53 = vsel %vm291_vm0, %v7233_v60, %v2284_v28  ;;  %2714 = vmatmul.f32.gmra.mxu2 %v6784_v32  ;;  %2951 = vmatmul.f32.gmra.mxu3 %v7252_v50  ;;  %v2802_v50 = vrot.slane %v6838_v18, 2  ;;  %v7278_v32 = vsel %vm291_vm0, %v2284_v28, 0.0 }
 0x315   : > { %8749 = vst [vmem:[#allocation57_spill] sm:$0xff] %v7257_v53  ;;  %v7261_v54 = vpop.f32.mrf.mxu1  ;;  %v2487_v55 = vrot.slane %v7257_v53, 1 }
 0x316   : > { %8750 = vst [vmem:[#allocation59_spill] sm:$0xff] %v7261_v54  ;;  %v7285_v7 = vsel %vm894_vm3, %v2801_v1, %v2802_v50  ;;  %v4695_v1 = vld [vmem:[%s8216_s3 + $0x368] sm:$0xff] }
 0x317   : > { %v7268_v37 = vpop.f32.mrf.mxu2  ;;  %v7270_v2 = vpop.f32.mrf.mxu3  ;;  %v7273_v46 = vsel %vm449_vm1, %v2486_v36, %v2487_v55  ;;  %8752 = vst [vmem:[#allocation16_spill] sm:$0xff] %v7278_v32  ;;  %v2489_v36 = vrot.slane %v7278_v32, 1  ;;  %3556 = vmatpush.msra.mxu3 %v4695_v1 }
 0x318   : > { %8751 = vst [vmem:[#allocation12_spill] sm:$0xff] %v7273_v46  ;;  %2646 = vmatmul.f32.gmra.mxu1 %v7273_v46  ;;  %v3069_v43 = vpop.f32.mrf.mxu0 }
 0x319   : > { %8753 = vst [vmem:[#allocation62_spill] sm:$0xff] %v7285_v7  ;;  %v7304_v45 = vsel %vm449_vm1, %v2487_v55, %v2489_v36 }
 0x31b   : > { %4635 = vmatmul.msk.f32.gmra.mxu0 %vm6803_vm4, %v6874_v14 }
 0x31c   : > { %4571 = vmatmul.msk.f32.gmra.mxu2 %vm6803_vm4, %v6822_v12  ;;  %2954 = vmatmul.f32.gmra.mxu3 %v7285_v7  ;;  %v2804_v12 = vrot.slane %v6856_v26, 2 }
 0x31d   : > { %v7298_v28 = vpop.f32.mrf.mxu1 }
 0x31e   : > { %v7310_v48 = vsel %vm894_vm3, %v2802_v50, %v2804_v12  ;;  %v2807_v12 = vrot.slane %v6892_v21, 2 }
 0x31f   : > { %v2670_v46 = vpop.f32.mrf.mxu2  ;;  %v2907_v10 = vpop.f32.mrf.mxu3  ;;  %8754 = vst [vmem:[#allocation19_spill] sm:$0xff] %v7310_v48 }
 0x320   : > { %v2671_v7 = vadd.f32 %v2670_v46, %v6829_v61  ;;  %2649 = vmatmul.f32.gmra.mxu1 %v7304_v45  ;;  %v3072_v54 = vpop.f32.mrf.mxu0  ;;  %v4743_v61 = vld [vmem:[%s8216_s3 + $0x3e8] sm:$0xff]  ;;  %v8756_v46 = vld [vmem:[#allocation65_spill] sm:$0xff] }
 0x321   : > { %3718 = vmatpush.msra.mxu0 %v4743_v61 }
 0x322   : > { %v3003_v32 = vadd.f32 %v2907_v10, %v2671_v7  ;;  %v2806_v10 = vrot.slane %v6884_v23, 2 }
 0x323   : > { %3119 = vmatmul.f32.gmra.mxu0 %v6892_v21 }
 0x324   : > { %2720 = vmatmul.f32.gmra.mxu2 %v6838_v18  ;;  %2957 = vmatmul.f32.gmra.mxu3 %v7310_v48  ;;  %v7315_v1 = vadd.f32 %v3069_v43, %v3003_v32  ;;  %v4759_v43 = vld [vmem:[%s8216_s3 + $0x468] sm:$0xff] }
 0x325   : > { %v7317_v55 = vpop.f32.mrf.mxu1  ;;  %3880 = vmatpush.msra.mxu1 %v4759_v43  ;;  %v8759_v43 = vld [vmem:[#allocation27_spill] sm:$0xff] }
 0x326   : > { %8755 = vst [vmem:[#allocation22_spill] sm:$0xff] %v7315_v1  ;;  %v7330_v1 = vsel %vm894_vm3, %v2806_v10, %v2807_v12 }
 0x327   : > { %v2673_v26 = vpop.f32.mrf.mxu2  ;;  %v2910_v7 = vpop.f32.mrf.mxu3  ;;  %8757 = vst [vmem:[#allocation36_spill] sm:$0xff] %v7330_v1 }
 0x328   : > { %v2674_v50 = vadd.f32 %v2673_v26, %v6865_v30  ;;  %3239 = vmatmul.f32.vlgmr.msrb.gmra.mxu1 %v8756_v46  ;;  %v3075_v36 = vpop.f32.mrf.mxu0  ;;  %v4678_v30 = vld [vmem:[%s8216_s3 + $0x2e0] sm:$0xff]  ;;  %v2809_v46 = vrot.slane %v6912_v58, 2 }
 0x329   : > { %3395 = vmatpush.msra.mxu2 %v4678_v30  ;;  %v4694_v26 = vld [vmem:[%s8216_s3 + $0x360] sm:$0xff] }
 0x32a   : > { %v3004_v32 = vadd.f32 %v2910_v7, %v2674_v50  ;;  %3557 = vmatpush.msra.mxu3 %v4694_v26 }
 0x32b   : > { %4637 = vmatmul.msk.f32.gmra.mxu0 %vm6803_vm4, %v6930_v49 }
 0x32c   : > { %4573 = vmatmul.msk.f32.gmra.mxu2 %vm6803_vm4, %v6874_v14  ;;  %2960 = vmatmul.f32.gmra.mxu3 %v7330_v1  ;;  %v7342_v23 = vadd.f32 %v3072_v54, %v3004_v32  ;;  %v7353_v54 = vsel %vm894_vm3, %v2807_v12, %v2809_v46  ;;  %v2812_v12 = vrot.slane %v6948_v39, 2 }
 0x32d   : > { %v7344_v61 = vpop.f32.mrf.mxu1 }
 0x32e   : > { %8758 = vst [vmem:[#allocation63_spill] sm:$0xff] %v7342_v23 }
 0x32f   : > { %v2676_v7 = vpop.f32.mrf.mxu2  ;;  %v2913_v50 = vpop.f32.mrf.mxu3 }
 0x330   : > { %v2677_v10 = vadd.f32 %v2676_v7, %v6899_v51  ;;  %3242 = vmatmul.f32.gmra.mxu1 %v8759_v43  ;;  %v3078_v1 = vpop.f32.mrf.mxu0  ;;  %v4742_v51 = vld [vmem:[%s8216_s3 + $0x3e0] sm:$0xff] }
 0x331   : > { %3719 = vmatpush.msra.mxu0 %v4742_v51 }
 0x332   : > { %v3005_v48 = vadd.f32 %v2913_v50, %v2677_v10  ;;  %v8761_v50 = vld [vmem:[#allocation67_spill] sm:$0xff]  ;;  %v2811_v10 = vrot.slane %v6940_v3, 2 }
 0x333   : > { %3125 = vmatmul.f32.gmra.mxu0 %v6948_v39 }
 0x334   : > { %2726 = vmatmul.f32.gmra.mxu2 %v6892_v21  ;;  %2963 = vmatmul.f32.gmra.mxu3 %v7353_v54  ;;  %v7358_v32 = vadd.f32 %v3075_v36, %v3005_v48  ;;  %v4758_v36 = vld [vmem:[%s8216_s3 + $0x460] sm:$0xff]  ;;  %v7373_v43 = vsel %vm894_vm3, %v2811_v10, %v2812_v12  ;;  %v2814_v10 = vrot.slane %v6968_v6, 2  ;;  %v4741_v6 = vld [vmem:[%s8216_s3 + $0x3d8] sm:$0xff] }
 0x335   : > { %v7360_v30 = vpop.f32.mrf.mxu1  ;;  %8762 = vst [vmem:[#allocation25_spill] sm:$0xff] %v7373_v43  ;;  %3881 = vmatpush.msra.mxu1 %v4758_v36  ;;  %3720 = vmatpush.msra.mxu0 %v4741_v6 }
 0x336   : > { %8760 = vst [vmem:[#allocation66_spill] sm:$0xff] %v7358_v32  ;;  %v8764_v32 = vld [vmem:[#allocation40_spill] sm:$0xff] }
 0x337   : > { %v2679_v58 = vpop.f32.mrf.mxu2  ;;  %v2916_v26 = vpop.f32.mrf.mxu3 }
 0x338   : > { %v2680_v7 = vadd.f32 %v2679_v58, %v6926_v47  ;;  %3245 = vmatmul.f32.gmra.mxu1 %v8761_v50  ;;  %v3081_v46 = vpop.f32.mrf.mxu0  ;;  %v4677_v47 = vld [vmem:[%s8216_s3 + $0x2d8] sm:$0xff] }
 0x339   : > { %3396 = vmatpush.msra.mxu2 %v4677_v47  ;;  %v4693_v58 = vld [vmem:[%s8216_s3 + $0x358] sm:$0xff] }
 0x33a   : > { %v3006_v48 = vadd.f32 %v2916_v26, %v2680_v7  ;;  %3558 = vmatpush.msra.mxu3 %v4693_v58 }
 0x33b   : > { %4639 = vmatmul.msk.f32.gmra.mxu0 %vm6803_vm4, %v6986_v0 }
 0x33c   : > { %4575 = vmatmul.msk.f32.gmra.mxu2 %vm6803_vm4, %v6930_v49  ;;  %2966 = vmatmul.f32.gmra.mxu3 %v7373_v43  ;;  %v7385_v3 = vadd.f32 %v3078_v1, %v3006_v48  ;;  %v7396_v1 = vsel %vm894_vm3, %v2812_v12, %v2814_v10  ;;  %v2817_v12 = vrot.slane %v7004_v27, 2 }
 0x33d   : > { %v7387_v51 = vpop.f32.mrf.mxu1  ;;  %8765 = vst [vmem:[#allocation65_spill] sm:$0xff] %v7396_v1 }
 0x33e   : > { %8763 = vst [vmem:[#allocation64_spill] sm:$0xff] %v7385_v3 }
 0x33f   : > { %v2682_v26 = vpop.f32.mrf.mxu2  ;;  %v2919_v7 = vpop.f32.mrf.mxu3 }
 0x340   : > { %v2683_v36 = vadd.f32 %v2682_v26, %v6955_v35  ;;  %3248 = vmatmul.f32.gmra.mxu1 %v8764_v32  ;;  %v3084_v43 = vpop.f32.mrf.mxu0 }
 0x342   : > { %v3007_v23 = vadd.f32 %v2919_v7, %v2683_v36  ;;  %v8767_v7 = vld [vmem:[#allocation72_spill] sm:$0xff]  ;;  %v2816_v36 = vrot.slane %v6996_v19, 2 }
 0x343   : > { %3131 = vmatmul.f32.gmra.mxu0 %v7004_v27 }
 0x344   : > { %2732 = vmatmul.f32.gmra.mxu2 %v6948_v39  ;;  %2969 = vmatmul.f32.gmra.mxu3 %v7396_v1  ;;  %v7401_v48 = vadd.f32 %v3081_v46, %v3007_v23  ;;  %v4757_v46 = vld [vmem:[%s8216_s3 + $0x458] sm:$0xff] }
 0x345   : > { %v7403_v47 = vpop.f32.mrf.mxu1  ;;  %3882 = vmatpush.msra.mxu1 %v4757_v46 }
 0x346   : > { %8766 = vst [vmem:[#allocation27_spill] sm:$0xff] %v7401_v48  ;;  %v7416_v48 = vsel %vm894_vm3, %v2816_v36, %v2817_v12  ;;  %v2819_v36 = vrot.slane %v7029_v56, 2 }
 0x347   : > { %v2685_v35 = vpop.f32.mrf.mxu2  ;;  %v2922_v58 = vpop.f32.mrf.mxu3  ;;  %8768 = vst [vmem:[#allocation67_spill] sm:$0xff] %v7416_v48 }
 0x348   : > { %v2686_v26 = vadd.f32 %v2685_v35, %v6982_v29  ;;  %3251 = vmatmul.f32.gmra.mxu1 %v8767_v7  ;;  %v3087_v10 = vpop.f32.mrf.mxu0  ;;  %v4676_v29 = vld [vmem:[%s8216_s3 + $0x2d0] sm:$0xff] }
 0x349   : > { %3397 = vmatpush.msra.mxu2 %v4676_v29  ;;  %v4692_v35 = vld [vmem:[%s8216_s3 + $0x350] sm:$0xff] }
 0x34a   : > { %v3008_v23 = vadd.f32 %v2922_v58, %v2686_v26  ;;  %3559 = vmatpush.msra.mxu3 %v4692_v35 }
 0x34b   : > { %4641 = vmatmul.msk.f32.gmra.mxu0 %vm6803_vm4, %v7047_v4 }
 0x34c   : > { %4577 = vmatmul.msk.f32.gmra.mxu2 %vm6803_vm4, %v6986_v0  ;;  %2972 = vmatmul.f32.gmra.mxu3 %v7416_v48  ;;  %v7428_v19 = vadd.f32 %v3084_v43, %v3008_v23  ;;  %v8770_v48 = vld [vmem:[#allocation70_spill] sm:$0xff]  ;;  %v7439_v43 = vsel %vm894_vm3, %v2817_v12, %v2819_v36  ;;  %v2822_v12 = vrot.slane %v7065_v44, 2 }
 0x34d   : > { %v7430_v6 = vpop.f32.mrf.mxu1  ;;  %8771 = vst [vmem:[#allocation72_spill] sm:$0xff] %v7439_v43 }
 0x34e   : > { %8769 = vst [vmem:[#allocation40_spill] sm:$0xff] %v7428_v19 }
 0x34f   : > { %v2688_v58 = vpop.f32.mrf.mxu2  ;;  %v2925_v26 = vpop.f32.mrf.mxu3 }
 0x350   : > { %v2689_v46 = vadd.f32 %v2688_v58, %v7011_v11  ;;  %3254 = vmatmul.f32.gmra.mxu1 %v8770_v48  ;;  %v3090_v3 = vpop.f32.mrf.mxu0  ;;  %v4740_v11 = vld [vmem:[%s8216_s3 + $0x3d0] sm:$0xff] }
 0x351   : > { %3721 = vmatpush.msra.mxu0 %v4740_v11 }
 0x352   : > { %v3009_v1 = vadd.f32 %v2925_v26, %v2689_v46  ;;  %v8773_v26 = vld [vmem:[#allocation48_spill] sm:$0xff]  ;;  %v2821_v46 = vrot.slane %v7057_v25, 2 }
 0x353   : > { %3137 = vmatmul.f32.gmra.mxu0 %v7065_v44 }
 0x354   : > { %2738 = vmatmul.f32.gmra.mxu2 %v7004_v27  ;;  %2975 = vmatmul.f32.gmra.mxu3 %v7439_v43  ;;  %v7444_v23 = vadd.f32 %v3087_v10, %v3009_v1  ;;  %v4756_v10 = vld [vmem:[%s8216_s3 + $0x450] sm:$0xff] }
 0x355   : > { %v7446_v29 = vpop.f32.mrf.mxu1  ;;  %3883 = vmatpush.msra.mxu1 %v4756_v10 }
 0x356   : > { %8772 = vst [vmem:[#allocation70_spill] sm:$0xff] %v7444_v23  ;;  %v7459_v23 = vsel %vm894_vm3, %v2821_v46, %v2822_v12  ;;  %v2824_v46 = vrot.slane %v7085_v31, 2  ;;  %v4739_v31 = vld [vmem:[%s8216_s3 + $0x3c8] sm:$0xff] }
 0x357   : > { %v2691_v56 = vpop.f32.mrf.mxu2  ;;  %v2928_v35 = vpop.f32.mrf.mxu3  ;;  %8774 = vst [vmem:[#allocation48_spill] sm:$0xff] %v7459_v23  ;;  %3722 = vmatpush.msra.mxu0 %v4739_v31  ;;  %v4674_v31 = vld [vmem:[%s8216_s3 + $0x2c0] sm:$0xff] }
 0x358   : > { %v2692_v58 = vadd.f32 %v2691_v56, %v7043_v20  ;;  %3257 = vmatmul.f32.gmra.mxu1 %v8773_v26  ;;  %v3093_v36 = vpop.f32.mrf.mxu0  ;;  %v4675_v20 = vld [vmem:[%s8216_s3 + $0x2c8] sm:$0xff] }
 0x359   : > { %3398 = vmatpush.msra.mxu2 %v4675_v20  ;;  %v4691_v56 = vld [vmem:[%s8216_s3 + $0x348] sm:$0xff] }
 0x35a   : > { %v3010_v1 = vadd.f32 %v2928_v35, %v2692_v58  ;;  %3560 = vmatpush.msra.mxu3 %v4691_v56 }
 0x35b   : > { %4643 = vmatmul.msk.f32.gmra.mxu0 %vm6803_vm4, %v7103_v24  ;;  %3399 = vmatpush.msra.mxu2 %v4674_v31 }
 0x35c   : > { %4579 = vmatmul.msk.f32.gmra.mxu2 %vm6803_vm4, %v7047_v4  ;;  %2978 = vmatmul.f32.gmra.mxu3 %v7459_v23  ;;  %v7471_v25 = vadd.f32 %v3090_v3, %v3010_v1  ;;  %v8776_v23 = vld [vmem:[#allocation75_spill] sm:$0xff]  ;;  %v7482_v3 = vsel %vm894_vm3, %v2822_v12, %v2824_v46  ;;  %v2827_v12 = vrot.slane %v7121_v62, 2 }
 0x35d   : > { %v7473_v11 = vpop.f32.mrf.mxu1  ;;  %8777 = vst [vmem:[#allocation75_spill] sm:$0xff] %v7482_v3  ;;  %v8780_v46 = vld [vmem:[#allocation51_spill] sm:$0xff] }
 0x35e   : > { %8775 = vst [vmem:[#allocation86_spill] sm:$0xff] %v7471_v25  ;;  %v2826_v25 = vrot.slane %v7113_v13, 2  ;;  %v4738_v13 = vld [vmem:[%s8216_s3 + $0x3c0] sm:$0xff] }
 0x35f   : > { %v2694_v35 = vpop.f32.mrf.mxu2  ;;  %v2931_v58 = vpop.f32.mrf.mxu3  ;;  %3723 = vmatpush.msra.mxu0 %v4738_v13  ;;  %v8783_v13 = vld [vmem:[#allocation77_spill] sm:$0xff] }
 0x360   : > { %v2695_v10 = vadd.f32 %v2694_v35, %v7072_v42  ;;  %3260 = vmatmul.f32.gmra.mxu1 %v8776_v23  ;;  %v3096_v19 = vpop.f32.mrf.mxu0  ;;  %v8779_v35 = vld [vmem:[#allocation49_spill] sm:$0xff] }
 0x362   : > { %v3011_v43 = vadd.f32 %v2931_v58, %v2695_v10 }
 0x363   : > { %3143 = vmatmul.f32.gmra.mxu0 %v7121_v62 }
 0x364   : > { %2744 = vmatmul.f32.gmra.mxu2 %v7065_v44  ;;  %2981 = vmatmul.f32.gmra.mxu3 %v7482_v3  ;;  %v7487_v1 = vadd.f32 %v3093_v36, %v3011_v43  ;;  %v4755_v36 = vld [vmem:[%s8216_s3 + $0x448] sm:$0xff]  ;;  %v4688_v3 = vld [vmem:[%s8216_s3 + $0x330] sm:$0xff] }
 0x365   : > { %v7489_v20 = vpop.f32.mrf.mxu1  ;;  %3884 = vmatpush.msra.mxu1 %v4755_v36  ;;  %v4737_v36 = vld [vmem:[%s8216_s3 + $0x3b8] sm:$0xff]  ;;  %v4671_v44 = vld [vmem:[%s8216_s3 + $0x2a8] sm:$0xff] }
 0x366   : > { %8778 = vst [vmem:[#allocation87_spill] sm:$0xff] %v7487_v1  ;;  %v4690_v1 = vld [vmem:[%s8216_s3 + $0x340] sm:$0xff]  ;;  %3724 = vmatpush.msra.mxu0 %v4737_v36 }
 0x367   : > { %v2697_v42 = vpop.f32.mrf.mxu2  ;;  %v2934_v56 = vpop.f32.mrf.mxu3  ;;  %3561 = vmatpush.msra.mxu3 %v4690_v1  ;;  %v4736_v1 = vld [vmem:[%s8216_s3 + $0x3b0] sm:$0xff] }
 0x368   : > { %v2698_v58 = vadd.f32 %v2697_v42, %v8779_v35  ;;  %3263 = vmatmul.f32.gmra.mxu1 %v8780_v46  ;;  %v3099_v10 = vpop.f32.mrf.mxu0  ;;  %v7508_v42 = vsel %vm894_vm3, %v2826_v25, %v2827_v12  ;;  %v4673_v25 = vld [vmem:[%s8216_s3 + $0x2b8] sm:$0xff]  ;;  %3725 = vmatpush.msra.mxu0 %v4736_v1 }
 0x369   : > { %8781 = vst [vmem:[#allocation49_spill] sm:$0xff] %v7508_v42  ;;  %3400 = vmatpush.msra.mxu2 %v4673_v25  ;;  %v8785_v25 = vld [vmem:[#allocation74_spill] sm:$0xff]  ;;  %v4669_v1 = vld [vmem:[%s8216_s3 + $0x298] sm:$0xff] }
 0x36a   : > { %v3012_v43 = vadd.f32 %v2934_v56, %v2698_v58  ;;  %v4689_v56 = vld [vmem:[%s8216_s3 + $0x338] sm:$0xff] }
 0x36b   : > { %4645 = vmatmul.msk.f32.gmra.mxu0 %vm6803_vm4, %v7159_v9  ;;  %3562 = vmatpush.msra.mxu3 %v4689_v56 }
 0x36c   : > { %4581 = vmatmul.msk.f32.gmra.mxu2 %vm6803_vm4, %v7103_v24  ;;  %2984 = vmatmul.f32.gmra.mxu3 %v7508_v42  ;;  %v7526_v35 = vadd.f32 %v3096_v19, %v3012_v43  ;;  %v4672_v42 = vld [vmem:[%s8216_s3 + $0x2b0] sm:$0xff]  ;;  %v2829_v43 = vrot.slane %v7141_v33, 2  ;;  %v4687_v33 = vld [vmem:[%s8216_s3 + $0x328] sm:$0xff] }
 0x36d   : > { %v7528_v58 = vpop.f32.mrf.mxu1  ;;  %3401 = vmatpush.msra.mxu2 %v4672_v42  ;;  %3563 = vmatpush.msra.mxu3 %v4688_v3  ;;  %v4670_v3 = vld [vmem:[%s8216_s3 + $0x2a0] sm:$0xff] }
 0x36e   : > { %8782 = vst [vmem:[#allocation51_spill] sm:$0xff] %v7526_v35  ;;  %v7557_v36 = vsel %vm894_vm3, %v2827_v12, %v2829_v43  ;;  %v4686_v42 = vld [vmem:[%s8216_s3 + $0x320] sm:$0xff] }
 0x36f   : > { %v2700_v24 = vpop.f32.mrf.mxu2  ;;  %v2937_v19 = vpop.f32.mrf.mxu3  ;;  %8786 = vst [vmem:[#allocation77_spill] sm:$0xff] %v7557_v36  ;;  %3402 = vmatpush.msra.mxu2 %v4671_v44  ;;  %v4734_v12 = vld [vmem:[%s8216_s3 + $0x3a0] sm:$0xff]  ;;  %3564 = vmatpush.msra.mxu3 %v4687_v33  ;;  %v4668_v33 = vld [vmem:[%s8216_s3 + $0x290] sm:$0xff] }
 0x370   : > { %v2701_v31 = vadd.f32 %v2700_v24, %v7128_v40  ;;  %3266 = vmatmul.f32.gmra.mxu1 %v8783_v13  ;;  %v3102_v35 = vpop.f32.mrf.mxu0  ;;  %v4735_v24 = vld [vmem:[%s8216_s3 + $0x3a8] sm:$0xff]  ;;  %v8784_v40 = vld [vmem:[#allocation28_spill] sm:$0xff] }
 0x371   : > { %v1677_v56 = vadd.f32 %v8785_v25, %v8784_v40  ;;  %3726 = vmatpush.msra.mxu0 %v4735_v24  ;;  %3403 = vmatpush.msra.mxu2 %v4670_v3  ;;  %v8788_v24 = vld [vmem:[#allocation31_spill] sm:$0xff]  ;;  %v8789_v25 = vld [vmem:[#allocation81_spill] sm:$0xff] }
 0x372   : > { %v3013_v4 = vadd.f32 %v2937_v19, %v2701_v31  ;;  %v4685_v31 = vld [vmem:[%s8216_s3 + $0x318] sm:$0xff]  ;;  %3565 = vmatpush.msra.mxu3 %v4686_v42 }
 0x373   : > { %3149 = vmatmul.f32.gmra.mxu0 %v7186_v5  ;;  %v1831_v44 = vadd.f32 %v7236_v57, %v1677_v56  ;;  %v2832_v57 = vrot.slane %v7186_v5, 2  ;;  %v1678_v56 = vadd.f32 %v8789_v25, %v8788_v24  ;;  %3404 = vmatpush.msra.mxu2 %v4669_v1  ;;  %v4754_v1 = vld [vmem:[%s8216_s3 + $0x440] sm:$0xff]  ;;  %v2834_v24 = vrot.slane %v7208_v15, 2 }
 0x374   : > { %2750 = vmatmul.f32.gmra.mxu2 %v7121_v62  ;;  %2987 = vmatmul.f32.gmra.mxu3 %v7557_v36  ;;  %v7571_v19 = vadd.f32 %v3099_v10, %v3013_v4  ;;  %v4733_v4 = vld [vmem:[%s8216_s3 + $0x398] sm:$0xff]  ;;  %v4684_v62 = vld [vmem:[%s8216_s3 + $0x310] sm:$0xff] }
 0x375   : > { %v7574_v43 = vpop.f32.mrf.mxu1  ;;  %3727 = vmatpush.msra.mxu0 %v4734_v12  ;;  %v1985_v42 = vadd.f32 %v7238_v41, %v1831_v44  ;;  %v2831_v12 = vrot.slane %v7169_v17, 2  ;;  %3566 = vmatpush.msra.mxu3 %v4685_v31  ;;  %v1832_v27 = vadd.f32 %v7268_v37, %v1678_v56  ;;  %v4667_v17 = vld [vmem:[%s8216_s3 + $0x288] sm:$0xff]  ;;  %v8792_v56 = vld [vmem:[#allocation53_spill] sm:$0xff] }
 0x376   : > { %8787 = vst [vmem:[#allocation28_spill] sm:$0xff] %v7571_v19  ;;  %v8790_v19 = vld [vmem:[#allocation55_spill] sm:$0xff]  ;;  %3405 = vmatpush.msra.mxu2 %v4668_v33  ;;  %3885 = vmatpush.msra.mxu1 %v4754_v1  ;;  %v4682_v33 = vld [vmem:[%s8216_s3 + $0x300] sm:$0xff] }
 0x377   : > { %v2703_v10 = vpop.f32.mrf.mxu2  ;;  %v2940_v40 = vpop.f32.mrf.mxu3  ;;  %3728 = vmatpush.msra.mxu0 %v4733_v4  ;;  %3567 = vmatpush.msra.mxu3 %v4684_v62  ;;  %v4683_v41 = vld [vmem:[%s8216_s3 + $0x308] sm:$0xff]  ;;  %v2139_v62 = vadd.f32 %v7205_v16, %v1985_v42  ;;  %v4666_v4 = vld [vmem:[%s8216_s3 + $0x280] sm:$0xff] }
 0x378   : > { %v2704_v3 = vadd.f32 %v2703_v10, %v7155_v63  ;;  %3269 = vmatmul.f32.gmra.mxu1 %v8790_v19  ;;  %v3105_v36 = vpop.f32.mrf.mxu0  ;;  %v4732_v63 = vld [vmem:[%s8216_s3 + $0x390] sm:$0xff]  ;;  %v7606_v10 = vsel %vm894_vm3, %v2831_v12, %v2832_v57  ;;  %v4731_v37 = vld [vmem:[%s8216_s3 + $0x388] sm:$0xff]  ;;  %3406 = vmatpush.msra.mxu2 %v4667_v17  ;;  %v7645_v12 = vsel %vm894_vm3, %v2832_v57, %v2834_v24 }
 0x379   : > { %3729 = vmatpush.msra.mxu0 %v4732_v63  ;;  %3568 = vmatpush.msra.mxu3 %v4683_v41  ;;  %8793 = vst [vmem:[#allocation31_spill] sm:$0xff] %v7645_v12 }
 0x37a   : > { %v3014_v0 = vadd.f32 %v2940_v40, %v2704_v3  ;;  %v1986_v40 = vadd.f32 %v7270_v2, %v1832_v27  ;;  %3407 = vmatpush.msra.mxu2 %v4666_v4  ;;  %v2174_v2 = vadd.f32 %v7020_v34, %v2139_v62 }
 0x37b   : > { %4647 = vmatmul.msk.f32.gmra.mxu0 %vm6803_vm4, %v7233_v60  ;;  %3569 = vmatpush.msra.mxu3 %v4682_v33 }
 0x37c   : > { %4583 = vmatmul.msk.f32.gmra.mxu2 %vm6803_vm4, %v7159_v9  ;;  %2990 = vmatmul.f32.gmra.mxu3 %v7606_v10  ;;  %v7624_v44 = vadd.f32 %v3102_v35, %v3014_v0  ;;  %v4730_v0 = vld [vmem:[%s8216_s3 + $0x380] sm:$0xff]  ;;  %v2140_v3 = vadd.f32 %v7245_v59, %v1986_v40  ;;  %v2206_v15 = vmax.f32 %v2174_v2, 0.0  ;;  %v2837_v59 = vrot.slane %v7257_v53, 2 }
 0x37d   : > { %v7627_v31 = vpop.f32.mrf.mxu1  ;;  %3730 = vmatpush.msra.mxu0 %v4731_v37  ;;  %v8795_v37 = vld [vmem:[#allocation76_spill] sm:$0xff]  ;;  %v2836_v40 = vrot.slane %v7249_v22, 2 }
 0x37e   : > { %8791 = vst [vmem:[#allocation74_spill] sm:$0xff] %v7624_v44  ;;  %v2175_v1 = vadd.f32 %v7020_v34, %v2140_v3  ;;  %v7658_v4 = vrot.slane %v2206_v15, 7  ;;  %v8799_v3 = vld [vmem:[#allocation59_spill] sm:$0xff] }
 0x37f   : > { %v2706_v16 = vpop.f32.mrf.mxu2  ;;  %v2943_v35 = vpop.f32.mrf.mxu3  ;;  %3731 = vmatpush.msra.mxu0 %v4730_v0  ;;  %v4753_v0 = vld [vmem:[%s8216_s3 + $0x438] sm:$0xff]  ;;  %v7665_v34 = vsel %vm894_vm3, %v2836_v40, %v2837_v59  ;;  %v8800_v15 = vld [vmem:[#allocation7_spill] sm:$0xff] }
 0x380   : > { %v2707_v25 = vadd.f32 %v2706_v16, %v7190_v52  ;;  %3272 = vmatmul.f32.gmra.mxu1 %v8792_v56  ;;  %v3108_v27 = vpop.f32.mrf.mxu0  ;;  %8796 = vst [vmem:[#allocation55_spill] sm:$0xff] %v7665_v34 }
 0x381   : > { %3886 = vmatpush.msra.mxu1 %v4753_v0 }
 0x382   : > { %v3015_v42 = vadd.f32 %v2943_v35, %v2707_v25  ;;  %v8798_v25 = vld [vmem:[#allocation16_spill] sm:$0xff] }
 0x383   : > { %3155 = vmatmul.f32.gmra.mxu0 %v7257_v53  ;;  %v2839_v2 = vrot.slane %v8798_v25, 2 }
 0x384   : > { %2756 = vmatmul.f32.gmra.mxu2 %v7186_v5  ;;  %2993 = vmatmul.f32.gmra.mxu3 %v7645_v12  ;;  %v7650_v52 = vadd.f32 %v3105_v36, %v3015_v42  ;;  %v2207_v36 = vmax.f32 %v2175_v1, 0.0 }
 0x385   : > { %v7652_v63 = vpop.f32.mrf.mxu1 }
 0x386   : > { %8794 = vst [vmem:[#allocation81_spill] sm:$0xff] %v7650_v52  ;;  %v7678_v16 = vrot.slane %v2207_v36, 7  ;;  %v8819_v52 = vld [vmem:[#allocation13_spill] sm:$0xff] }
 0x387   : > { %v2709_v17 = vpop.f32.mrf.mxu2  ;;  %v2946_v41 = vpop.f32.mrf.mxu3 }
 0x388   : > { %v2710_v57 = vadd.f32 %v2709_v17, %v7228_v38  ;;  %3275 = vmatmul.f32.gmra.mxu1 %v8795_v37  ;;  %v3111_v62 = vpop.f32.mrf.mxu0 }
 0x38a   : > { %v3016_v33 = vadd.f32 %v2946_v41, %v2710_v57  ;;  %v7686_v41 = vsel %vm291_vm0, %v7658_v4, %v7678_v16 }
 0x38b   : > { %4649 = vmatmul.msk.f32.gmra.mxu0 %vm6803_vm4, %v7658_v4 }
 0x38c   : > { %4585 = vmatmul.msk.f32.gmra.mxu2 %vm6803_vm4, %v7233_v60  ;;  %2996 = vmatmul.f32.gmra.mxu3 %v7665_v34  ;;  %v7674_v38 = vadd.f32 %v3108_v27, %v3016_v33  ;;  %v7689_v27 = vsel %vm894_vm3, %v2837_v59, %v2839_v2  ;;  %v4752_v59 = vld [vmem:[%s8216_s3 + $0x430] sm:$0xff]  ;;  %v8844_v60 = vld [vmem:[#allocation35_spill] sm:$0xff] }
 0x38d   : > { %v7676_v22 = vpop.f32.mrf.mxu1  ;;  %8801 = vst [vmem:[#allocation76_spill] sm:$0xff] %v7689_v27  ;;  %3887 = vmatpush.msra.mxu1 %v4752_v59  ;;  %v8804_v2 = vld [vmem:[#allocation4_spill] sm:$0xff]  ;;  %v8809_v59 = vld [vmem:[#allocation34_spill] sm:$0xff] }
 0x38e   : > { %8797 = vst [vmem:[#allocation53_spill] sm:$0xff] %v7674_v38  ;;  %v8811_v38 = vld [vmem:[#allocation10_spill] sm:$0xff] }
 0x38f   : > { %v2712_v35 = vpop.f32.mrf.mxu2  ;;  %v2949_v24 = vpop.f32.mrf.mxu3 }
 0x390   : > { %v2713_v42 = vadd.f32 %v2712_v35, %v8799_v3  ;;  %3278 = vmatmul.f32.gmra.mxu1 %v8800_v15  ;;  %v3114_v1 = vpop.f32.mrf.mxu0  ;;  %v8803_v35 = vld [vmem:[#allocation78_spill] sm:$0xff] }
 0x392   : > { %v3017_v17 = vadd.f32 %v2949_v24, %v2713_v42 }
 0x393   : > { %3161 = vmatmul.f32.gmra.mxu0 %v7686_v41 }
 0x394   : > { %2762 = vmatmul.f32.gmra.mxu2 %v7257_v53  ;;  %2999 = vmatmul.f32.gmra.mxu3 %v7689_v27  ;;  %v7694_v57 = vadd.f32 %v3111_v62, %v3017_v17  ;;  %v8805_v62 = vld [vmem:[#allocation69_spill] sm:$0xff]  ;;  %v8827_v27 = vld [vmem:[#allocation26_spill] sm:$0xff]  ;;  %v8835_v53 = vld [vmem:[#allocation24_spill] sm:$0xff] }
 0x395   : > { %v7696_v40 = vpop.f32.mrf.mxu1 }
 0x396   : > { %8802 = vst [vmem:[#allocation16_spill] sm:$0xff] %v7694_v57 }
 0x397   : > { %v2715_v36 = vpop.f32.mrf.mxu2  ;;  %v2952_v33 = vpop.f32.mrf.mxu3 }
 0x398   : > { %v2716_v0 = vadd.f32 %v2715_v36, %v7298_v28  ;;  %3281 = vmatmul.f32.gmra.mxu1 %v8803_v35  ;;  %v3117_v24 = vpop.f32.mrf.mxu0 }
 0x39a   : > { %v3018_v25 = vadd.f32 %v2952_v33, %v2716_v0  ;;  %v8807_v33 = vld [vmem:[#allocation9_spill] sm:$0xff] }
 0x39b   : > { %3732 = vmatmul.f32.vlgmr.msra.gmra.mxu0 %v8761_v50  ;;  %v8808_v50 = vld [vmem:[#allocation80_spill] sm:$0xff] }
 0x39c   : > { %3408 = vmatmul.f32.vlgmr.msra.gmra.mxu2 %v8804_v2  ;;  %4699 = vmatmul.msk.f32.vlgmr.msra.gmra.mxu3 %vm6803_vm4, %v8805_v62  ;;  %v7708_v3 = vadd.f32 %v3114_v1, %v3018_v25 }
 0x39d   : > { %v7710_v28 = vpop.f32.mrf.mxu1 }
 0x39e   : > { %8806 = vst [vmem:[#allocation59_spill] sm:$0xff] %v7708_v3 }
 0x39f   : > { %v2718_v42 = vpop.f32.mrf.mxu2  ;;  %v2955_v17 = vpop.f32.mrf.mxu3 }
 0x3a0   : > { %v2719_v36 = vadd.f32 %v2718_v42, %v7317_v55  ;;  %3284 = vmatmul.f32.gmra.mxu1 %v8807_v33  ;;  %v3120_v0 = vpop.f32.mrf.mxu0 }
 0x3a2   : > { %v3019_v57 = vadd.f32 %v2955_v17, %v2719_v36  ;;  %v8812_v17 = vld [vmem:[#allocation11_spill] sm:$0xff] }
 0x3a3   : > { %3735 = vmatmul.f32.gmra.mxu0 %v8764_v32  ;;  %v4751_v32 = vld [vmem:[%s8216_s3 + $0x428] sm:$0xff] }
 0x3a4   : > { %3411 = vmatmul.f32.gmra.mxu2 %v8808_v50  ;;  %3573 = vmatmul.f32.gmra.mxu3 %v8809_v59  ;;  %v7717_v2 = vadd.f32 %v3117_v24, %v3019_v57  ;;  %v8813_v57 = vld [vmem:[#allocation37_spill] sm:$0xff]  ;;  %v8815_v59 = vld [vmem:[#allocation82_spill] sm:$0xff] }
 0x3a5   : > { %v7719_v1 = vpop.f32.mrf.mxu1  ;;  %3888 = vmatpush.msra.mxu1 %v4751_v32  ;;  %v8817_v32 = vld [vmem:[#allocation68_spill] sm:$0xff] }
 0x3a6   : > { %8810 = vst [vmem:[#allocation7_spill] sm:$0xff] %v7717_v2 }
 0x3a7   : > { %v2721_v25 = vpop.f32.mrf.mxu2  ;;  %v2958_v62 = vpop.f32.mrf.mxu3 }
 0x3a8   : > { %v2722_v3 = vadd.f32 %v2721_v25, %v7344_v61  ;;  %3287 = vmatmul.f32.gmra.mxu1 %v8811_v38  ;;  %v3123_v55 = vpop.f32.mrf.mxu0 }
 0x3aa   : > { %v3020_v42 = vadd.f32 %v2958_v62, %v2722_v3 }
 0x3ab   : > { %3738 = vmatmul.f32.gmra.mxu0 %v8767_v7  ;;  %v8816_v7 = vld [vmem:[#allocation83_spill] sm:$0xff] }
 0x3ac   : > { %3414 = vmatmul.f32.gmra.mxu2 %v8812_v17  ;;  %4701 = vmatmul.msk.f32.gmra.mxu3 %vm6803_vm4, %v8813_v57  ;;  %v7731_v24 = vadd.f32 %v3120_v0, %v3020_v42 }
 0x3ad   : > { %v7733_v61 = vpop.f32.mrf.mxu1 }
 0x3ae   : > { %8814 = vst [vmem:[#allocation78_spill] sm:$0xff] %v7731_v24 }
 0x3af   : > { %v2724_v36 = vpop.f32.mrf.mxu2  ;;  %v2961_v50 = vpop.f32.mrf.mxu3 }
 0x3b0   : > { %v2725_v3 = vadd.f32 %v2724_v36, %v7360_v30  ;;  %3290 = vmatmul.f32.gmra.mxu1 %v8815_v59  ;;  %v3126_v25 = vpop.f32.mrf.mxu0 }
 0x3b2   : > { %v3021_v62 = vadd.f32 %v2961_v50, %v2725_v3  ;;  %v8820_v50 = vld [vmem:[#allocation14_spill] sm:$0xff] }
 0x3b3   : > { %3741 = vmatmul.f32.gmra.mxu0 %v8770_v48  ;;  %v4750_v48 = vld [vmem:[%s8216_s3 + $0x420] sm:$0xff] }
 0x3b4   : > { %3417 = vmatmul.f32.gmra.mxu2 %v8816_v7  ;;  %3579 = vmatmul.f32.gmra.mxu3 %v8817_v32  ;;  %v7740_v2 = vadd.f32 %v3123_v55, %v3021_v62  ;;  %v8821_v55 = vld [vmem:[#allocation43_spill] sm:$0xff] }
 0x3b5   : > { %v7742_v0 = vpop.f32.mrf.mxu1  ;;  %3889 = vmatpush.msra.mxu1 %v4750_v48  ;;  %v8825_v48 = vld [vmem:[#allocation46_spill] sm:$0xff] }
 0x3b6   : > { %8818 = vst [vmem:[#allocation4_spill] sm:$0xff] %v7740_v2 }
 0x3b7   : > { %v2727_v42 = vpop.f32.mrf.mxu2  ;;  %v2964_v57 = vpop.f32.mrf.mxu3 }
 0x3b8   : > { %v2728_v24 = vadd.f32 %v2727_v42, %v7387_v51  ;;  %3293 = vmatmul.f32.gmra.mxu1 %v8819_v52  ;;  %v3129_v30 = vpop.f32.mrf.mxu0  ;;  %v8823_v42 = vld [vmem:[#allocation85_spill] sm:$0xff] }
 0x3ba   : > { %v3022_v36 = vadd.f32 %v2964_v57, %v2728_v24 }
 0x3bb   : > { %3744 = vmatmul.f32.gmra.mxu0 %v8773_v26  ;;  %v8824_v26 = vld [vmem:[#allocation23_spill] sm:$0xff] }
 0x3bc   : > { %3420 = vmatmul.f32.gmra.mxu2 %v8820_v50  ;;  %4703 = vmatmul.msk.f32.gmra.mxu3 %vm6803_vm4, %v8821_v55  ;;  %v7754_v3 = vadd.f32 %v3126_v25, %v3022_v36 }
 0x3bd   : > { %v7756_v51 = vpop.f32.mrf.mxu1 }
 0x3be   : > { %8822 = vst [vmem:[#allocation69_spill] sm:$0xff] %v7754_v3 }
 0x3bf   : > { %v2730_v62 = vpop.f32.mrf.mxu2  ;;  %v2967_v32 = vpop.f32.mrf.mxu3 }
 0x3c0   : > { %v2731_v24 = vadd.f32 %v2730_v62, %v7403_v47  ;;  %3296 = vmatmul.f32.gmra.mxu1 %v8823_v42  ;;  %v3132_v57 = vpop.f32.mrf.mxu0 }
 0x3c2   : > { %v3023_v2 = vadd.f32 %v2967_v32, %v2731_v24  ;;  %v8828_v32 = vld [vmem:[#allocation17_spill] sm:$0xff] }
 0x3c3   : > { %3747 = vmatmul.f32.gmra.mxu0 %v8776_v23  ;;  %v4749_v23 = vld [vmem:[%s8216_s3 + $0x418] sm:$0xff] }
 0x3c4   : > { %3423 = vmatmul.f32.gmra.mxu2 %v8824_v26  ;;  %3585 = vmatmul.f32.gmra.mxu3 %v8825_v48  ;;  %v7763_v44 = vadd.f32 %v3129_v30, %v3023_v2  ;;  %v8829_v2 = vld [vmem:[#allocation71_spill] sm:$0xff] }
 0x3c5   : > { %v7765_v25 = vpop.f32.mrf.mxu1  ;;  %3890 = vmatpush.msra.mxu1 %v4749_v23  ;;  %v8833_v23 = vld [vmem:[#allocation45_spill] sm:$0xff] }
 0x3c6   : > { %8826 = vst [vmem:[#allocation9_spill] sm:$0xff] %v7763_v44 }
 0x3c7   : > { %v2733_v36 = vpop.f32.mrf.mxu2  ;;  %v2970_v55 = vpop.f32.mrf.mxu3 }
 0x3c8   : > { %v2734_v3 = vadd.f32 %v2733_v36, %v7430_v6  ;;  %3299 = vmatmul.f32.gmra.mxu1 %v8827_v27  ;;  %v3135_v47 = vpop.f32.mrf.mxu0  ;;  %v8831_v36 = vld [vmem:[#allocation32_spill] sm:$0xff] }
 0x3ca   : > { %v3024_v62 = vadd.f32 %v2970_v55, %v2734_v3 }
 0x3cb   : > { %3750 = vmatmul.f32.gmra.mxu0 %v8780_v46  ;;  %v8832_v46 = vld [vmem:[#allocation21_spill] sm:$0xff] }
 0x3cc   : > { %3426 = vmatmul.f32.gmra.mxu2 %v8828_v32  ;;  %4705 = vmatmul.msk.f32.gmra.mxu3 %vm6803_vm4, %v8829_v2  ;;  %v7777_v30 = vadd.f32 %v3132_v57, %v3024_v62 }
 0x3cd   : > { %v7779_v6 = vpop.f32.mrf.mxu1 }
 0x3ce   : > { %8830 = vst [vmem:[#allocation80_spill] sm:$0xff] %v7777_v30 }
 0x3cf   : > { %v2736_v24 = vpop.f32.mrf.mxu2  ;;  %v2973_v48 = vpop.f32.mrf.mxu3 }
 0x3d0   : > { %v2737_v3 = vadd.f32 %v2736_v24, %v7446_v29  ;;  %3302 = vmatmul.f32.gmra.mxu1 %v8831_v36  ;;  %v3138_v55 = vpop.f32.mrf.mxu0 }
 0x3d2   : > { %v3025_v44 = vadd.f32 %v2973_v48, %v2737_v3  ;;  %v8836_v48 = vld [vmem:[#allocation47_spill] sm:$0xff] }
 0x3d3   : > { %3753 = vmatmul.f32.gmra.mxu0 %v8783_v13  ;;  %v4748_v13 = vld [vmem:[%s8216_s3 + $0x410] sm:$0xff] }
 0x3d4   : > { %3429 = vmatmul.f32.gmra.mxu2 %v8832_v46  ;;  %3591 = vmatmul.f32.gmra.mxu3 %v8833_v23  ;;  %v7786_v34 = vadd.f32 %v3135_v47, %v3025_v44  ;;  %v8837_v44 = vld [vmem:[#allocation73_spill] sm:$0xff] }
 0x3d5   : > { %v7788_v57 = vpop.f32.mrf.mxu1  ;;  %3891 = vmatpush.msra.mxu1 %v4748_v13  ;;  %v8841_v13 = vld [vmem:[#allocation54_spill] sm:$0xff] }
 0x3d6   : > { %8834 = vst [vmem:[#allocation34_spill] sm:$0xff] %v7786_v34 }
 0x3d7   : > { %v2739_v62 = vpop.f32.mrf.mxu2  ;;  %v2976_v2 = vpop.f32.mrf.mxu3 }
 0x3d8   : > { %v2740_v30 = vadd.f32 %v2739_v62, %v7473_v11  ;;  %3305 = vmatmul.f32.gmra.mxu1 %v8835_v53  ;;  %v3141_v29 = vpop.f32.mrf.mxu0  ;;  %v8839_v62 = vld [vmem:[#allocation52_spill] sm:$0xff] }
 0x3da   : > { %v3026_v24 = vadd.f32 %v2976_v2, %v2740_v30 }
 0x3db   : > { %3756 = vmatmul.f32.gmra.mxu0 %v8790_v19  ;;  %v8840_v19 = vld [vmem:[#allocation33_spill] sm:$0xff] }
 0x3dc   : > { %3432 = vmatmul.f32.gmra.mxu2 %v8836_v48  ;;  %4707 = vmatmul.msk.f32.gmra.mxu3 %vm6803_vm4, %v8837_v44  ;;  %v7800_v47 = vadd.f32 %v3138_v55, %v3026_v24 }
 0x3dd   : > { %v7802_v11 = vpop.f32.mrf.mxu1 }
 0x3de   : > { %8838 = vst [vmem:[#allocation10_spill] sm:$0xff] %v7800_v47 }
 0x3df   : > { %v2742_v3 = vpop.f32.mrf.mxu2  ;;  %v2979_v23 = vpop.f32.mrf.mxu3 }
 0x3e0   : > { %v2743_v30 = vadd.f32 %v2742_v3, %v7489_v20  ;;  %3308 = vmatmul.f32.gmra.mxu1 %v8839_v62  ;;  %v3144_v2 = vpop.f32.mrf.mxu0 }
 0x3e2   : > { %v3027_v34 = vadd.f32 %v2979_v23, %v2743_v30  ;;  %v8845_v23 = vld [vmem:[#allocation39_spill] sm:$0xff] }
 0x3e3   : > { %3759 = vmatmul.f32.gmra.mxu0 %v8792_v56  ;;  %v4747_v56 = vld [vmem:[%s8216_s3 + $0x408] sm:$0xff] }
 0x3e4   : > { %3435 = vmatmul.f32.gmra.mxu2 %v8840_v19  ;;  %3597 = vmatmul.f32.gmra.mxu3 %v8841_v13  ;;  %v7809_v12 = vadd.f32 %v3141_v29, %v3027_v34  ;;  %v8846_v34 = vld [vmem:[#allocation79_spill] sm:$0xff] }
 0x3e5   : > { %v7811_v55 = vpop.f32.mrf.mxu1  ;;  %3892 = vmatpush.msra.mxu1 %v4747_v56  ;;  %v8851_v56 = vld [vmem:[#allocation58_spill] sm:$0xff] }
 0x3e6   : > { %8842 = vst [vmem:[#allocation11_spill] sm:$0xff] %v7809_v12 }
 0x3e7   : > { %8843 = vst [vmem:[#allocation37_spill] sm:$0xff] %v7811_v55  ;;  %v2745_v24 = vpop.f32.mrf.mxu2  ;;  %v2982_v44 = vpop.f32.mrf.mxu3 }
 0x3e8   : > { %v2746_v47 = vadd.f32 %v2745_v24, %v7528_v58  ;;  %3311 = vmatmul.f32.gmra.mxu1 %v8844_v60  ;;  %v3147_v20 = vpop.f32.mrf.mxu0  ;;  %v8849_v24 = vld [vmem:[#allocation41_spill] sm:$0xff] }
 0x3ea   : > { %v3028_v3 = vadd.f32 %v2982_v44, %v2746_v47 }
 0x3eb   : > { %3762 = vmatmul.f32.gmra.mxu0 %v8795_v37  ;;  %v8850_v37 = vld [vmem:[#allocation38_spill] sm:$0xff] }
 0x3ec   : > { %3438 = vmatmul.f32.gmra.mxu2 %v8845_v23  ;;  %4709 = vmatmul.msk.f32.gmra.mxu3 %vm6803_vm4, %v8846_v34  ;;  %v7823_v29 = vadd.f32 %v3144_v2, %v3028_v3 }
 0x3ed   : > { %v7825_v58 = vpop.f32.mrf.mxu1 }
 0x3ee   : > { %8847 = vst [vmem:[#allocation82_spill] sm:$0xff] %v7823_v29 }
 0x3ef   : > { %8848 = vst [vmem:[#allocation83_spill] sm:$0xff] %v7825_v58  ;;  %v2748_v30 = vpop.f32.mrf.mxu2  ;;  %v2985_v13 = vpop.f32.mrf.mxu3  ;;  %v8853_v58 = vld [vmem:[#allocation3_spill] sm:$0xff] }
 0x3f0   : > { %v2749_v47 = vadd.f32 %v2748_v30, %v7574_v43  ;;  %3314 = vmatmul.f32.gmra.mxu1 %v8849_v24  ;;  %v3150_v44 = vpop.f32.mrf.mxu0 }
 0x3f2   : > { %v3029_v12 = vadd.f32 %v2985_v13, %v2749_v47  ;;  %v8854_v13 = vld [vmem:[#allocation42_spill] sm:$0xff] }
 0x3f3   : > { %3765 = vmatmul.f32.gmra.mxu0 %v8800_v15  ;;  %v4746_v15 = vld [vmem:[%s8216_s3 + $0x400] sm:$0xff] }
 0x3f4   : > { %3441 = vmatmul.f32.gmra.mxu2 %v8850_v37  ;;  %3603 = vmatmul.f32.gmra.mxu3 %v8851_v56  ;;  %v7832_v55 = vadd.f32 %v3147_v20, %v3029_v12  ;;  %v8855_v12 = vld [vmem:[#allocation5_spill] sm:$0xff] }
 0x3f5   : > { %v7834_v2 = vpop.f32.mrf.mxu1  ;;  %3893 = vmatpush.msra.mxu1 %v4746_v15 }
 0x3f6   : > { %8852 = vst [vmem:[#allocation68_spill] sm:$0xff] %v7832_v55 }
 0x3f7   : > { %v2751_v3 = vpop.f32.mrf.mxu2  ;;  %v2988_v34 = vpop.f32.mrf.mxu3 }
 0x3f8   : > { %v2752_v29 = vadd.f32 %v2751_v3, %v7627_v31  ;;  %3317 = vmatmul.f32.gmra.mxu1 %v8853_v58  ;;  %v3153_v43 = vpop.f32.mrf.mxu0  ;;  %v8858_v3 = vld [vmem:[#allocation44_spill] sm:$0xff] }
 0x3fa   : > { %v3030_v30 = vadd.f32 %v2988_v34, %v2752_v29 }
 0x3fb   : > { %3768 = vmatmul.f32.gmra.mxu0 %v8803_v35  ;;  %v8859_v35 = vld [vmem:[#allocation50_spill] sm:$0xff] }
 0x3fc   : > { %3444 = vmatmul.f32.gmra.mxu2 %v8854_v13  ;;  %4711 = vmatmul.msk.f32.gmra.mxu3 %vm6803_vm4, %v8855_v12  ;;  %v7846_v20 = vadd.f32 %v3150_v44, %v3030_v30 }
 0x3fd   : > { %v7848_v31 = vpop.f32.mrf.mxu1 }
 0x3fe   : > { %8856 = vst [vmem:[#allocation13_spill] sm:$0xff] %v7846_v20 }
 0x3ff   : > { %8857 = vst [vmem:[#allocation14_spill] sm:$0xff] %v7848_v31  ;;  %v2754_v47 = vpop.f32.mrf.mxu2  ;;  %v2991_v56 = vpop.f32.mrf.mxu3  ;;  %v8861_v31 = vld [vmem:[#allocation12_spill] sm:$0xff] }
 0x400   : > { %v2755_v29 = vadd.f32 %v2754_v47, %v7652_v63  ;;  %3320 = vmatmul.f32.gmra.mxu1 %v8858_v3  ;;  %v3156_v34 = vpop.f32.mrf.mxu0 }
 0x402   : > { %v3031_v55 = vadd.f32 %v2991_v56, %v2755_v29  ;;  %v8862_v56 = vld [vmem:[#allocation62_spill] sm:$0xff] }
 0x403   : > { %3771 = vmatmul.f32.gmra.mxu0 %v8807_v33 }
 0x404   : > { %3447 = vmatmul.f32.gmra.mxu2 %v8859_v35  ;;  %3609 = vmatmul.f32.gmra.mxu3 %v6838_v18  ;;  %v7855_v15 = vadd.f32 %v3153_v43, %v3031_v55 }
 0x405   : > { %v7857_v44 = vpop.f32.mrf.mxu1 }
 0x406   : > { %8860 = vst [vmem:[#allocation43_spill] sm:$0xff] %v7855_v15 }
 0x407   : > { %v2757_v30 = vpop.f32.mrf.mxu2  ;;  %v2994_v12 = vpop.f32.mrf.mxu3 }
 0x408   : > { %v2758_v20 = vadd.f32 %v2757_v30, %v7676_v22  ;;  %3323 = vmatmul.f32.gmra.mxu1 %v8861_v31  ;;  %v3159_v63 = vpop.f32.mrf.mxu0 }
 0x40a   : > { %v3032_v47 = vadd.f32 %v2994_v12, %v2758_v20 }
 0x40b   : > { %3774 = vmatmul.f32.gmra.mxu0 %v8811_v38  ;;  %v7874_v38 = vsel %vm291_vm0, 0.0, %v7658_v4 }
 0x40c   : > { %3450 = vmatmul.f32.gmra.mxu2 %v8862_v56  ;;  %4713 = vmatmul.msk.f32.gmra.mxu3 %vm6803_vm4, %v6874_v14  ;;  %v7866_v18 = vadd.f32 %v3156_v34, %v3032_v47  ;;  %v3200_v14 = vrot.slane %v7686_v41, 1  ;;  %v8864_v34 = vld [vmem:[#allocation19_spill] sm:$0xff] }
 0x40d   : > { %v7868_v33 = vpop.f32.mrf.mxu1 }
 0x40e   : > { %8863 = vst [vmem:[#allocation85_spill] sm:$0xff] %v7866_v18  ;;  %v7892_v18 = vsel %vm291_vm0, %v7678_v16, 0.0 }
 0x40f   : > { %v2760_v55 = vpop.f32.mrf.mxu2  ;;  %v2997_v43 = vpop.f32.mrf.mxu3 }
 0x410   : > { %v2761_v22 = vadd.f32 %v2760_v55, %v7696_v40  ;;  %3326 = vmatmul.f32.gmra.mxu1 %v7304_v45  ;;  %v3162_v29 = vpop.f32.mrf.mxu0  ;;  %v3199_v40 = vrot.slane %v7874_v38, 1 }
 0x412   : > { %v3033_v20 = vadd.f32 %v2997_v43, %v2761_v22  ;;  %v7886_v43 = vsel %vm449_vm1, %v3199_v40, %v3200_v14 }
 0x413   : > { %3777 = vmatmul.f32.gmra.mxu0 %v8815_v59 }
 0x414   : > { %3453 = vmatmul.f32.gmra.mxu2 %v8864_v34  ;;  %3615 = vmatmul.f32.gmra.mxu3 %v6892_v21  ;;  %v7880_v30 = vadd.f32 %v3159_v63, %v3033_v20  ;;  %v3202_v63 = vrot.slane %v7892_v18, 1  ;;  %v8867_v20 = vld [vmem:[#allocation36_spill] sm:$0xff] }
 0x415   : > { %v7882_v12 = vpop.f32.mrf.mxu1 }
 0x416   : > { %8865 = vst [vmem:[#allocation23_spill] sm:$0xff] %v7880_v30 }
 0x417   : > { %8866 = vst [vmem:[#allocation46_spill] sm:$0xff] %v7882_v12  ;;  %v2763_v47 = vpop.f32.mrf.mxu2  ;;  %v3000_v55 = vpop.f32.mrf.mxu3 }
 0x418   : > { %v2764_v22 = vadd.f32 %v2763_v47, %v7710_v28  ;;  %3329 = vmatmul.f32.gmra.mxu1 %v7886_v43  ;;  %v3733_v59 = vpop.f32.mrf.mxu0  ;;  %v8868_v47 = vld [vmem:[#allocation22_spill] sm:$0xff] }
 0x419   : > { %v3336_v30 = vadd.f32 %v7719_v1, %v8868_v47  ;;  %v8869_v1 = vld [vmem:[#allocation63_spill] sm:$0xff] }
 0x41a   : > { %v3034_v21 = vadd.f32 %v3000_v55, %v2764_v22  ;;  %v7907_v55 = vsel %vm449_vm1, %v3200_v14, %v3202_v63 }
 0x41b   : > { %3780 = vmatmul.f32.gmra.mxu0 %v8819_v52 }
 0x41c   : > { %3456 = vmatmul.f32.gmra.mxu2 %v8867_v20  ;;  %4715 = vmatmul.msk.f32.gmra.mxu3 %vm6803_vm4, %v6930_v49  ;;  %v7900_v40 = vadd.f32 %v3162_v29, %v3034_v21  ;;  %v3337_v21 = vadd.f32 %v7733_v61, %v8869_v1  ;;  %v8872_v61 = vld [vmem:[#allocation66_spill] sm:$0xff] }
 0x41d   : > { %v7902_v28 = vpop.f32.mrf.mxu1 }
 0x41f   : > { %v3409_v16 = vpop.f32.mrf.mxu2  ;;  %v3571_v15 = vpop.f32.mrf.mxu3 }
 0x420   : > { %v3505_v52 = vadd.f32 %v3409_v16, %v3336_v30  ;;  %3332 = vmatmul.f32.gmra.mxu1 %v7907_v55  ;;  %v3736_v22 = vpop.f32.mrf.mxu0  ;;  %v8871_v16 = vld [vmem:[#allocation84_spill] sm:$0xff] }
 0x422   : > { %v3667_v12 = vadd.f32 %v3571_v15, %v3505_v52 }
 0x423   : > { %3783 = vmatmul.f32.gmra.mxu0 %v8823_v42  ;;  %v8870_v42 = vld [vmem:[#allocation25_spill] sm:$0xff] }
 0x424   : > { %3459 = vmatmul.f32.gmra.mxu2 %v7353_v54  ;;  %3621 = vmatmul.f32.gmra.mxu3 %v6948_v39  ;;  %v7913_v49 = vadd.f32 %v3733_v59, %v3667_v12  ;;  %v3338_v59 = vadd.f32 %v7742_v0, %v8872_v61 }
 0x425   : > { %v7915_v29 = vpop.f32.mrf.mxu1 }
 0x427   : > { %v3412_v14 = vpop.f32.mrf.mxu2  ;;  %v3574_v63 = vpop.f32.mrf.mxu3 }
 0x428   : > { %v3506_v30 = vadd.f32 %v3412_v14, %v3337_v21  ;;  %3894 = vmatmul.f32.vlgmr.msra.gmra.mxu1 %v8812_v17  ;;  %v3739_v47 = vpop.f32.mrf.mxu0  ;;  %v8873_v14 = vld [vmem:[#allocation65_spill] sm:$0xff] }
 0x42a   : > { %v3668_v15 = vadd.f32 %v3574_v63, %v3506_v30  ;;  %v8874_v63 = vld [vmem:[#allocation15_spill] sm:$0xff] }
 0x42b   : > { %3786 = vmatmul.f32.gmra.mxu0 %v8827_v27 }
 0x42c   : > { %3462 = vmatmul.f32.gmra.mxu2 %v8870_v42  ;;  %4717 = vmatmul.msk.f32.gmra.mxu3 %vm6803_vm4, %v8871_v16  ;;  %v7925_v39 = vadd.f32 %v3736_v22, %v3668_v15  ;;  %v8875_v15 = vld [vmem:[#allocation64_spill] sm:$0xff] }
 0x42d   : > { %v7927_v12 = vpop.f32.mrf.mxu1  ;;  %v3339_v0 = vadd.f32 %v7756_v51, %v8875_v15  ;;  %v8878_v51 = vld [vmem:[#allocation27_spill] sm:$0xff] }
 0x42f   : > { %v3415_v52 = vpop.f32.mrf.mxu2  ;;  %v3577_v1 = vpop.f32.mrf.mxu3 }
 0x430   : > { %v3507_v17 = vadd.f32 %v3415_v52, %v3338_v59  ;;  %3897 = vmatmul.f32.gmra.mxu1 %v8816_v7  ;;  %v3742_v27 = vpop.f32.mrf.mxu0  ;;  %v8876_v52 = vld [vmem:[#allocation67_spill] sm:$0xff] }
 0x432   : > { %v3669_v21 = vadd.f32 %v3577_v1, %v3507_v17  ;;  %v8877_v1 = vld [vmem:[#allocation30_spill] sm:$0xff] }
 0x433   : > { %3789 = vmatmul.f32.gmra.mxu0 %v8831_v36 }
 0x434   : > { %3465 = vmatmul.f32.gmra.mxu2 %v8873_v14  ;;  %3627 = vmatmul.f32.gmra.mxu3 %v8874_v63  ;;  %v7935_v22 = vadd.f32 %v3739_v47, %v3669_v21  ;;  %v3340_v21 = vadd.f32 %v7765_v25, %v8878_v51 }
 0x435   : > { %v7937_v30 = vpop.f32.mrf.mxu1 }
 0x437   : > { %v3418_v16 = vpop.f32.mrf.mxu2  ;;  %v3580_v61 = vpop.f32.mrf.mxu3 }
 0x438   : > { %v3508_v59 = vadd.f32 %v3418_v16, %v3339_v0  ;;  %3900 = vmatmul.f32.gmra.mxu1 %v8820_v50  ;;  %v3745_v36 = vpop.f32.mrf.mxu0  ;;  %v8879_v0 = vld [vmem:[#allocation72_spill] sm:$0xff] }
 0x439   : > { %v8880_v16 = vld [vmem:[#allocation20_spill] sm:$0xff] }
 0x43a   : > { %v3670_v7 = vadd.f32 %v3580_v61, %v3508_v59  ;;  %v8881_v59 = vld [vmem:[#allocation40_spill] sm:$0xff] }
 0x43b   : > { %3792 = vmatmul.f32.gmra.mxu0 %v8835_v53 }
 0x43c   : > { %3468 = vmatmul.f32.gmra.mxu2 %v8876_v52  ;;  %4719 = vmatmul.msk.f32.gmra.mxu3 %vm6803_vm4, %v8877_v1  ;;  %v7947_v47 = vadd.f32 %v3742_v27, %v3670_v7  ;;  %v3341_v7 = vadd.f32 %v7779_v6, %v8881_v59  ;;  %v8884_v6 = vld [vmem:[#allocation70_spill] sm:$0xff] }
 0x43d   : > { %v7949_v17 = vpop.f32.mrf.mxu1 }
 0x43f   : > { %v3421_v63 = vpop.f32.mrf.mxu2  ;;  %v3583_v15 = vpop.f32.mrf.mxu3 }
 0x440   : > { %v3509_v50 = vadd.f32 %v3421_v63, %v3340_v21  ;;  %3903 = vmatmul.f32.gmra.mxu1 %v8824_v26  ;;  %v3748_v25 = vpop.f32.mrf.mxu0  ;;  %v8883_v63 = vld [vmem:[#allocation29_spill] sm:$0xff] }
 0x442   : > { %v3671_v53 = vadd.f32 %v3583_v15, %v3509_v50  ;;  %v3342_v50 = vadd.f32 %v7788_v57, %v8884_v6 }
 0x443   : > { %3795 = vmatmul.f32.gmra.mxu0 %v8839_v62  ;;  %v8882_v62 = vld [vmem:[#allocation48_spill] sm:$0xff] }
 0x444   : > { %3471 = vmatmul.f32.gmra.mxu2 %v8879_v0  ;;  %3633 = vmatmul.f32.gmra.mxu3 %v8880_v16  ;;  %v7957_v61 = vadd.f32 %v3745_v36, %v3671_v53 }
 0x445   : > { %v7959_v27 = vpop.f32.mrf.mxu1 }
 0x447   : > { %v3424_v1 = vpop.f32.mrf.mxu2  ;;  %v3586_v51 = vpop.f32.mrf.mxu3 }
 0x448   : > { %v3510_v21 = vadd.f32 %v3424_v1, %v3341_v7  ;;  %3906 = vmatmul.f32.gmra.mxu1 %v8828_v32  ;;  %v3751_v32 = vpop.f32.mrf.mxu0  ;;  %v8885_v7 = vld [vmem:[#allocation75_spill] sm:$0xff]  ;;  %v8886_v1 = vld [vmem:[#allocation56_spill] sm:$0xff] }
 0x44a   : > { %v3672_v26 = vadd.f32 %v3586_v51, %v3510_v21  ;;  %v8887_v21 = vld [vmem:[#allocation86_spill] sm:$0xff] }
 0x44b   : > { %3798 = vmatmul.f32.gmra.mxu0 %v8844_v60  ;;  %v3343_v57 = vadd.f32 %v7802_v11, %v8887_v21 }
 0x44c   : > { %3474 = vmatmul.f32.gmra.mxu2 %v8882_v62  ;;  %4721 = vmatmul.msk.f32.gmra.mxu3 %vm6803_vm4, %v8883_v63  ;;  %v7969_v36 = vadd.f32 %v3748_v25, %v3672_v26 }
 0x44d   : > { %v7971_v15 = vpop.f32.mrf.mxu1 }
 0x44f   : > { %v3427_v53 = vpop.f32.mrf.mxu2  ;;  %v3589_v16 = vpop.f32.mrf.mxu3 }
 0x450   : > { %v3511_v59 = vadd.f32 %v3427_v53, %v3342_v50  ;;  %3909 = vmatmul.f32.gmra.mxu1 %v8832_v46  ;;  %v3754_v50 = vpop.f32.mrf.mxu0 }
 0x452   : > { %v3673_v60 = vadd.f32 %v3589_v16, %v3511_v59  ;;  %v8895_v59 = vld [vmem:[#allocation6_spill] sm:$0xff] }
 0x453   : > { %3801 = vmatmul.f32.gmra.mxu0 %v8849_v24  ;;  %v8888_v24 = vld [vmem:[#allocation49_spill] sm:$0xff] }
 0x454   : > { %3477 = vmatmul.f32.gmra.mxu2 %v8885_v7  ;;  %3639 = vmatmul.f32.gmra.mxu3 %v8886_v1  ;;  %v7979_v25 = vadd.f32 %v3751_v32, %v3673_v60 }
 0x455   : > { %v7981_v51 = vpop.f32.mrf.mxu1 }
 0x457   : > { %v3430_v26 = vpop.f32.mrf.mxu2  ;;  %v3592_v46 = vpop.f32.mrf.mxu3 }
 0x458   : > { %v3512_v63 = vadd.f32 %v3430_v26, %v3343_v57  ;;  %3912 = vmatmul.f32.gmra.mxu1 %v8836_v48  ;;  %v8889_v48 = vld [vmem:[#allocation77_spill] sm:$0xff] }
 0x45a   : > { %v3674_v6 = vadd.f32 %v3592_v46, %v3512_v63  ;;  %v3757_v63 = vpop.f32.mrf.mxu0 }
 0x45b   : > { %3804 = vmatmul.f32.gmra.mxu0 %v8853_v58 }
 0x45c   : > { %3480 = vmatmul.f32.gmra.mxu2 %v8888_v24  ;;  %4723 = vmatmul.msk.f32.gmra.mxu3 %vm6803_vm4, %v7159_v9  ;;  %v7991_v53 = vadd.f32 %v3754_v50, %v3674_v6  ;;  %v8890_v9 = vld [vmem:[#allocation18_spill] sm:$0xff] }
 0x45d   : > { %v7993_v16 = vpop.f32.mrf.mxu1 }
 0x460   : > { %3915 = vmatmul.f32.gmra.mxu1 %v8840_v19  ;;  %v8891_v19 = vld [vmem:[#allocation31_spill] sm:$0xff] }
 0x463   : > { %3807 = vmatmul.f32.gmra.mxu0 %v8858_v3 }
 0x464   : > { %3483 = vmatmul.f32.gmra.mxu2 %v8889_v48  ;;  %3645 = vmatmul.f32.gmra.mxu3 %v7186_v5  ;;  %v8892_v5 = vld [vmem:[#allocation57_spill] sm:$0xff] }
 0x465   : > { %v7999_v11 = vpop.f32.mrf.mxu1 }
 0x468   : > { %3918 = vmatmul.f32.gmra.mxu1 %v8845_v23  ;;  %v8893_v23 = vld [vmem:[#allocation55_spill] sm:$0xff] }
 0x46b   : > { %3810 = vmatmul.f32.gmra.mxu0 %v8861_v31 }
 0x46c   : > { %3486 = vmatmul.f32.gmra.mxu2 %v7606_v10  ;;  %4725 = vmatmul.msk.f32.gmra.mxu3 %vm6803_vm4, %v8890_v9 }
 0x46d   : > { %v8007_v58 = vpop.f32.mrf.mxu1 }
 0x470   : > { %3921 = vmatmul.f32.gmra.mxu1 %v8850_v37 }
 0x473   : > { %3813 = vmatmul.f32.gmra.mxu0 %v7304_v45  ;;  %v8894_v45 = vld [vmem:[#allocation76_spill] sm:$0xff] }
 0x474   : > { %3489 = vmatmul.f32.gmra.mxu2 %v8891_v19  ;;  %3651 = vmatmul.f32.gmra.mxu3 %v8892_v5 }
 0x475   : > { %v8013_v3 = vpop.f32.mrf.mxu1 }
 0x478   : > { %3924 = vmatmul.f32.gmra.mxu1 %v8854_v13  ;;  %v3369_v13 = vrot.slane %v7686_v41, 2 }
 0x47b   : > { %3816 = vmatmul.f32.gmra.mxu0 %v7886_v43  ;;  %v3368_v43 = vrot.slane %v7874_v38, 2  ;;  %v8897_v38 = vld [vmem:[#allocation8_spill] sm:$0xff] }
 0x47c   : > { %3492 = vmatmul.f32.gmra.mxu2 %v8893_v23  ;;  %4727 = vmatmul.msk.f32.gmra.mxu3 %vm6803_vm4, %v7658_v4 }
 0x47d   : > { %v8021_v31 = vpop.f32.mrf.mxu1  ;;  %v8033_v4 = vsel %vm894_vm3, %v3368_v43, %v3369_v13  ;;  %v3760_v43 = vpop.f32.mrf.mxu0 }
 0x480   : > { %3927 = vmatmul.f32.gmra.mxu1 %v8859_v35  ;;  %v8896_v35 = vld [vmem:[#allocation2_spill] sm:$0xff] }
 0x483   : > { %3819 = vmatmul.f32.gmra.mxu0 %v7907_v55 }
 0x484   : > { %3495 = vmatmul.f32.gmra.mxu2 %v8894_v45  ;;  %3657 = vmatmul.f32.gmra.mxu3 %v7686_v41  ;;  %v3371_v41 = vrot.slane %v7892_v18, 2  ;;  %v8059_v18 = vld [vmem:[%s8217_s4] ss:$0 sm:$0xff] }
 0x485   : > { %v8027_v37 = vpop.f32.mrf.mxu1 }
 0x488   : > { %3930 = vmatmul.f32.gmra.mxu1 %v8862_v56  ;;  %v8045_v56 = vsel %vm894_vm3, %v3369_v13, %v3371_v41 }
 0x48b   : > { %3822 = vmatmul.f32.gmra.mxu0 %v8895_v59 }
 0x48c   : > { %3498 = vmatmul.f32.gmra.mxu2 %v8033_v4  ;;  %4729 = vmatmul.msk.f32.gmra.mxu3 %vm6803_vm4, %v8896_v35 }
 0x48d   : > { %v8040_v55 = vpop.f32.mrf.mxu1 }
 0x490   : > { %3933 = vmatmul.f32.gmra.mxu1 %v8864_v34 }
 0x493   : > { %3825 = vmatmul.f32.gmra.mxu0 %v8897_v38 }
 0x494   : > { %3501 = vmatmul.f32.gmra.mxu2 %v8045_v56  ;;  %3663 = vmatmul.f32.gmra.mxu3 %v8896_v35 }
 0x495   : > { %v8050_v32 = vpop.f32.mrf.mxu1 }
 0x498   : > { %3936 = vmatmul.f32.gmra.mxu1 %v8867_v20  ;;  %v3433_v20 = vpop.f32.mrf.mxu2 }
 0x49d   : > { %v8053_v8 = vpop.f32.mrf.mxu1 }
 0x4a0   : > { %3939 = vmatmul.f32.gmra.mxu1 %v7353_v54  ;;  %v3436_v46 = vpop.f32.mrf.mxu2 }
 0x4a5   : > { %v3895_v34 = vpop.f32.mrf.mxu1 }
 0x4a6   : > { %v3991_v60 = vadd.f32 %v3895_v34, %v7913_v49  ;;  %v3763_v34 = vpop.f32.mrf.mxu0 }
 0x4a8   : > { %v4026_v1 = vadd.f32 %v8059_v18, %v3991_v60  ;;  %3942 = vmatmul.f32.gmra.mxu1 %v8870_v42  ;;  %v3595_v42 = vpop.f32.mrf.mxu3  ;;  %v3439_v59 = vpop.f32.mrf.mxu2 }
 0x4aa   : > { %v4058_v54 = vmax.f32 %v4026_v1, 0.0 }
 0x4ac   : > { %4090 = vst [vmem:[%s8069_s29] sm:$0xff] %v4058_v54 }
 0x4ad   : > { %v3898_v21 = vpop.f32.mrf.mxu1 }
 0x4ae   : > { %v3992_v57 = vadd.f32 %v3898_v21, %v7925_v39 }
 0x4b0   : > { %v4027_v49 = vadd.f32 %v8059_v18, %v3992_v57  ;;  %3945 = vmatmul.f32.gmra.mxu1 %v8873_v14  ;;  %v3598_v13 = vpop.f32.mrf.mxu3  ;;  %v3442_v1 = vpop.f32.mrf.mxu2 }
 0x4b2   : > { %v4059_v26 = vmax.f32 %v4027_v49, 0.0  ;;  %v8091_v49 = vpop.f32.mrf.mxu0 }
 0x4b4   : > { %4091 = vst [vmem:[%s8069_s29 + $0x8] sm:$0xff] %v4059_v26 }
 0x4b5   : > { %v3901_v6 = vpop.f32.mrf.mxu1 }
 0x4b6   : > { %v3993_v50 = vadd.f32 %v3901_v6, %v7935_v22 }
 0x4b8   : > { %v4028_v9 = vadd.f32 %v8059_v18, %v3993_v50  ;;  %3948 = vmatmul.f32.gmra.mxu1 %v8876_v52  ;;  %v3601_v22 = vpop.f32.mrf.mxu3  ;;  %v3445_v26 = vpop.f32.mrf.mxu2 }
 0x4ba   : > { %v4060_v5 = vmax.f32 %v4028_v9, 0.0 }
 0x4bc   : > { %4092 = vst [vmem:[%s8069_s29 + $0x10] sm:$0xff] %v4060_v5  ;;  %v8899_v5 = vld [vmem:[#allocation37_spill] sm:$0xff] }
 0x4bd   : > { %v3904_v39 = vpop.f32.mrf.mxu1 }
 0x4be   : > { %v3994_v14 = vadd.f32 %v3904_v39, %v7947_v47 }
 0x4c0   : > { %v4029_v35 = vadd.f32 %v8059_v18, %v3994_v14  ;;  %3951 = vmatmul.f32.gmra.mxu1 %v8879_v0  ;;  %v3604_v57 = vpop.f32.mrf.mxu3 }
 0x4c2   : > { %v4061_v41 = vmax.f32 %v4029_v35, 0.0 }
 0x4c4   : > { %4093 = vst [vmem:[%s8069_s29 + $0x18] sm:$0xff] %v4061_v41  ;;  %v3448_v41 = vpop.f32.mrf.mxu2 }
 0x4c5   : > { %v3907_v38 = vpop.f32.mrf.mxu1 }
 0x4c6   : > { %v3995_v52 = vadd.f32 %v3907_v38, %v7957_v61 }
 0x4c8   : > { %v4030_v60 = vadd.f32 %v8059_v18, %v3995_v52  ;;  %3954 = vmatmul.f32.gmra.mxu1 %v8882_v62  ;;  %v3607_v9 = vpop.f32.mrf.mxu3 }
 0x4ca   : > { %v4062_v54 = vmax.f32 %v4030_v60, 0.0 }
 0x4cc   : > { %4094 = vst [vmem:[%s8069_s29 + $0x20] sm:$0xff] %v4062_v54  ;;  %v8901_v54 = vld [vmem:[#allocation83_spill] sm:$0xff] }
 0x4cd   : > { %v3910_v47 = vpop.f32.mrf.mxu1 }
 0x4ce   : > { %v3996_v21 = vadd.f32 %v3910_v47, %v7969_v36  ;;  %v8898_v36 = vld [vmem:[#allocation87_spill] sm:$0xff] }
 0x4cf   : > { %v3344_v39 = vadd.f32 %v8899_v5, %v8898_v36  ;;  %v3451_v36 = vpop.f32.mrf.mxu2 }
 0x4d0   : > { %v4031_v0 = vadd.f32 %v8059_v18, %v3996_v21  ;;  %3957 = vmatmul.f32.gmra.mxu1 %v8885_v7  ;;  %v8099_v7 = vpop.f32.mrf.mxu0 }
 0x4d1   : > { %v3513_v35 = vadd.f32 %v3433_v20, %v3344_v39 }
 0x4d2   : > { %v4063_v61 = vmax.f32 %v4031_v0, 0.0  ;;  %v3610_v0 = vpop.f32.mrf.mxu3 }
 0x4d3   : > { %v3675_v60 = vadd.f32 %v3595_v42, %v3513_v35  ;;  %v8902_v42 = vld [vmem:[#allocation28_spill] sm:$0xff] }
 0x4d4   : > { %4095 = vst [vmem:[%s8069_s29 + $0x28] sm:$0xff] %v4063_v61 }
 0x4d5   : > { %v3913_v6 = vpop.f32.mrf.mxu1  ;;  %v3837_v20 = vadd.f32 %v3757_v63, %v3675_v60 }
 0x4d6   : > { %v3997_v62 = vadd.f32 %v3913_v6, %v7979_v25 }
 0x4d8   : > { %v4032_v50 = vadd.f32 %v8059_v18, %v3997_v62  ;;  %3960 = vmatmul.f32.gmra.mxu1 %v8888_v24  ;;  %v8900_v24 = vld [vmem:[#allocation51_spill] sm:$0xff]  ;;  %v3772_v62 = vpop.f32.mrf.mxu0 }
 0x4d9   : > { %v3345_v47 = vadd.f32 %v8901_v54, %v8900_v24  ;;  %v8903_v24 = vld [vmem:[#allocation74_spill] sm:$0xff] }
 0x4da   : > { %v4064_v14 = vmax.f32 %v4032_v50, 0.0 }
 0x4db   : > { %v3514_v61 = vadd.f32 %v3436_v46, %v3345_v47  ;;  %v3613_v46 = vpop.f32.mrf.mxu3 }
 0x4dc   : > { %4096 = vst [vmem:[%s8069_s29 + $0x30] sm:$0xff] %v4064_v14 }
 0x4dd   : > { %v3916_v38 = vpop.f32.mrf.mxu1  ;;  %v3676_v5 = vadd.f32 %v3598_v13, %v3514_v61  ;;  %v3454_v13 = vpop.f32.mrf.mxu2 }
 0x4de   : > { %v3998_v52 = vadd.f32 %v3916_v38, %v7991_v53 }
 0x4df   : > { %v3838_v35 = vadd.f32 %v3760_v43, %v3676_v5 }
 0x4e0   : > { %v4033_v25 = vadd.f32 %v8059_v18, %v3998_v52  ;;  %3963 = vmatmul.f32.gmra.mxu1 %v8889_v48  ;;  %v3346_v48 = vadd.f32 %v7834_v2, %v8902_v42  ;;  %v3775_v60 = vpop.f32.mrf.mxu0 }
 0x4e2   : > { %v4065_v21 = vmax.f32 %v4033_v25, 0.0  ;;  %v3515_v14 = vadd.f32 %v3439_v59, %v3346_v48 }
 0x4e3   : > { %v3616_v61 = vpop.f32.mrf.mxu3 }
 0x4e4   : > { %4097 = vst [vmem:[%s8069_s29 + $0x38] sm:$0xff] %v4065_v21  ;;  %v3677_v52 = vadd.f32 %v3601_v22, %v3515_v14 }
 0x4e5   : > { %v3919_v6 = vpop.f32.mrf.mxu1 }
 0x4e6   : > { %v3999_v50 = vadd.f32 %v3919_v6, %v3837_v20  ;;  %v3839_v59 = vadd.f32 %v3763_v34, %v3677_v52  ;;  %v8905_v6 = vld [vmem:[#allocation81_spill] sm:$0xff] }
 0x4e8   : > { %v4034_v53 = vadd.f32 %v8059_v18, %v3999_v50  ;;  %3966 = vmatmul.f32.gmra.mxu1 %v7606_v10  ;;  %v8904_v10 = vld [vmem:[#allocation14_spill] sm:$0xff]  ;;  %v3778_v50 = vpop.f32.mrf.mxu0 }
 0x4e9   : > { %v3347_v54 = vadd.f32 %v8904_v10, %v8903_v24  ;;  %v8908_v10 = vld [vmem:[#allocation46_spill] sm:$0xff] }
 0x4ea   : > { %v4066_v39 = vmax.f32 %v4034_v53, 0.0  ;;  %v3457_v53 = vpop.f32.mrf.mxu2 }
 0x4eb   : > { %v3516_v47 = vadd.f32 %v3442_v1, %v3347_v54  ;;  %v3619_v14 = vpop.f32.mrf.mxu3 }
 0x4ec   : > { %4098 = vst [vmem:[%s8069_s29 + $0x40] sm:$0xff] %v4066_v39 }
 0x4ed   : > { %v3922_v38 = vpop.f32.mrf.mxu1  ;;  %v3678_v20 = vadd.f32 %v3604_v57, %v3516_v47 }
 0x4ee   : > { %v4000_v63 = vadd.f32 %v3922_v38, %v3838_v35 }
 0x4ef   : > { %v3840_v1 = vadd.f32 %v8091_v49, %v3678_v20 }
 0x4f0   : > { %v4035_v25 = vadd.f32 %v8059_v18, %v4000_v63  ;;  %3969 = vmatmul.f32.gmra.mxu1 %v8891_v19  ;;  %v3348_v19 = vadd.f32 %v7857_v44, %v8905_v6  ;;  %v3781_v63 = vpop.f32.mrf.mxu0 }
 0x4f2   : > { %v4067_v2 = vmax.f32 %v4035_v25, 0.0  ;;  %v3517_v42 = vadd.f32 %v3445_v26, %v3348_v19  ;;  %v3460_v52 = vpop.f32.mrf.mxu2 }
 0x4f4   : > { %4099 = vst [vmem:[%s8069_s29 + $0x48] sm:$0xff] %v4067_v2  ;;  %v3679_v39 = vadd.f32 %v3607_v9, %v3517_v42  ;;  %v3622_v2 = vpop.f32.mrf.mxu3 }
 0x4f5   : > { %v3925_v21 = vpop.f32.mrf.mxu1 }
 0x4f6   : > { %v4001_v43 = vadd.f32 %v3925_v21, %v3839_v59  ;;  %v3841_v26 = vadd.f32 %v8099_v7, %v3679_v39 }
 0x4f8   : > { %v4036_v22 = vadd.f32 %v8059_v18, %v4001_v43  ;;  %3972 = vmatmul.f32.gmra.mxu1 %v8893_v23  ;;  %v8906_v23 = vld [vmem:[#allocation53_spill] sm:$0xff]  ;;  %v3784_v21 = vpop.f32.mrf.mxu0 }
 0x4f9   : > { %v3349_v35 = vadd.f32 %v7868_v33, %v8906_v23 }
 0x4fa   : > { %v4068_v5 = vmax.f32 %v4036_v22, 0.0  ;;  %v3463_v43 = vpop.f32.mrf.mxu2  ;;  %v8909_v22 = vld [vmem:[#allocation59_spill] sm:$0xff] }
 0x4fb   : > { %v3518_v38 = vadd.f32 %v3448_v41, %v3349_v35 }
 0x4fc   : > { %4100 = vst [vmem:[%s8069_s29 + $0x50] sm:$0xff] %v4068_v5 }
 0x4fd   : > { %v3928_v34 = vpop.f32.mrf.mxu1  ;;  %v3680_v24 = vadd.f32 %v3610_v0, %v3518_v38 }
 0x4fe   : > { %v4002_v48 = vadd.f32 %v3928_v34, %v3840_v1 }
 0x4ff   : > { %v3842_v41 = vadd.f32 %v3772_v62, %v3680_v24 }
 0x500   : > { %v4037_v57 = vadd.f32 %v8059_v18, %v4002_v48  ;;  %3975 = vmatmul.f32.gmra.mxu1 %v8894_v45  ;;  %v8907_v45 = vld [vmem:[#allocation16_spill] sm:$0xff]  ;;  %v3787_v34 = vpop.f32.mrf.mxu0 }
 0x501   : > { %v3350_v54 = vadd.f32 %v8908_v10, %v8907_v45 }
 0x502   : > { %v4069_v44 = vmax.f32 %v4037_v57, 0.0  ;;  %v3466_v39 = vpop.f32.mrf.mxu2  ;;  %v8911_v57 = vld [vmem:[#allocation7_spill] sm:$0xff] }
 0x503   : > { %v3519_v47 = vadd.f32 %v3451_v36, %v3350_v54  ;;  %v3625_v36 = vpop.f32.mrf.mxu3 }
 0x504   : > { %4101 = vst [vmem:[%s8069_s29 + $0x58] sm:$0xff] %v4069_v44 }
 0x505   : > { %v3931_v49 = vpop.f32.mrf.mxu1  ;;  %v3681_v20 = vadd.f32 %v3613_v46, %v3519_v47  ;;  %v8910_v46 = vld [vmem:[#allocation60_spill] sm:$0xff] }
 0x506   : > { %v4003_v25 = vadd.f32 %v3931_v49, %v3841_v26  ;;  %v8912_v26 = vld [vmem:[#allocation61_spill] sm:$0xff]  ;;  %v8913_v49 = vld [vmem:[#allocation78_spill] sm:$0xff]  ;;  %v8914_v47 = vld [vmem:[#allocation4_spill] sm:$0xff] }
 0x507   : > { %v3843_v5 = vadd.f32 %v3775_v60, %v3681_v20 }
 0x508   : > { %v4038_v9 = vadd.f32 %v8059_v18, %v4003_v25  ;;  %3978 = vmatmul.f32.gmra.mxu1 %v8033_v4  ;;  %v3351_v4 = vadd.f32 %v7902_v28, %v8909_v22  ;;  %v3353_v25 = vadd.f32 %v7927_v12, %v8913_v49  ;;  %v3790_v24 = vpop.f32.mrf.mxu0 }
 0x50a   : > { %v4070_v33 = vmax.f32 %v4038_v9, 0.0  ;;  %v3520_v19 = vadd.f32 %v3454_v13, %v3351_v4  ;;  %v3522_v45 = vadd.f32 %v3460_v52, %v3353_v25 }
 0x50b   : > { %v3628_v44 = vpop.f32.mrf.mxu3 }
 0x50c   : > { %4102 = vst [vmem:[%s8069_s29 + $0x60] sm:$0xff] %v4070_v33  ;;  %v3682_v1 = vadd.f32 %v3616_v61, %v3520_v19  ;;  %v3684_v54 = vadd.f32 %v3622_v2, %v3522_v45 }
 0x50d   : > { %v3934_v59 = vpop.f32.mrf.mxu1 }
 0x50e   : > { %v4004_v7 = vadd.f32 %v3934_v59, %v3842_v41  ;;  %v3844_v13 = vadd.f32 %v3778_v50, %v3682_v1  ;;  %v3354_v41 = vadd.f32 %v7937_v30, %v8914_v47  ;;  %v3846_v20 = vadd.f32 %v3784_v21, %v3684_v54 }
 0x510   : > { %v4039_v0 = vadd.f32 %v8059_v18, %v4004_v7  ;;  %3981 = vmatmul.f32.gmra.mxu1 %v8045_v56  ;;  %v3352_v56 = vadd.f32 %v7915_v29, %v8911_v57  ;;  %v3469_v29 = vpop.f32.mrf.mxu2  ;;  %v3523_v7 = vadd.f32 %v3463_v43, %v3354_v41  ;;  %v3793_v12 = vpop.f32.mrf.mxu0  ;;  %v8916_v57 = vld [vmem:[#allocation9_spill] sm:$0xff] }
 0x512   : > { %v4071_v6 = vmax.f32 %v4039_v0, 0.0  ;;  %v3521_v23 = vadd.f32 %v3457_v53, %v3352_v56  ;;  %v3685_v4 = vadd.f32 %v3625_v36, %v3523_v7  ;;  %v3356_v36 = vadd.f32 %v7959_v27, %v8916_v57 }
 0x514   : > { %4103 = vst [vmem:[%s8069_s29 + $0x68] sm:$0xff] %v4071_v6  ;;  %v3683_v38 = vadd.f32 %v3619_v14, %v3521_v23  ;;  %v3631_v14 = vpop.f32.mrf.mxu3  ;;  %v8915_v6 = vld [vmem:[#allocation69_spill] sm:$0xff]  ;;  %v3847_v30 = vadd.f32 %v3787_v34, %v3685_v4 }
 0x515   : > { %v3937_v42 = vpop.f32.mrf.mxu1  ;;  %v3355_v2 = vadd.f32 %v7949_v17, %v8915_v6 }
 0x516   : > { %v4005_v62 = vadd.f32 %v3937_v42, %v3843_v5  ;;  %v3845_v53 = vadd.f32 %v3781_v63, %v3683_v38 }
 0x517   : > { %v3524_v42 = vadd.f32 %v3466_v39, %v3355_v2 }
 0x518   : > { %v4040_v48 = vadd.f32 %v8059_v18, %v4005_v62  ;;  %3984 = vmatmul.f32.gmra.mxu1 %v8910_v46  ;;  %v3472_v0 = vpop.f32.mrf.mxu2  ;;  %v3796_v43 = vpop.f32.mrf.mxu0 }
 0x519   : > { %v3686_v21 = vadd.f32 %v3628_v44, %v3524_v42  ;;  %v8920_v42 = vld [vmem:[#allocation11_spill] sm:$0xff] }
 0x51a   : > { %v4072_v28 = vmax.f32 %v4040_v48, 0.0 }
 0x51b   : > { %v3848_v17 = vadd.f32 %v3790_v24, %v3686_v21 }
 0x51c   : > { %4104 = vst [vmem:[%s8069_s29 + $0x70] sm:$0xff] %v4072_v28  ;;  %v3634_v5 = vpop.f32.mrf.mxu3  ;;  %v3525_v28 = vadd.f32 %v3469_v29, %v3356_v36 }
 0x51d   : > { %v3940_v35 = vpop.f32.mrf.mxu1 }
 0x51e   : > { %v4006_v60 = vadd.f32 %v3940_v35, %v3844_v13  ;;  %v3687_v35 = vadd.f32 %v3631_v14, %v3525_v28  ;;  %v8921_v28 = vld [vmem:[#allocation82_spill] sm:$0xff] }
 0x520   : > { %v4041_v61 = vadd.f32 %v8059_v18, %v4006_v60  ;;  %3987 = vmatmul.f32.gmra.mxu1 %v8912_v26  ;;  %v3475_v48 = vpop.f32.mrf.mxu2  ;;  %v3799_v34 = vpop.f32.mrf.mxu0  ;;  %v3849_v27 = vadd.f32 %v3793_v12, %v3687_v35 }
 0x522   : > { %v4073_v9 = vmax.f32 %v4041_v61, 0.0  ;;  %v8917_v61 = vld [vmem:[#allocation80_spill] sm:$0xff] }
 0x523   : > { %v3357_v44 = vadd.f32 %v7971_v15, %v8917_v61 }
 0x524   : > { %4105 = vst [vmem:[%s8069_s29 + $0x78] sm:$0xff] %v4073_v9  ;;  %v3637_v23 = vpop.f32.mrf.mxu3 }
 0x525   : > { %v3943_v10 = vpop.f32.mrf.mxu1  ;;  %v3526_v49 = vadd.f32 %v3472_v0, %v3357_v44 }
 0x526   : > { %v4007_v50 = vadd.f32 %v3943_v10, %v3845_v53  ;;  %v8918_v53 = vld [vmem:[#allocation34_spill] sm:$0xff] }
 0x527   : > { %v3688_v24 = vadd.f32 %v3634_v5, %v3526_v49  ;;  %v3358_v10 = vadd.f32 %v7981_v51, %v8918_v53 }
 0x528   : > { %v4042_v33 = vadd.f32 %v8059_v18, %v4007_v50  ;;  %v3478_v38 = vpop.f32.mrf.mxu2  ;;  %v3802_v50 = vpop.f32.mrf.mxu0 }
 0x529   : > { %v3527_v14 = vadd.f32 %v3475_v48, %v3358_v10  ;;  %v3850_v15 = vadd.f32 %v3796_v43, %v3688_v24  ;;  %v8923_v10 = vld [vmem:[#allocation13_spill] sm:$0xff] }
 0x52a   : > { %v4074_v59 = vmax.f32 %v4042_v33, 0.0 }
 0x52c   : > { %4106 = vst [vmem:[%s8069_s29 + $0x80] sm:$0xff] %v4074_v59  ;;  %v3640_v29 = vpop.f32.mrf.mxu3  ;;  %v3689_v59 = vadd.f32 %v3637_v23, %v3527_v14 }
 0x52d   : > { %v3946_v22 = vpop.f32.mrf.mxu1 }
 0x52e   : > { %v4008_v52 = vadd.f32 %v3946_v22, %v3846_v20  ;;  %v8919_v20 = vld [vmem:[#allocation10_spill] sm:$0xff]  ;;  %v3851_v4 = vadd.f32 %v3799_v34, %v3689_v59 }
 0x52f   : > { %v3359_v0 = vadd.f32 %v7993_v16, %v8919_v20  ;;  %v8924_v20 = vld [vmem:[#allocation43_spill] sm:$0xff] }
 0x530   : > { %v4043_v63 = vadd.f32 %v8059_v18, %v4008_v52  ;;  %v3481_v33 = vpop.f32.mrf.mxu2  ;;  %v3805_v51 = vpop.f32.mrf.mxu0 }
 0x531   : > { %v3528_v52 = vadd.f32 %v3478_v38, %v3359_v0  ;;  %v3364_v0 = vadd.f32 %v8027_v37, %v8924_v20 }
 0x532   : > { %v4075_v19 = vmax.f32 %v4043_v63, 0.0 }
 0x534   : > { %4107 = vst [vmem:[%s8069_s29 + $0x88] sm:$0xff] %v4075_v19  ;;  %v3643_v12 = vpop.f32.mrf.mxu3  ;;  %v3690_v19 = vadd.f32 %v3640_v29, %v3528_v52 }
 0x535   : > { %v3949_v62 = vpop.f32.mrf.mxu1 }
 0x536   : > { %v4009_v1 = vadd.f32 %v3949_v62, %v3847_v30  ;;  %v3360_v30 = vadd.f32 %v7999_v11, %v8920_v42  ;;  %v3852_v16 = vadd.f32 %v3802_v50, %v3690_v19  ;;  %v3363_v50 = vadd.f32 %v8021_v31, %v8923_v10 }
 0x538   : > { %v4044_v46 = vadd.f32 %v8059_v18, %v4009_v1  ;;  %v3484_v63 = vpop.f32.mrf.mxu2  ;;  %v3529_v1 = vadd.f32 %v3481_v33, %v3360_v30  ;;  %v3808_v21 = vpop.f32.mrf.mxu0 }
 0x53a   : > { %v4076_v56 = vmax.f32 %v4044_v46, 0.0  ;;  %v3691_v36 = vadd.f32 %v3643_v12, %v3529_v1 }
 0x53c   : > { %4108 = vst [vmem:[%s8069_s29 + $0x90] sm:$0xff] %v4076_v56  ;;  %v3646_v43 = vpop.f32.mrf.mxu3  ;;  %v3853_v11 = vadd.f32 %v3805_v51, %v3691_v36  ;;  %v8926_v36 = vld [vmem:[#allocation23_spill] sm:$0xff] }
 0x53d   : > { %v3952_v13 = vpop.f32.mrf.mxu1 }
 0x53e   : > { %v4010_v39 = vadd.f32 %v3952_v13, %v3848_v17  ;;  %v3361_v17 = vadd.f32 %v8007_v58, %v8921_v28 }
 0x540   : > { %v4045_v60 = vadd.f32 %v8059_v18, %v4010_v39  ;;  %v3487_v57 = vpop.f32.mrf.mxu2  ;;  %v3530_v13 = vadd.f32 %v3484_v63, %v3361_v17  ;;  %v3811_v38 = vpop.f32.mrf.mxu0 }
 0x542   : > { %v4077_v26 = vmax.f32 %v4045_v60, 0.0  ;;  %v3692_v60 = vadd.f32 %v3646_v43, %v3530_v13 }
 0x544   : > { %4109 = vst [vmem:[%s8069_s29 + $0x98] sm:$0xff] %v4077_v26  ;;  %v3649_v39 = vpop.f32.mrf.mxu3  ;;  %v8922_v26 = vld [vmem:[#allocation68_spill] sm:$0xff]  ;;  %v3854_v58 = vadd.f32 %v3808_v21, %v3692_v60 }
 0x545   : > { %v3955_v25 = vpop.f32.mrf.mxu1  ;;  %v3362_v49 = vadd.f32 %v8013_v3, %v8922_v26 }
 0x546   : > { %v4011_v9 = vadd.f32 %v3955_v25, %v3849_v27 }
 0x547   : > { %v3531_v25 = vadd.f32 %v3487_v57, %v3362_v49 }
 0x548   : > { %v4046_v45 = vadd.f32 %v8059_v18, %v4011_v9  ;;  %v3490_v44 = vpop.f32.mrf.mxu2 }
 0x54a   : > { %v4078_v54 = vmax.f32 %v4046_v45, 0.0  ;;  %v3693_v45 = vadd.f32 %v3649_v39, %v3531_v25 }
 0x54c   : > { %4110 = vst [vmem:[%s8069_s29 + $0xa0] sm:$0xff] %v4078_v54  ;;  %v3652_v24 = vpop.f32.mrf.mxu3  ;;  %v3814_v54 = vpop.f32.mrf.mxu0  ;;  %v3855_v3 = vadd.f32 %v3811_v38, %v3693_v45  ;;  %v3367_v38 = vadd.f32 %v8053_v8, %v7900_v40 }
 0x54d   : > { %v3958_v47 = vpop.f32.mrf.mxu1 }
 0x54e   : > { %v4012_v41 = vadd.f32 %v3958_v47, %v3850_v15  ;;  %v3532_v15 = vadd.f32 %v3490_v44, %v3363_v50 }
 0x550   : > { %v4047_v7 = vadd.f32 %v8059_v18, %v4012_v41  ;;  %v3493_v14 = vpop.f32.mrf.mxu2  ;;  %v3694_v59 = vadd.f32 %v3652_v24, %v3532_v15 }
 0x551   : > { %v3533_v31 = vadd.f32 %v3493_v14, %v3364_v0 }
 0x552   : > { %v4079_v22 = vmax.f32 %v4047_v7, 0.0  ;;  %v3856_v51 = vadd.f32 %v3814_v54, %v3694_v59 }
 0x554   : > { %4111 = vst [vmem:[%s8069_s29 + $0xa8] sm:$0xff] %v4079_v22  ;;  %v3655_v12 = vpop.f32.mrf.mxu3  ;;  %v3817_v52 = vpop.f32.mrf.mxu0 }
 0x555   : > { %v3961_v6 = vpop.f32.mrf.mxu1 }
 0x556   : > { %v4013_v2 = vadd.f32 %v3961_v6, %v3851_v4 }
 0x558   : > { %v4048_v5 = vadd.f32 %v8059_v18, %v4013_v2  ;;  %v3496_v4 = vpop.f32.mrf.mxu2  ;;  %v3695_v2 = vadd.f32 %v3655_v12, %v3533_v31 }
 0x55a   : > { %v4080_v62 = vmax.f32 %v4048_v5, 0.0  ;;  %v8925_v5 = vld [vmem:[#allocation85_spill] sm:$0xff]  ;;  %v3857_v37 = vadd.f32 %v3817_v52, %v3695_v2 }
 0x55b   : > { %v3365_v42 = vadd.f32 %v8040_v55, %v8925_v5 }
 0x55c   : > { %4112 = vst [vmem:[%s8069_s29 + $0xb0] sm:$0xff] %v4080_v62  ;;  %v3658_v62 = vpop.f32.mrf.mxu3 }
 0x55d   : > { %v3964_v48 = vpop.f32.mrf.mxu1  ;;  %v3534_v43 = vadd.f32 %v3496_v4, %v3365_v42 }
 0x55e   : > { %v4014_v46 = vadd.f32 %v3964_v48, %v3852_v16  ;;  %v3820_v48 = vpop.f32.mrf.mxu0 }
 0x560   : > { %v4049_v56 = vadd.f32 %v8059_v18, %v4014_v46  ;;  %v3499_v21 = vpop.f32.mrf.mxu2  ;;  %v3696_v46 = vadd.f32 %v3658_v62, %v3534_v43 }
 0x562   : > { %v4081_v23 = vmax.f32 %v4049_v56, 0.0  ;;  %v3366_v56 = vadd.f32 %v8050_v32, %v8926_v36 }
 0x564   : > { %4113 = vst [vmem:[%s8069_s29 + $0xb8] sm:$0xff] %v4081_v23  ;;  %v3661_v17 = vpop.f32.mrf.mxu3  ;;  %v3535_v55 = vadd.f32 %v3499_v21, %v3366_v56  ;;  %v3858_v23 = vadd.f32 %v3820_v48, %v3696_v46 }
 0x565   : > { %v3967_v35 = vpop.f32.mrf.mxu1 }
 0x566   : > { %v4015_v34 = vadd.f32 %v3967_v35, %v3853_v11  ;;  %v3823_v39 = vpop.f32.mrf.mxu0  ;;  %v3697_v35 = vadd.f32 %v3661_v17, %v3535_v55 }
 0x568   : > { %v4050_v61 = vadd.f32 %v8059_v18, %v4015_v34  ;;  %v3502_v60 = vpop.f32.mrf.mxu2  ;;  %v3859_v44 = vadd.f32 %v3823_v39, %v3697_v35 }
 0x569   : > { %v3536_v32 = vadd.f32 %v3502_v60, %v3367_v38 }
 0x56a   : > { %v4082_v27 = vmax.f32 %v4050_v61, 0.0 }
 0x56c   : > { %4114 = vst [vmem:[%s8069_s29 + $0xc0] sm:$0xff] %v4082_v27  ;;  %v3664_v26 = vpop.f32.mrf.mxu3 }
 0x56d   : > { %v3970_v9 = vpop.f32.mrf.mxu1  ;;  %v3698_v25 = vadd.f32 %v3664_v26, %v3536_v32 }
 0x56e   : > { %v4016_v29 = vadd.f32 %v3970_v9, %v3854_v58  ;;  %v3826_v9 = vpop.f32.mrf.mxu0 }
 0x56f   : > { %v3860_v24 = vadd.f32 %v3826_v9, %v3698_v25 }
 0x570   : > { %v4051_v53 = vadd.f32 %v8059_v18, %v4016_v29 }
 0x572   : > { %v4083_v33 = vmax.f32 %v4051_v53, 0.0 }
 0x574   : > { %4115 = vst [vmem:[%s8069_s29 + $0xc8] sm:$0xff] %v4083_v33 }
 0x575   : > { %v3973_v47 = vpop.f32.mrf.mxu1 }
 0x576   : > { %v4017_v41 = vadd.f32 %v3973_v47, %v3855_v3 }
 0x578   : > { %v4052_v7 = vadd.f32 %v8059_v18, %v4017_v41 }
 0x57a   : > { %v4084_v22 = vmax.f32 %v4052_v7, 0.0 }
 0x57c   : > { %4116 = vst [vmem:[%s8069_s29 + $0xd0] sm:$0xff] %v4084_v22 }
 0x57d   : > { %v3976_v63 = vpop.f32.mrf.mxu1 }
 0x57e   : > { %v4018_v6 = vadd.f32 %v3976_v63, %v3856_v51 }
 0x580   : > { %v4053_v19 = vadd.f32 %v8059_v18, %v4018_v6 }
 0x582   : > { %v4085_v30 = vmax.f32 %v4053_v19, 0.0 }
 0x584   : > { %4117 = vst [vmem:[%s8069_s29 + $0xd8] sm:$0xff] %v4085_v30 }
 0x585   : > { %v3979_v1 = vpop.f32.mrf.mxu1 }
 0x586   : > { %v4019_v16 = vadd.f32 %v3979_v1, %v3857_v37 }
 0x588   : > { %v4054_v57 = vadd.f32 %v8059_v18, %v4019_v16 }
 0x58a   : > { %v4086_v28 = vmax.f32 %v4054_v57, 0.0 }
 0x58c   : > { %4118 = vst [vmem:[%s8069_s29 + $0xe0] sm:$0xff] %v4086_v28 }
 0x58d   : > { %v3982_v13 = vpop.f32.mrf.mxu1 }
 0x58e   : > { %v4020_v11 = vadd.f32 %v3982_v13, %v3858_v23 }
 0x590   : > { %v4055_v34 = vadd.f32 %v8059_v18, %v4020_v11 }
 0x592   : > { %v4087_v61 = vmax.f32 %v4055_v34, 0.0 }
 0x594   : > { %4119 = vst [vmem:[%s8069_s29 + $0xe8] sm:$0xff] %v4087_v61 }
 0x595   : > { %v3985_v49 = vpop.f32.mrf.mxu1 }
 0x596   : > { %v4021_v27 = vadd.f32 %v3985_v49, %v3859_v44 }
 0x598   : > { %v4056_v58 = vadd.f32 %v8059_v18, %v4021_v27 }
 0x59a   : > { %v4088_v29 = vmax.f32 %v4056_v58, 0.0 }
 0x59c   : > { %4120 = vst [vmem:[%s8069_s29 + $0xf0] sm:$0xff] %v4088_v29 }
 0x59d   : > { %v3988_v45 = vpop.f32.mrf.mxu1 }
 0x59e   : > { %v4022_v53 = vadd.f32 %v3988_v45, %v3860_v24 }
 0x5a0   : > { %v4057_v10 = vadd.f32 %v8059_v18, %v4022_v53 }
 0x5a2   : > { %v4089_v40 = vmax.f32 %v4057_v10, 0.0 }
 0x5a4   : > { %4121 = vst [vmem:[%s8069_s29 + $0xf8] sm:$0xff] %v4089_v40 }
 0x5a5 PF: > { %s15_s18 = sadd.s32 1, %s4800_s18  }
 0x5a6   : > { %p12_p4 = scmp.ge.s32.totalorder %s15_s18, 4  }
 0x5a8   :  { %14 = sbr.rel (!%p12_p4) target bundleno = 1 (0x1), region = 86 }

</bundles_post_ra>
